<compile_context>
chip_gen: v7x
topology: tpu7x:2x2x1
jax: 0.10.0
libtpu: 0.0.40
codegen_flags: <defaults>
</compile_context>

<pallas_src>
import numpy as np
import jax
import jax.numpy as jnp
from jax.experimental import pallas as pl
from jax.experimental.pallas import tpu as pltpu

_EPS = 1e-5          # nn.InstanceNorm2d default eps
_SLOPE = 0.2         # LeakyReLU negative_slope
_MM_DTYPE = jnp.bfloat16   # MXU operand dtype (accumulation stays f32)


def _leaky(x):
    # LeakyReLU(0.2): max(x, 0.2*x) is exact for slope in (0, 1)
    return jnp.maximum(x, _SLOPE * x)


# --------------------------------------------------------------------------- kernels
def _conv_in_lrelu_kernel(w_ref, p_ref, o_ref):
    # w_ref: (Cout, 9*Cin) bf16, p_ref: (1, 9*Cin, HW) bf16, o_ref: (1, Cout, HW) f32
    y = jnp.dot(w_ref[...], p_ref[0], preferred_element_type=jnp.float32)
    hw = y.shape[-1]
    mu = jnp.sum(y, axis=-1, keepdims=True) * (1.0 / hw)
    d = y - mu
    var = jnp.sum(d * d, axis=-1, keepdims=True) * (1.0 / hw)   # biased var (PyTorch IN)
    o_ref[0] = _leaky(d * jax.lax.rsqrt(var + _EPS))


def _pool_kernel(p_ref, x_ref, o_ref):
    # p_ref: (2W, W//2) bf16, x_ref: (1, C*H//2, 2W) bf16, o_ref: (1, C*H//2, W//2) f32
    o_ref[0] = jnp.dot(x_ref[0], p_ref[...], preferred_element_type=jnp.float32)


def _tconv_in_lrelu_kernel(w_ref, x_ref, o_ref):
    # w_ref: (4, Cout, Cin) bf16, x_ref: (1, Cin, HW) bf16, o_ref: (1, 4, Cout, HW) f32
    x = x_ref[0]
    ys = [jnp.dot(w_ref[k], x, preferred_element_type=jnp.float32) for k in range(4)]
    inv_n = 1.0 / (4.0 * ys[0].shape[-1])
    mu = inv_n * sum(jnp.sum(y, axis=-1, keepdims=True) for y in ys)
    var = inv_n * sum(jnp.sum((y - mu) ** 2, axis=-1, keepdims=True) for y in ys)
    inv = jax.lax.rsqrt(var + _EPS)
    for k in range(4):
        o_ref[0, k] = _leaky((ys[k] - mu) * inv)


def _final_kernel(w_ref, b_ref, x_ref, img_ref, o_ref):
    # fused 1x1 conv + bias + residual add
    y = jnp.dot(w_ref[...], x_ref[0], preferred_element_type=jnp.float32)
    o_ref[0] = y + b_ref[...] + img_ref[0]


# --------------------------------------------------------------------------- wrappers
def _pcall(kernel, out_shape, in_specs, out_specs, cost_estimate=None):
    return pl.pallas_call(
        kernel,
        out_shape=out_shape,
        grid=(out_shape.shape[0],),            # batch as a parallel grid axis
        in_specs=in_specs,
        out_specs=out_specs,
        compiler_params=pltpu.CompilerParams(dimension_semantics=("parallel",)),
        cost_estimate=cost_estimate,
    )


def conv3x3_in_lrelu(x, w):
    """Fused Conv2d(3x3, pad=1, no bias) + InstanceNorm2d + LeakyReLU(0.2)."""
    N, Cin, H, W = x.shape
    Cout = w.shape[0]
    K, HW = 9 * Cin, H * W
    xp = jnp.pad(x, ((0, 0), (0, 0), (1, 1), (1, 1)))
    cols = [xp[:, :, ky:ky + H, kx:kx + W] for ky in range(3) for kx in range(3)]
    patches = jnp.stack(cols, axis=1).reshape(N, K, HW).astype(_MM_DTYPE)
    wmat = jnp.transpose(w, (0, 2, 3, 1)).reshape(Cout, K).astype(_MM_DTYPE)
    cost = pl.CostEstimate(
        flops=2 * N * Cout * K * HW,
        transcendentals=N * Cout,
        bytes_accessed=N * K * HW * 2 + Cout * K * 2 + N * Cout * HW * 4)
    out = _pcall(
        _conv_in_lrelu_kernel,
        jax.ShapeDtypeStruct((N, Cout, HW), jnp.float32),
        [pl.BlockSpec((Cout, K), lambda n: (0, 0)),
         pl.BlockSpec((1, K, HW), lambda n: (n, 0, 0))],
        pl.BlockSpec((1, Cout, HW), lambda n: (n, 0, 0)),
        cost_estimate=cost,
    )(wmat, patches)
    return out.reshape(N, Cout, H, W)


def avg_pool2x2(x):
    """F.avg_pool2d(kernel=2, stride=2) as one matmul per sample."""
    N, C, H, W = x.shape
    x2 = x.reshape(N, C * H // 2, 2 * W).astype(_MM_DTYPE)
    P = np.zeros((2 * W, W // 2), np.float32)
    for j in range(W // 2):
        P[2 * j, j] = P[2 * j + 1, j] = P[W + 2 * j, j] = P[W + 2 * j + 1, j] = 0.25
    out = _pcall(
        _pool_kernel,
        jax.ShapeDtypeStruct((N, C * H // 2, W // 2), jnp.float32),
        [pl.BlockSpec((2 * W, W // 2), lambda n: (0, 0)),
         pl.BlockSpec((1, C * H // 2, 2 * W), lambda n: (n, 0, 0))],
        pl.BlockSpec((1, C * H // 2, W // 2), lambda n: (n, 0, 0)),
    )(jnp.asarray(P, _MM_DTYPE), x2)
    return out.reshape(N, C, H // 2, W // 2)


def tconv2x2_in_lrelu(x, w):
    """Fused ConvTranspose2d(k=2, s=2, no bias) + InstanceNorm2d + LeakyReLU(0.2)."""
    N, Cin, H, W = x.shape
    Cout = w.shape[1]
    HW = H * W
    xm = x.reshape(N, Cin, HW).astype(_MM_DTYPE)
    # wt[k = dy*2+dx, co, ci] = w[ci, co, dy, dx]
    wt = jnp.transpose(w, (2, 3, 1, 0)).reshape(4, Cout, Cin).astype(_MM_DTYPE)
    out = _pcall(
        _tconv_in_lrelu_kernel,
        jax.ShapeDtypeStruct((N, 4, Cout, HW), jnp.float32),
        [pl.BlockSpec((4, Cout, Cin), lambda n: (0, 0, 0)),
         pl.BlockSpec((1, Cin, HW), lambda n: (n, 0, 0))],
        pl.BlockSpec((1, 4, Cout, HW), lambda n: (n, 0, 0, 0)),
    )(wt, xm)
    # interleave the 4 tap planes into the 2x-upsampled grid (pure layout op)
    o = out.reshape(N, 2, 2, Cout, H, W)
    o = jnp.transpose(o, (0, 3, 4, 1, 5, 2)).reshape(N, Cout, 2 * H, 2 * W)
    return o


def conv1x1_bias_residual(x, w, b, image):
    """Fused final Conv2d(1x1, bias) + residual `+ image`."""
    N, Cin, H, W = x.shape
    Cout = w.shape[0]
    HW = H * W
    out = _pcall(
        _final_kernel,
        jax.ShapeDtypeStruct((N, Cout, HW), jnp.float32),
        [pl.BlockSpec((Cout, Cin), lambda n: (0, 0)),
         pl.BlockSpec((Cout, 1), lambda n: (0, 0)),
         pl.BlockSpec((1, Cin, HW), lambda n: (n, 0, 0)),
         pl.BlockSpec((1, Cout, HW), lambda n: (n, 0, 0))],
        pl.BlockSpec((1, Cout, HW), lambda n: (n, 0, 0)),
    )(w.astype(_MM_DTYPE), b.reshape(Cout, 1).astype(jnp.float32),
      x.reshape(N, Cin, HW).astype(_MM_DTYPE), image.reshape(N, Cout, HW))
    return out.reshape(N, Cout, H, W)


def _conv_block_pallas(x, wpair):
    # ConvBlock: (conv -> IN -> LReLU -> Dropout(identity)) x 2
    for w in wpair:
        x = conv3x3_in_lrelu(x, w)
    return x


_PALLAS_OPS = dict(conv_block=_conv_block_pallas, avg_pool=avg_pool2x2,
                   tconv_block=tconv2x2_in_lrelu, final_conv=conv1x1_bias_residual)


# --------------------------------------------------------------------------- pure-JAX reference
def _ref_in_lrelu(x):
    mu = jnp.mean(x, axis=(2, 3), keepdims=True)
    var = jnp.mean((x - mu) ** 2, axis=(2, 3), keepdims=True)
    return _leaky((x - mu) * jax.lax.rsqrt(var + _EPS))


def _ref_conv_block(x, wpair):
    for w in wpair:
        x = jax.lax.conv_general_dilated(x, w, (1, 1), ((1, 1), (1, 1)),
                                         dimension_numbers=("NCHW", "OIHW", "NCHW"))
        x = _ref_in_lrelu(x)
    return x


def _ref_avg_pool(x):
    N, C, H, W = x.shape
    return x.reshape(N, C, H // 2, 2, W // 2, 2).mean(axis=(3, 5))


def _ref_tconv_block(x, w):
    t = jnp.einsum("nchw,coij->nohiwj", x, w)
    y = t.reshape(x.shape[0], w.shape[1], 2 * x.shape[2], 2 * x.shape[3])
    return _ref_in_lrelu(y)


def _ref_final(x, w, b, image):
    return jnp.einsum("nchw,oc->nohw", x, w) + b[None, :, None, None] + image


_REF_OPS = dict(conv_block=_ref_conv_block, avg_pool=_ref_avg_pool,
                tconv_block=_ref_tconv_block, final_conv=_ref_final)


# --------------------------------------------------------------------------- U-Net forward
def unet_forward(image, params, ops):
    stack = []
    output = image
    for blk in params["down"]:
        output = ops["conv_block"](output, blk)
        stack.append(output)
        output = ops["avg_pool"](output)
    output = ops["conv_block"](output, params["bottleneck"])
    n_up = len(params["up_t"])
    for i in range(n_up):
        skip = stack.pop()
        output = ops["tconv_block"](output, params["up_t"][i])
        pad_w = 1 if output.shape[-1] != skip.shape[-1] else 0
        pad_h = 1 if output.shape[-2] != skip.shape[-2] else 0
        if pad_w or pad_h:   # reflect pad; never triggered when H, W divide 2**num_pool_layers
            output = jnp.pad(output, ((0, 0), (0, 0), (0, pad_h), (0, pad_w)), mode="reflect")
        output = jnp.concatenate([output, skip], axis=1)
        if i < n_up - 1:
            output = ops["conv_block"](output, params["up_conv"][i])
        else:
            cb, w1, b1 = params["up_conv"][i]
            output = ops["conv_block"](output, cb)
            output = ops["final_conv"](output, w1, b1, image)   # 1x1 conv + bias + residual
    return output


def init_params(key, in_chans=2, out_chans=2, chans=8, num_pool_layers=2):
    keys = iter(jax.random.split(key, 64))

    def conv_w(co, ci, k):
        return jax.random.normal(next(keys), (co, ci, k, k), jnp.float32) / np.sqrt(ci * k * k)

    def conv_block(ci, co):
        return (conv_w(co, ci, 3), conv_w(co, co, 3))

    def tconv_w(ci, co):
        return jax.random.normal(next(keys), (ci, co, 2, 2), jnp.float32) / np.sqrt(ci * 4)

    params = {"down": [conv_block(in_chans, chans)], "up_t": [], "up_conv": []}
    ch = chans
    for _ in range(num_pool_layers - 1):
        params["down"].append(conv_block(ch, ch * 2))
        ch *= 2
    params["bottleneck"] = conv_block(ch, ch * 2)
    for _ in range(num_pool_layers - 1):
        params["up_t"].append(tconv_w(ch * 2, ch))
        params["up_conv"].append(conv_block(ch * 2, ch))
        ch //= 2
    params["up_t"].append(tconv_w(ch * 2, ch))
    w1x1 = jax.random.normal(next(keys), (out_chans, ch), jnp.float32) / np.sqrt(ch)
    b1x1 = 0.1 * jax.random.normal(next(keys), (out_chans,), jnp.float32)
    params["up_conv"].append((conv_block(ch * 2, ch), w1x1, b1x1))
    return params


# --------------------------------------------------------------------------- main
if __name__ == "__main__":
    key = jax.random.PRNGKey(0)
    k_img, k_par = jax.random.split(key)
    N, C, H, W = 2, 2, 16, 16
    image = jax.random.normal(k_img, (N, C, H, W), jnp.float32)
    params = init_params(k_par, in_chans=C, out_chans=C, chans=8, num_pool_layers=2)

    unet_pallas = jax.jit(lambda img, p: unet_forward(img, p, _PALLAS_OPS))
    unet_ref = jax.jit(lambda img, p: unet_forward(img, p, _REF_OPS))

    out = jax.block_until_ready(unet_pallas(image, params))
    assert out.shape == (N, C, H, W) and out.dtype == jnp.float32

    ref = jax.block_until_ready(unet_ref(image, params))
    err = float(jnp.max(jnp.abs(out - ref)))
    scale = float(jnp.max(jnp.abs(ref)))
    # bf16 MXU operands (f32 accumulation) vs an all-f32 reference -> loose tolerance
    if err > 5e-2 * scale + 5e-2:
        raise AssertionError(f"mismatch vs reference: max abs err {err} (scale {scale})")

    print("KERNEL_OK")
</pallas_src>

<mosaic_0001>
module attributes {stable_mosaic.version = 11 : i64} {
  func.func @_conv_in_lrelu_kernel(%arg0: i32, %arg1: memref<8x18xbf16, #tpu.memory_space<vmem>>, %arg2: memref<1x18x256xbf16, #tpu.memory_space<vmem>>, %arg3: memref<1x8x256xf32, #tpu.memory_space<vmem>>) attributes {dimension_semantics = [#tpu.dimension_semantics<parallel>], iteration_bounds = array<i64: 2>, scalar_prefetch = 0 : i64, scratch_operands = 0 : i64, tpu.core_type = #tpu.core_type<tc>, window_params = [{pipeline_mode = #tpu.pipeline_mode<synchronous>, transform_indices = @transform_0, window_bounds = array<i64: 8, 18>}, {transform_indices = @transform_1, window_bounds = array<i64: 1, 18, 256>}, {transform_indices = @transform_2, window_bounds = array<i64: 1, 8, 256>}]} {
    %c0 = arith.constant 0 : index
    %c0_0 = arith.constant 0 : index
    %0 = vector.load %arg1[%c0, %c0_0] : memref<8x18xbf16, #tpu.memory_space<vmem>>, vector<8x18xbf16>
    %c0_1 = arith.constant 0 : index
    %c0_2 = arith.constant 0 : index
    %c0_3 = arith.constant 0 : index
    %1 = vector.load %arg2[%c0_1, %c0_2, %c0_3] : memref<1x18x256xbf16, #tpu.memory_space<vmem>>, vector<1x18x256xbf16>
    %2 = vector.shape_cast %1 : vector<1x18x256xbf16> to vector<18x256xbf16>
    %cst = arith.constant dense<0.000000e+00> : vector<8x256xf32>
    %3 = tpu.matmul %0, %2, %cst {dimension_numbers = #tpu.dot_dimension_numbers<[1], [0], [0], [1], [0, 0, 1, 1], [], []>} : vector<8x18xbf16>, vector<18x256xbf16>, vector<8x256xf32> -> vector<8x256xf32>
    %cst_4 = arith.constant dense<0.000000e+00> : vector<8xf32>
    %4 = vector.multi_reduction <add>, %3, %cst_4 [1] : vector<8x256xf32> to vector<8xf32>
    %5 = vector.shape_cast %4 : vector<8xf32> to vector<8x1xf32>
    %cst_5 = arith.constant 3.906250e-03 : f32
    %6 = vector.broadcast %cst_5 : f32 to vector<8x1xf32>
    %7 = arith.mulf %5, %6 : vector<8x1xf32>
    %8 = vector.broadcast %7 : vector<8x1xf32> to vector<8x256xf32>
    %9 = arith.subf %3, %8 : vector<8x256xf32>
    %10 = arith.mulf %9, %9 : vector<8x256xf32>
    %cst_6 = arith.constant dense<0.000000e+00> : vector<8xf32>
    %11 = vector.multi_reduction <add>, %10, %cst_6 [1] : vector<8x256xf32> to vector<8xf32>
    %12 = vector.shape_cast %11 : vector<8xf32> to vector<8x1xf32>
    %cst_7 = arith.constant 3.906250e-03 : f32
    %13 = vector.broadcast %cst_7 : f32 to vector<8x1xf32>
    %14 = arith.mulf %12, %13 : vector<8x1xf32>
    %cst_8 = arith.constant 9.99999974E-6 : f32
    %15 = vector.broadcast %cst_8 : f32 to vector<8x1xf32>
    %16 = arith.addf %14, %15 : vector<8x1xf32>
    %17 = math.rsqrt %16 : vector<8x1xf32>
    %18 = vector.broadcast %17 : vector<8x1xf32> to vector<8x256xf32>
    %19 = arith.mulf %9, %18 : vector<8x256xf32>
    %cst_9 = arith.constant 2.000000e-01 : f32
    %20 = vector.broadcast %cst_9 : f32 to vector<8x256xf32>
    %21 = arith.mulf %20, %19 : vector<8x256xf32>
    %22 = arith.maximumf %19, %21 : vector<8x256xf32>
    %c0_10 = arith.constant 0 : index
    %c0_11 = arith.constant 0 : index
    %c0_12 = arith.constant 0 : index
    %23 = vector.load %arg3[%c0_10, %c0_11, %c0_12] : memref<1x8x256xf32, #tpu.memory_space<vmem>>, vector<1x8x256xf32>
    %24 = vector.shape_cast %23 : vector<1x8x256xf32> to vector<8x256xf32>
    %25 = vector.shape_cast %22 : vector<8x256xf32> to vector<1x8x256xf32>
    tpu.vector_store %arg3[%c0_10, %c0_11, %c0_12], %25 {strides = array<i32>} : memref<1x8x256xf32, #tpu.memory_space<vmem>>, vector<1x8x256xf32>,
    return
  }
  func.func @transform_0(%arg0: i32) -> (i32, i32) {
    %c0_i32 = arith.constant 0 : i32
    %c0_i32_0 = arith.constant 0 : i32
    %c0_i32_1 = arith.constant 0 : i32
    return %c0_i32, %c0_i32_0 : i32, i32
  }
  func.func @transform_1(%arg0: i32) -> (i32, i32, i32) {
    %c0_i32 = arith.constant 0 : i32
    %c0_i32_0 = arith.constant 0 : i32
    %c0_i32_1 = arith.constant 0 : i32
    return %arg0, %c0_i32, %c0_i32_0 : i32, i32, i32
  }
  func.func @transform_2(%arg0: i32) -> (i32, i32, i32) {
    %c0_i32 = arith.constant 0 : i32
    %c0_i32_0 = arith.constant 0 : i32
    %c0_i32_1 = arith.constant 0 : i32
    return %arg0, %c0_i32, %c0_i32_0 : i32, i32, i32
  }
}

module attributes {stable_mosaic.version = 11 : i64} {
  func.func @_pool_kernel(%arg0: i32, %arg1: memref<32x8xbf16, #tpu.memory_space<vmem>>, %arg2: memref<1x64x32xbf16, #tpu.memory_space<vmem>>, %arg3: memref<1x64x8xf32, #tpu.memory_space<vmem>>) attributes {dimension_semantics = [#tpu.dimension_semantics<parallel>], iteration_bounds = array<i64: 2>, scalar_prefetch = 0 : i64, scratch_operands = 0 : i64, tpu.core_type = #tpu.core_type<tc>, window_params = [{pipeline_mode = #tpu.pipeline_mode<synchronous>, transform_indices = @transform_0, window_bounds = array<i64: 32, 8>}, {transform_indices = @transform_1, window_bounds = array<i64: 1, 64, 32>}, {transform_indices = @transform_2, window_bounds = array<i64: 1, 64, 8>}]} {
    %c0 = arith.constant 0 : index
    %c0_0 = arith.constant 0 : index
    %c0_1 = arith.constant 0 : index
    %0 = vector.load %arg2[%c0, %c0_0, %c0_1] : memref<1x64x32xbf16, #tpu.memory_space<vmem>>, vector<1x64x32xbf16>
    %1 = vector.shape_cast %0 : vector<1x64x32xbf16> to vector<64x32xbf16>
    %c0_2 = arith.constant 0 : index
    %c0_3 = arith.constant 0 : index
    %2 = vector.load %arg1[%c0_2, %c0_3] : memref<32x8xbf16, #tpu.memory_space<vmem>>, vector<32x8xbf16>
    %cst = arith.constant dense<0.000000e+00> : vector<64x8xf32>
    %3 = tpu.matmul %1, %2, %cst {dimension_numbers = #tpu.dot_dimension_numbers<[1], [0], [0], [1], [0, 0, 1, 1], [], []>} : vector<64x32xbf16>, vector<32x8xbf16>, vector<64x8xf32> -> vector<64x8xf32>
    %c0_4 = arith.constant 0 : index
    %c0_5 = arith.constant 0 : index
    %c0_6 = arith.constant 0 : index
    %4 = vector.load %arg3[%c0_4, %c0_5, %c0_6] : memref<1x64x8xf32, #tpu.memory_space<vmem>>, vector<1x64x8xf32>
    %5 = vector.shape_cast %4 : vector<1x64x8xf32> to vector<64x8xf32>
    %6 = vector.shape_cast %3 : vector<64x8xf32> to vector<1x64x8xf32>
    tpu.vector_store %arg3[%c0_4, %c0_5, %c0_6], %6 {strides = array<i32>} : memref<1x64x8xf32, #tpu.memory_space<vmem>>, vector<1x64x8xf32>,
    return
  }
  func.func @transform_0(%arg0: i32) -> (i32, i32) {
    %c0_i32 = arith.constant 0 : i32
    %c0_i32_0 = arith.constant 0 : i32
    %c0_i32_1 = arith.constant 0 : i32
    return %c0_i32, %c0_i32_0 : i32, i32
  }
  func.func @transform_1(%arg0: i32) -> (i32, i32, i32) {
    %c0_i32 = arith.constant 0 : i32
    %c0_i32_0 = arith.constant 0 : i32
    %c0_i32_1 = arith.constant 0 : i32
    return %arg0, %c0_i32, %c0_i32_0 : i32, i32, i32
  }
  func.func @transform_2(%arg0: i32) -> (i32, i32, i32) {
    %c0_i32 = arith.constant 0 : i32
    %c0_i32_0 = arith.constant 0 : i32
    %c0_i32_1 = arith.constant 0 : i32
    return %arg0, %c0_i32, %c0_i32_0 : i32, i32, i32
  }
}

module attributes {stable_mosaic.version = 11 : i64} {
  func.func @_conv_in_lrelu_kernel(%arg0: i32, %arg1: memref<8x72xbf16, #tpu.memory_space<vmem>>, %arg2: memref<1x72x256xbf16, #tpu.memory_space<vmem>>, %arg3: memref<1x8x256xf32, #tpu.memory_space<vmem>>) attributes {dimension_semantics = [#tpu.dimension_semantics<parallel>], iteration_bounds = array<i64: 2>, scalar_prefetch = 0 : i64, scratch_operands = 0 : i64, tpu.core_type = #tpu.core_type<tc>, window_params = [{pipeline_mode = #tpu.pipeline_mode<synchronous>, transform_indices = @transform_0, window_bounds = array<i64: 8, 72>}, {transform_indices = @transform_1, window_bounds = array<i64: 1, 72, 256>}, {transform_indices = @transform_2, window_bounds = array<i64: 1, 8, 256>}]} {
    %c0 = arith.constant 0 : index
    %c0_0 = arith.constant 0 : index
    %0 = vector.load %arg1[%c0, %c0_0] : memref<8x72xbf16, #tpu.memory_space<vmem>>, vector<8x72xbf16>
    %c0_1 = arith.constant 0 : index
    %c0_2 = arith.constant 0 : index
    %c0_3 = arith.constant 0 : index
    %1 = vector.load %arg2[%c0_1, %c0_2, %c0_3] : memref<1x72x256xbf16, #tpu.memory_space<vmem>>, vector<1x72x256xbf16>
    %2 = vector.shape_cast %1 : vector<1x72x256xbf16> to vector<72x256xbf16>
    %cst = arith.constant dense<0.000000e+00> : vector<8x256xf32>
    %3 = tpu.matmul %0, %2, %cst {dimension_numbers = #tpu.dot_dimension_numbers<[1], [0], [0], [1], [0, 0, 1, 1], [], []>} : vector<8x72xbf16>, vector<72x256xbf16>, vector<8x256xf32> -> vector<8x256xf32>
    %cst_4 = arith.constant dense<0.000000e+00> : vector<8xf32>
    %4 = vector.multi_reduction <add>, %3, %cst_4 [1] : vector<8x256xf32> to vector<8xf32>
    %5 = vector.shape_cast %4 : vector<8xf32> to vector<8x1xf32>
    %cst_5 = arith.constant 3.906250e-03 : f32
    %6 = vector.broadcast %cst_5 : f32 to vector<8x1xf32>
    %7 = arith.mulf %5, %6 : vector<8x1xf32>
    %8 = vector.broadcast %7 : vector<8x1xf32> to vector<8x256xf32>
    %9 = arith.subf %3, %8 : vector<8x256xf32>
    %10 = arith.mulf %9, %9 : vector<8x256xf32>
    %cst_6 = arith.constant dense<0.000000e+00> : vector<8xf32>
    %11 = vector.multi_reduction <add>, %10, %cst_6 [1] : vector<8x256xf32> to vector<8xf32>
    %12 = vector.shape_cast %11 : vector<8xf32> to vector<8x1xf32>
    %cst_7 = arith.constant 3.906250e-03 : f32
    %13 = vector.broadcast %cst_7 : f32 to vector<8x1xf32>
    %14 = arith.mulf %12, %13 : vector<8x1xf32>
    %cst_8 = arith.constant 9.99999974E-6 : f32
    %15 = vector.broadcast %cst_8 : f32 to vector<8x1xf32>
    %16 = arith.addf %14, %15 : vector<8x1xf32>
    %17 = math.rsqrt %16 : vector<8x1xf32>
    %18 = vector.broadcast %17 : vector<8x1xf32> to vector<8x256xf32>
    %19 = arith.mulf %9, %18 : vector<8x256xf32>
    %cst_9 = arith.constant 2.000000e-01 : f32
    %20 = vector.broadcast %cst_9 : f32 to vector<8x256xf32>
    %21 = arith.mulf %20, %19 : vector<8x256xf32>
    %22 = arith.maximumf %19, %21 : vector<8x256xf32>
    %c0_10 = arith.constant 0 : index
    %c0_11 = arith.constant 0 : index
    %c0_12 = arith.constant 0 : index
    %23 = vector.load %arg3[%c0_10, %c0_11, %c0_12] : memref<1x8x256xf32, #tpu.memory_space<vmem>>, vector<1x8x256xf32>
    %24 = vector.shape_cast %23 : vector<1x8x256xf32> to vector<8x256xf32>
    %25 = vector.shape_cast %22 : vector<8x256xf32> to vector<1x8x256xf32>
    tpu.vector_store %arg3[%c0_10, %c0_11, %c0_12], %25 {strides = array<i32>} : memref<1x8x256xf32, #tpu.memory_space<vmem>>, vector<1x8x256xf32>,
    return
  }
  func.func @transform_0(%arg0: i32) -> (i32, i32) {
    %c0_i32 = arith.constant 0 : i32
    %c0_i32_0 = arith.constant 0 : i32
    %c0_i32_1 = arith.constant 0 : i32
    return %c0_i32, %c0_i32_0 : i32, i32
  }
  func.func @transform_1(%arg0: i32) -> (i32, i32, i32) {
    %c0_i32 = arith.constant 0 : i32
    %c0_i32_0 = arith.constant 0 : i32
    %c0_i32_1 = arith.constant 0 : i32
    return %arg0, %c0_i32, %c0_i32_0 : i32, i32, i32
  }
  func.func @transform_2(%arg0: i32) -> (i32, i32, i32) {
    %c0_i32 = arith.constant 0 : i32
    %c0_i32_0 = arith.constant 0 : i32
    %c0_i32_1 = arith.constant 0 : i32
    return %arg0, %c0_i32, %c0_i32_0 : i32, i32, i32
  }
}

module attributes {stable_mosaic.version = 11 : i64} {
  func.func @_conv_in_lrelu_kernel(%arg0: i32, %arg1: memref<16x72xbf16, #tpu.memory_space<vmem>>, %arg2: memref<1x72x64xbf16, #tpu.memory_space<vmem>>, %arg3: memref<1x16x64xf32, #tpu.memory_space<vmem>>) attributes {dimension_semantics = [#tpu.dimension_semantics<parallel>], iteration_bounds = array<i64: 2>, scalar_prefetch = 0 : i64, scratch_operands = 0 : i64, tpu.core_type = #tpu.core_type<tc>, window_params = [{pipeline_mode = #tpu.pipeline_mode<synchronous>, transform_indices = @transform_0, window_bounds = array<i64: 16, 72>}, {transform_indices = @transform_1, window_bounds = array<i64: 1, 72, 64>}, {transform_indices = @transform_2, window_bounds = array<i64: 1, 16, 64>}]} {
    %c0 = arith.constant 0 : index
    %c0_0 = arith.constant 0 : index
    %0 = vector.load %arg1[%c0, %c0_0] : memref<16x72xbf16, #tpu.memory_space<vmem>>, vector<16x72xbf16>
    %c0_1 = arith.constant 0 : index
    %c0_2 = arith.constant 0 : index
    %c0_3 = arith.constant 0 : index
    %1 = vector.load %arg2[%c0_1, %c0_2, %c0_3] : memref<1x72x64xbf16, #tpu.memory_space<vmem>>, vector<1x72x64xbf16>
    %2 = vector.shape_cast %1 : vector<1x72x64xbf16> to vector<72x64xbf16>
    %cst = arith.constant dense<0.000000e+00> : vector<16x64xf32>
    %3 = tpu.matmul %0, %2, %cst {dimension_numbers = #tpu.dot_dimension_numbers<[1], [0], [0], [1], [0, 0, 1, 1], [], []>} : vector<16x72xbf16>, vector<72x64xbf16>, vector<16x64xf32> -> vector<16x64xf32>
    %cst_4 = arith.constant dense<0.000000e+00> : vector<16xf32>
    %4 = vector.multi_reduction <add>, %3, %cst_4 [1] : vector<16x64xf32> to vector<16xf32>
    %5 = vector.shape_cast %4 : vector<16xf32> to vector<16x1xf32>
    %cst_5 = arith.constant 1.562500e-02 : f32
    %6 = vector.broadcast %cst_5 : f32 to vector<16x1xf32>
    %7 = arith.mulf %5, %6 : vector<16x1xf32>
    %8 = vector.broadcast %7 : vector<16x1xf32> to vector<16x64xf32>
    %9 = arith.subf %3, %8 : vector<16x64xf32>
    %10 = arith.mulf %9, %9 : vector<16x64xf32>
    %cst_6 = arith.constant dense<0.000000e+00> : vector<16xf32>
    %11 = vector.multi_reduction <add>, %10, %cst_6 [1] : vector<16x64xf32> to vector<16xf32>
    %12 = vector.shape_cast %11 : vector<16xf32> to vector<16x1xf32>
    %cst_7 = arith.constant 1.562500e-02 : f32
    %13 = vector.broadcast %cst_7 : f32 to vector<16x1xf32>
    %14 = arith.mulf %12, %13 : vector<16x1xf32>
    %cst_8 = arith.constant 9.99999974E-6 : f32
    %15 = vector.broadcast %cst_8 : f32 to vector<16x1xf32>
    %16 = arith.addf %14, %15 : vector<16x1xf32>
    %17 = math.rsqrt %16 : vector<16x1xf32>
    %18 = vector.broadcast %17 : vector<16x1xf32> to vector<16x64xf32>
    %19 = arith.mulf %9, %18 : vector<16x64xf32>
    %cst_9 = arith.constant 2.000000e-01 : f32
    %20 = vector.broadcast %cst_9 : f32 to vector<16x64xf32>
    %21 = arith.mulf %20, %19 : vector<16x64xf32>
    %22 = arith.maximumf %19, %21 : vector<16x64xf32>
    %c0_10 = arith.constant 0 : index
    %c0_11 = arith.constant 0 : index
    %c0_12 = arith.constant 0 : index
    %23 = vector.load %arg3[%c0_10, %c0_11, %c0_12] : memref<1x16x64xf32, #tpu.memory_space<vmem>>, vector<1x16x64xf32>
    %24 = vector.shape_cast %23 : vector<1x16x64xf32> to vector<16x64xf32>
    %25 = vector.shape_cast %22 : vector<16x64xf32> to vector<1x16x64xf32>
    tpu.vector_store %arg3[%c0_10, %c0_11, %c0_12], %25 {strides = array<i32>} : memref<1x16x64xf32, #tpu.memory_space<vmem>>, vector<1x16x64xf32>,
    return
  }
  func.func @transform_0(%arg0: i32) -> (i32, i32) {
    %c0_i32 = arith.constant 0 : i32
    %c0_i32_0 = arith.constant 0 : i32
    %c0_i32_1 = arith.constant 0 : i32
    return %c0_i32, %c0_i32_0 : i32, i32
  }
  func.func @transform_1(%arg0: i32) -> (i32, i32, i32) {
    %c0_i32 = arith.constant 0 : i32
    %c0_i32_0 = arith.constant 0 : i32
    %c0_i32_1 = arith.constant 0 : i32
    return %arg0, %c0_i32, %c0_i32_0 : i32, i32, i32
  }
  func.func @transform_2(%arg0: i32) -> (i32, i32, i32) {
    %c0_i32 = arith.constant 0 : i32
    %c0_i32_0 = arith.constant 0 : i32
    %c0_i32_1 = arith.constant 0 : i32
    return %arg0, %c0_i32, %c0_i32_0 : i32, i32, i32
  }
}

module attributes {stable_mosaic.version = 11 : i64} {
  func.func @_conv_in_lrelu_kernel(%arg0: i32, %arg1: memref<16x144xbf16, #tpu.memory_space<vmem>>, %arg2: memref<1x144x64xbf16, #tpu.memory_space<vmem>>, %arg3: memref<1x16x64xf32, #tpu.memory_space<vmem>>) attributes {dimension_semantics = [#tpu.dimension_semantics<parallel>], iteration_bounds = array<i64: 2>, scalar_prefetch = 0 : i64, scratch_operands = 0 : i64, tpu.core_type = #tpu.core_type<tc>, window_params = [{pipeline_mode = #tpu.pipeline_mode<synchronous>, transform_indices = @transform_0, window_bounds = array<i64: 16, 144>}, {transform_indices = @transform_1, window_bounds = array<i64: 1, 144, 64>}, {transform_indices = @transform_2, window_bounds = array<i64: 1, 16, 64>}]} {
    %c0 = arith.constant 0 : index
    %c0_0 = arith.constant 0 : index
    %0 = vector.load %arg1[%c0, %c0_0] : memref<16x144xbf16, #tpu.memory_space<vmem>>, vector<16x144xbf16>
    %c0_1 = arith.constant 0 : index
    %c0_2 = arith.constant 0 : index
    %c0_3 = arith.constant 0 : index
    %1 = vector.load %arg2[%c0_1, %c0_2, %c0_3] : memref<1x144x64xbf16, #tpu.memory_space<vmem>>, vector<1x144x64xbf16>
    %2 = vector.shape_cast %1 : vector<1x144x64xbf16> to vector<144x64xbf16>
    %cst = arith.constant dense<0.000000e+00> : vector<16x64xf32>
    %3 = tpu.matmul %0, %2, %cst {dimension_numbers = #tpu.dot_dimension_numbers<[1], [0], [0], [1], [0, 0, 1, 1], [], []>} : vector<16x144xbf16>, vector<144x64xbf16>, vector<16x64xf32> -> vector<16x64xf32>
    %cst_4 = arith.constant dense<0.000000e+00> : vector<16xf32>
    %4 = vector.multi_reduction <add>, %3, %cst_4 [1] : vector<16x64xf32> to vector<16xf32>
    %5 = vector.shape_cast %4 : vector<16xf32> to vector<16x1xf32>
    %cst_5 = arith.constant 1.562500e-02 : f32
    %6 = vector.broadcast %cst_5 : f32 to vector<16x1xf32>
    %7 = arith.mulf %5, %6 : vector<16x1xf32>
    %8 = vector.broadcast %7 : vector<16x1xf32> to vector<16x64xf32>
    %9 = arith.subf %3, %8 : vector<16x64xf32>
    %10 = arith.mulf %9, %9 : vector<16x64xf32>
    %cst_6 = arith.constant dense<0.000000e+00> : vector<16xf32>
    %11 = vector.multi_reduction <add>, %10, %cst_6 [1] : vector<16x64xf32> to vector<16xf32>
    %12 = vector.shape_cast %11 : vector<16xf32> to vector<16x1xf32>
    %cst_7 = arith.constant 1.562500e-02 : f32
    %13 = vector.broadcast %cst_7 : f32 to vector<16x1xf32>
    %14 = arith.mulf %12, %13 : vector<16x1xf32>
    %cst_8 = arith.constant 9.99999974E-6 : f32
    %15 = vector.broadcast %cst_8 : f32 to vector<16x1xf32>
    %16 = arith.addf %14, %15 : vector<16x1xf32>
    %17 = math.rsqrt %16 : vector<16x1xf32>
    %18 = vector.broadcast %17 : vector<16x1xf32> to vector<16x64xf32>
    %19 = arith.mulf %9, %18 : vector<16x64xf32>
    %cst_9 = arith.constant 2.000000e-01 : f32
    %20 = vector.broadcast %cst_9 : f32 to vector<16x64xf32>
    %21 = arith.mulf %20, %19 : vector<16x64xf32>
    %22 = arith.maximumf %19, %21 : vector<16x64xf32>
    %c0_10 = arith.constant 0 : index
    %c0_11 = arith.constant 0 : index
    %c0_12 = arith.constant 0 : index
    %23 = vector.load %arg3[%c0_10, %c0_11, %c0_12] : memref<1x16x64xf32, #tpu.memory_space<vmem>>, vector<1x16x64xf32>
    %24 = vector.shape_cast %23 : vector<1x16x64xf32> to vector<16x64xf32>
    %25 = vector.shape_cast %22 : vector<16x64xf32> to vector<1x16x64xf32>
    tpu.vector_store %arg3[%c0_10, %c0_11, %c0_12], %25 {strides = array<i32>} : memref<1x16x64xf32, #tpu.memory_space<vmem>>, vector<1x16x64xf32>,
    return
  }
  func.func @transform_0(%arg0: i32) -> (i32, i32) {
    %c0_i32 = arith.constant 0 : i32
    %c0_i32_0 = arith.constant 0 : i32
    %c0_i32_1 = arith.constant 0 : i32
    return %c0_i32, %c0_i32_0 : i32, i32
  }
  func.func @transform_1(%arg0: i32) -> (i32, i32, i32) {
    %c0_i32 = arith.constant 0 : i32
    %c0_i32_0 = arith.constant 0 : i32
    %c0_i32_1 = arith.constant 0 : i32
    return %arg0, %c0_i32, %c0_i32_0 : i32, i32, i32
  }
  func.func @transform_2(%arg0: i32) -> (i32, i32, i32) {
    %c0_i32 = arith.constant 0 : i32
    %c0_i32_0 = arith.constant 0 : i32
    %c0_i32_1 = arith.constant 0 : i32
    return %arg0, %c0_i32, %c0_i32_0 : i32, i32, i32
  }
}

module attributes {stable_mosaic.version = 11 : i64} {
  func.func @_pool_kernel(%arg0: i32, %arg1: memref<16x4xbf16, #tpu.memory_space<vmem>>, %arg2: memref<1x64x16xbf16, #tpu.memory_space<vmem>>, %arg3: memref<1x64x4xf32, #tpu.memory_space<vmem>>) attributes {dimension_semantics = [#tpu.dimension_semantics<parallel>], iteration_bounds = array<i64: 2>, scalar_prefetch = 0 : i64, scratch_operands = 0 : i64, tpu.core_type = #tpu.core_type<tc>, window_params = [{pipeline_mode = #tpu.pipeline_mode<synchronous>, transform_indices = @transform_0, window_bounds = array<i64: 16, 4>}, {transform_indices = @transform_1, window_bounds = array<i64: 1, 64, 16>}, {transform_indices = @transform_2, window_bounds = array<i64: 1, 64, 4>}]} {
    %c0 = arith.constant 0 : index
    %c0_0 = arith.constant 0 : index
    %c0_1 = arith.constant 0 : index
    %0 = vector.load %arg2[%c0, %c0_0, %c0_1] : memref<1x64x16xbf16, #tpu.memory_space<vmem>>, vector<1x64x16xbf16>
    %1 = vector.shape_cast %0 : vector<1x64x16xbf16> to vector<64x16xbf16>
    %c0_2 = arith.constant 0 : index
    %c0_3 = arith.constant 0 : index
    %2 = vector.load %arg1[%c0_2, %c0_3] : memref<16x4xbf16, #tpu.memory_space<vmem>>, vector<16x4xbf16>
    %cst = arith.constant dense<0.000000e+00> : vector<64x4xf32>
    %3 = tpu.matmul %1, %2, %cst {dimension_numbers = #tpu.dot_dimension_numbers<[1], [0], [0], [1], [0, 0, 1, 1], [], []>} : vector<64x16xbf16>, vector<16x4xbf16>, vector<64x4xf32> -> vector<64x4xf32>
    %c0_4 = arith.constant 0 : index
    %c0_5 = arith.constant 0 : index
    %c0_6 = arith.constant 0 : index
    %4 = vector.load %arg3[%c0_4, %c0_5, %c0_6] : memref<1x64x4xf32, #tpu.memory_space<vmem>>, vector<1x64x4xf32>
    %5 = vector.shape_cast %4 : vector<1x64x4xf32> to vector<64x4xf32>
    %6 = vector.shape_cast %3 : vector<64x4xf32> to vector<1x64x4xf32>
    tpu.vector_store %arg3[%c0_4, %c0_5, %c0_6], %6 {strides = array<i32>} : memref<1x64x4xf32, #tpu.memory_space<vmem>>, vector<1x64x4xf32>,
    return
  }
  func.func @transform_0(%arg0: i32) -> (i32, i32) {
    %c0_i32 = arith.constant 0 : i32
    %c0_i32_0 = arith.constant 0 : i32
    %c0_i32_1 = arith.constant 0 : i32
    return %c0_i32, %c0_i32_0 : i32, i32
  }
  func.func @transform_1(%arg0: i32) -> (i32, i32, i32) {
    %c0_i32 = arith.constant 0 : i32
    %c0_i32_0 = arith.constant 0 : i32
    %c0_i32_1 = arith.constant 0 : i32
    return %arg0, %c0_i32, %c0_i32_0 : i32, i32, i32
  }
  func.func @transform_2(%arg0: i32) -> (i32, i32, i32) {
    %c0_i32 = arith.constant 0 : i32
    %c0_i32_0 = arith.constant 0 : i32
    %c0_i32_1 = arith.constant 0 : i32
    return %arg0, %c0_i32, %c0_i32_0 : i32, i32, i32
  }
}

module attributes {stable_mosaic.version = 11 : i64} {
  func.func @_conv_in_lrelu_kernel(%arg0: i32, %arg1: memref<32x144xbf16, #tpu.memory_space<vmem>>, %arg2: memref<1x144x16xbf16, #tpu.memory_space<vmem>>, %arg3: memref<1x32x16xf32, #tpu.memory_space<vmem>>) attributes {dimension_semantics = [#tpu.dimension_semantics<parallel>], iteration_bounds = array<i64: 2>, scalar_prefetch = 0 : i64, scratch_operands = 0 : i64, tpu.core_type = #tpu.core_type<tc>, window_params = [{pipeline_mode = #tpu.pipeline_mode<synchronous>, transform_indices = @transform_0, window_bounds = array<i64: 32, 144>}, {transform_indices = @transform_1, window_bounds = array<i64: 1, 144, 16>}, {transform_indices = @transform_2, window_bounds = array<i64: 1, 32, 16>}]} {
    %c0 = arith.constant 0 : index
    %c0_0 = arith.constant 0 : index
    %0 = vector.load %arg1[%c0, %c0_0] : memref<32x144xbf16, #tpu.memory_space<vmem>>, vector<32x144xbf16>
    %c0_1 = arith.constant 0 : index
    %c0_2 = arith.constant 0 : index
    %c0_3 = arith.constant 0 : index
    %1 = vector.load %arg2[%c0_1, %c0_2, %c0_3] : memref<1x144x16xbf16, #tpu.memory_space<vmem>>, vector<1x144x16xbf16>
    %2 = vector.shape_cast %1 : vector<1x144x16xbf16> to vector<144x16xbf16>
    %cst = arith.constant dense<0.000000e+00> : vector<32x16xf32>
    %3 = tpu.matmul %0, %2, %cst {dimension_numbers = #tpu.dot_dimension_numbers<[1], [0], [0], [1], [0, 0, 1, 1], [], []>} : vector<32x144xbf16>, vector<144x16xbf16>, vector<32x16xf32> -> vector<32x16xf32>
    %cst_4 = arith.constant dense<0.000000e+00> : vector<32xf32>
    %4 = vector.multi_reduction <add>, %3, %cst_4 [1] : vector<32x16xf32> to vector<32xf32>
    %5 = vector.shape_cast %4 : vector<32xf32> to vector<32x1xf32>
    %cst_5 = arith.constant 6.250000e-02 : f32
    %6 = vector.broadcast %cst_5 : f32 to vector<32x1xf32>
    %7 = arith.mulf %5, %6 : vector<32x1xf32>
    %8 = vector.broadcast %7 : vector<32x1xf32> to vector<32x16xf32>
    %9 = arith.subf %3, %8 : vector<32x16xf32>
    %10 = arith.mulf %9, %9 : vector<32x16xf32>
    %cst_6 = arith.constant dense<0.000000e+00> : vector<32xf32>
    %11 = vector.multi_reduction <add>, %10, %cst_6 [1] : vector<32x16xf32> to vector<32xf32>
    %12 = vector.shape_cast %11 : vector<32xf32> to vector<32x1xf32>
    %cst_7 = arith.constant 6.250000e-02 : f32
    %13 = vector.broadcast %cst_7 : f32 to vector<32x1xf32>
    %14 = arith.mulf %12, %13 : vector<32x1xf32>
    %cst_8 = arith.constant 9.99999974E-6 : f32
    %15 = vector.broadcast %cst_8 : f32 to vector<32x1xf32>
    %16 = arith.addf %14, %15 : vector<32x1xf32>
    %17 = math.rsqrt %16 : vector<32x1xf32>
    %18 = vector.broadcast %17 : vector<32x1xf32> to vector<32x16xf32>
    %19 = arith.mulf %9, %18 : vector<32x16xf32>
    %cst_9 = arith.constant 2.000000e-01 : f32
    %20 = vector.broadcast %cst_9 : f32 to vector<32x16xf32>
    %21 = arith.mulf %20, %19 : vector<32x16xf32>
    %22 = arith.maximumf %19, %21 : vector<32x16xf32>
    %c0_10 = arith.constant 0 : index
    %c0_11 = arith.constant 0 : index
    %c0_12 = arith.constant 0 : index
    %23 = vector.load %arg3[%c0_10, %c0_11, %c0_12] : memref<1x32x16xf32, #tpu.memory_space<vmem>>, vector<1x32x16xf32>
    %24 = vector.shape_cast %23 : vector<1x32x16xf32> to vector<32x16xf32>
    %25 = vector.shape_cast %22 : vector<32x16xf32> to vector<1x32x16xf32>
    tpu.vector_store %arg3[%c0_10, %c0_11, %c0_12], %25 {strides = array<i32>} : memref<1x32x16xf32, #tpu.memory_space<vmem>>, vector<1x32x16xf32>,
    return
  }
  func.func @transform_0(%arg0: i32) -> (i32, i32) {
    %c0_i32 = arith.constant 0 : i32
    %c0_i32_0 = arith.constant 0 : i32
    %c0_i32_1 = arith.constant 0 : i32
    return %c0_i32, %c0_i32_0 : i32, i32
  }
  func.func @transform_1(%arg0: i32) -> (i32, i32, i32) {
    %c0_i32 = arith.constant 0 : i32
    %c0_i32_0 = arith.constant 0 : i32
    %c0_i32_1 = arith.constant 0 : i32
    return %arg0, %c0_i32, %c0_i32_0 : i32, i32, i32
  }
  func.func @transform_2(%arg0: i32) -> (i32, i32, i32) {
    %c0_i32 = arith.constant 0 : i32
    %c0_i32_0 = arith.constant 0 : i32
    %c0_i32_1 = arith.constant 0 : i32
    return %arg0, %c0_i32, %c0_i32_0 : i32, i32, i32
  }
}

module attributes {stable_mosaic.version = 11 : i64} {
  func.func @_conv_in_lrelu_kernel(%arg0: i32, %arg1: memref<32x288xbf16, #tpu.memory_space<vmem>>, %arg2: memref<1x288x16xbf16, #tpu.memory_space<vmem>>, %arg3: memref<1x32x16xf32, #tpu.memory_space<vmem>>) attributes {dimension_semantics = [#tpu.dimension_semantics<parallel>], iteration_bounds = array<i64: 2>, scalar_prefetch = 0 : i64, scratch_operands = 0 : i64, tpu.core_type = #tpu.core_type<tc>, window_params = [{pipeline_mode = #tpu.pipeline_mode<synchronous>, transform_indices = @transform_0, window_bounds = array<i64: 32, 288>}, {transform_indices = @transform_1, window_bounds = array<i64: 1, 288, 16>}, {transform_indices = @transform_2, window_bounds = array<i64: 1, 32, 16>}]} {
    %c0 = arith.constant 0 : index
    %c0_0 = arith.constant 0 : index
    %0 = vector.load %arg1[%c0, %c0_0] : memref<32x288xbf16, #tpu.memory_space<vmem>>, vector<32x288xbf16>
    %c0_1 = arith.constant 0 : index
    %c0_2 = arith.constant 0 : index
    %c0_3 = arith.constant 0 : index
    %1 = vector.load %arg2[%c0_1, %c0_2, %c0_3] : memref<1x288x16xbf16, #tpu.memory_space<vmem>>, vector<1x288x16xbf16>
    %2 = vector.shape_cast %1 : vector<1x288x16xbf16> to vector<288x16xbf16>
    %cst = arith.constant dense<0.000000e+00> : vector<32x16xf32>
    %3 = tpu.matmul %0, %2, %cst {dimension_numbers = #tpu.dot_dimension_numbers<[1], [0], [0], [1], [0, 0, 1, 1], [], []>} : vector<32x288xbf16>, vector<288x16xbf16>, vector<32x16xf32> -> vector<32x16xf32>
    %cst_4 = arith.constant dense<0.000000e+00> : vector<32xf32>
    %4 = vector.multi_reduction <add>, %3, %cst_4 [1] : vector<32x16xf32> to vector<32xf32>
    %5 = vector.shape_cast %4 : vector<32xf32> to vector<32x1xf32>
    %cst_5 = arith.constant 6.250000e-02 : f32
    %6 = vector.broadcast %cst_5 : f32 to vector<32x1xf32>
    %7 = arith.mulf %5, %6 : vector<32x1xf32>
    %8 = vector.broadcast %7 : vector<32x1xf32> to vector<32x16xf32>
    %9 = arith.subf %3, %8 : vector<32x16xf32>
    %10 = arith.mulf %9, %9 : vector<32x16xf32>
    %cst_6 = arith.constant dense<0.000000e+00> : vector<32xf32>
    %11 = vector.multi_reduction <add>, %10, %cst_6 [1] : vector<32x16xf32> to vector<32xf32>
    %12 = vector.shape_cast %11 : vector<32xf32> to vector<32x1xf32>
    %cst_7 = arith.constant 6.250000e-02 : f32
    %13 = vector.broadcast %cst_7 : f32 to vector<32x1xf32>
    %14 = arith.mulf %12, %13 : vector<32x1xf32>
    %cst_8 = arith.constant 9.99999974E-6 : f32
    %15 = vector.broadcast %cst_8 : f32 to vector<32x1xf32>
    %16 = arith.addf %14, %15 : vector<32x1xf32>
    %17 = math.rsqrt %16 : vector<32x1xf32>
    %18 = vector.broadcast %17 : vector<32x1xf32> to vector<32x16xf32>
    %19 = arith.mulf %9, %18 : vector<32x16xf32>
    %cst_9 = arith.constant 2.000000e-01 : f32
    %20 = vector.broadcast %cst_9 : f32 to vector<32x16xf32>
    %21 = arith.mulf %20, %19 : vector<32x16xf32>
    %22 = arith.maximumf %19, %21 : vector<32x16xf32>
    %c0_10 = arith.constant 0 : index
    %c0_11 = arith.constant 0 : index
    %c0_12 = arith.constant 0 : index
    %23 = vector.load %arg3[%c0_10, %c0_11, %c0_12] : memref<1x32x16xf32, #tpu.memory_space<vmem>>, vector<1x32x16xf32>
    %24 = vector.shape_cast %23 : vector<1x32x16xf32> to vector<32x16xf32>
    %25 = vector.shape_cast %22 : vector<32x16xf32> to vector<1x32x16xf32>
    tpu.vector_store %arg3[%c0_10, %c0_11, %c0_12], %25 {strides = array<i32>} : memref<1x32x16xf32, #tpu.memory_space<vmem>>, vector<1x32x16xf32>,
    return
  }
  func.func @transform_0(%arg0: i32) -> (i32, i32) {
    %c0_i32 = arith.constant 0 : i32
    %c0_i32_0 = arith.constant 0 : i32
    %c0_i32_1 = arith.constant 0 : i32
    return %c0_i32, %c0_i32_0 : i32, i32
  }
  func.func @transform_1(%arg0: i32) -> (i32, i32, i32) {
    %c0_i32 = arith.constant 0 : i32
    %c0_i32_0 = arith.constant 0 : i32
    %c0_i32_1 = arith.constant 0 : i32
    return %arg0, %c0_i32, %c0_i32_0 : i32, i32, i32
  }
  func.func @transform_2(%arg0: i32) -> (i32, i32, i32) {
    %c0_i32 = arith.constant 0 : i32
    %c0_i32_0 = arith.constant 0 : i32
    %c0_i32_1 = arith.constant 0 : i32
    return %arg0, %c0_i32, %c0_i32_0 : i32, i32, i32
  }
}

module attributes {stable_mosaic.version = 11 : i64} {
  func.func @_tconv_in_lrelu_kernel(%arg0: i32, %arg1: memref<4x16x32xbf16, #tpu.memory_space<vmem>>, %arg2: memref<1x32x16xbf16, #tpu.memory_space<vmem>>, %arg3: memref<1x4x16x16xf32, #tpu.memory_space<vmem>>) attributes {dimension_semantics = [#tpu.dimension_semantics<parallel>], iteration_bounds = array<i64: 2>, scalar_prefetch = 0 : i64, scratch_operands = 0 : i64, tpu.core_type = #tpu.core_type<tc>, window_params = [{pipeline_mode = #tpu.pipeline_mode<synchronous>, transform_indices = @transform_0, window_bounds = array<i64: 4, 16, 32>}, {transform_indices = @transform_1, window_bounds = array<i64: 1, 32, 16>}, {transform_indices = @transform_2, window_bounds = array<i64: 1, 4, 16, 16>}]} {
    %c0 = arith.constant 0 : index
    %c0_0 = arith.constant 0 : index
    %c0_1 = arith.constant 0 : index
    %0 = vector.load %arg2[%c0, %c0_0, %c0_1] : memref<1x32x16xbf16, #tpu.memory_space<vmem>>, vector<1x32x16xbf16>
    %1 = vector.shape_cast %0 : vector<1x32x16xbf16> to vector<32x16xbf16>
    %c0_2 = arith.constant 0 : index
    %c0_3 = arith.constant 0 : index
    %c0_4 = arith.constant 0 : index
    %2 = vector.load %arg1[%c0_2, %c0_3, %c0_4] : memref<4x16x32xbf16, #tpu.memory_space<vmem>>, vector<1x16x32xbf16>
    %3 = vector.shape_cast %2 : vector<1x16x32xbf16> to vector<16x32xbf16>
    %cst = arith.constant dense<0.000000e+00> : vector<16x16xf32>
    %4 = tpu.matmul %3, %1, %cst {dimension_numbers = #tpu.dot_dimension_numbers<[1], [0], [0], [1], [0, 0, 1, 1], [], []>} : vector<16x32xbf16>, vector<32x16xbf16>, vector<16x16xf32> -> vector<16x16xf32>
    %c1 = arith.constant 1 : index
    %c0_5 = arith.constant 0 : index
    %c0_6 = arith.constant 0 : index
    %5 = vector.load %arg1[%c1, %c0_5, %c0_6] : memref<4x16x32xbf16, #tpu.memory_space<vmem>>, vector<1x16x32xbf16>
    %6 = vector.shape_cast %5 : vector<1x16x32xbf16> to vector<16x32xbf16>
    %cst_7 = arith.constant dense<0.000000e+00> : vector<16x16xf32>
    %7 = tpu.matmul %6, %1, %cst_7 {dimension_numbers = #tpu.dot_dimension_numbers<[1], [0], [0], [1], [0, 0, 1, 1], [], []>} : vector<16x32xbf16>, vector<32x16xbf16>, vector<16x16xf32> -> vector<16x16xf32>
    %c2 = arith.constant 2 : index
    %c0_8 = arith.constant 0 : index
    %c0_9 = arith.constant 0 : index
    %8 = vector.load %arg1[%c2, %c0_8, %c0_9] : memref<4x16x32xbf16, #tpu.memory_space<vmem>>, vector<1x16x32xbf16>
    %9 = vector.shape_cast %8 : vector<1x16x32xbf16> to vector<16x32xbf16>
    %cst_10 = arith.constant dense<0.000000e+00> : vector<16x16xf32>
    %10 = tpu.matmul %9, %1, %cst_10 {dimension_numbers = #tpu.dot_dimension_numbers<[1], [0], [0], [1], [0, 0, 1, 1], [], []>} : vector<16x32xbf16>, vector<32x16xbf16>, vector<16x16xf32> -> vector<16x16xf32>
    %c3 = arith.constant 3 : index
    %c0_11 = arith.constant 0 : index
    %c0_12 = arith.constant 0 : index
    %11 = vector.load %arg1[%c3, %c0_11, %c0_12] : memref<4x16x32xbf16, #tpu.memory_space<vmem>>, vector<1x16x32xbf16>
    %12 = vector.shape_cast %11 : vector<1x16x32xbf16> to vector<16x32xbf16>
    %cst_13 = arith.constant dense<0.000000e+00> : vector<16x16xf32>
    %13 = tpu.matmul %12, %1, %cst_13 {dimension_numbers = #tpu.dot_dimension_numbers<[1], [0], [0], [1], [0, 0, 1, 1], [], []>} : vector<16x32xbf16>, vector<32x16xbf16>, vector<16x16xf32> -> vector<16x16xf32>
    %cst_14 = arith.constant dense<0.000000e+00> : vector<16xf32>
    %14 = vector.multi_reduction <add>, %4, %cst_14 [1] : vector<16x16xf32> to vector<16xf32>
    %15 = vector.shape_cast %14 : vector<16xf32> to vector<16x1xf32>
    %cst_15 = arith.constant 0.000000e+00 : f32
    %16 = vector.broadcast %cst_15 : f32 to vector<16x1xf32>
    %17 = arith.addf %16, %15 : vector<16x1xf32>
    %cst_16 = arith.constant dense<0.000000e+00> : vector<16xf32>
    %18 = vector.multi_reduction <add>, %7, %cst_16 [1] : vector<16x16xf32> to vector<16xf32>
    %19 = vector.shape_cast %18 : vector<16xf32> to vector<16x1xf32>
    %20 = arith.addf %17, %19 : vector<16x1xf32>
    %cst_17 = arith.constant dense<0.000000e+00> : vector<16xf32>
    %21 = vector.multi_reduction <add>, %10, %cst_17 [1] : vector<16x16xf32> to vector<16xf32>
    %22 = vector.shape_cast %21 : vector<16xf32> to vector<16x1xf32>
    %23 = arith.addf %20, %22 : vector<16x1xf32>
    %cst_18 = arith.constant dense<0.000000e+00> : vector<16xf32>
    %24 = vector.multi_reduction <add>, %13, %cst_18 [1] : vector<16x16xf32> to vector<16xf32>
    %25 = vector.shape_cast %24 : vector<16xf32> to vector<16x1xf32>
    %26 = arith.addf %23, %25 : vector<16x1xf32>
    %cst_19 = arith.constant 1.562500e-02 : f32
    %27 = vector.broadcast %cst_19 : f32 to vector<16x1xf32>
    %28 = arith.mulf %27, %26 : vector<16x1xf32>
    %29 = vector.broadcast %28 : vector<16x1xf32> to vector<16x16xf32>
    %30 = arith.subf %4, %29 : vector<16x16xf32>
    %31 = arith.mulf %30, %30 : vector<16x16xf32>
    %cst_20 = arith.constant dense<0.000000e+00> : vector<16xf32>
    %32 = vector.multi_reduction <add>, %31, %cst_20 [1] : vector<16x16xf32> to vector<16xf32>
    %33 = vector.shape_cast %32 : vector<16xf32> to vector<16x1xf32>
    %cst_21 = arith.constant 0.000000e+00 : f32
    %34 = vector.broadcast %cst_21 : f32 to vector<16x1xf32>
    %35 = arith.addf %34, %33 : vector<16x1xf32>
    %36 = vector.broadcast %28 : vector<16x1xf32> to vector<16x16xf32>
    %37 = arith.subf %7, %36 : vector<16x16xf32>
    %38 = arith.mulf %37, %37 : vector<16x16xf32>
    %cst_22 = arith.constant dense<0.000000e+00> : vector<16xf32>
    %39 = vector.multi_reduction <add>, %38, %cst_22 [1] : vector<16x16xf32> to vector<16xf32>
    %40 = vector.shape_cast %39 : vector<16xf32> to vector<16x1xf32>
    %41 = arith.addf %35, %40 : vector<16x1xf32>
    %42 = vector.broadcast %28 : vector<16x1xf32> to vector<16x16xf32>
    %43 = arith.subf %10, %42 : vector<16x16xf32>
    %44 = arith.mulf %43, %43 : vector<16x16xf32>
    %cst_23 = arith.constant dense<0.000000e+00> : vector<16xf32>
    %45 = vector.multi_reduction <add>, %44, %cst_23 [1] : vector<16x16xf32> to vector<16xf32>
    %46 = vector.shape_cast %45 : vector<16xf32> to vector<16x1xf32>
    %47 = arith.addf %41, %46 : vector<16x1xf32>
    %48 = vector.broadcast %28 : vector<16x1xf32> to vector<16x16xf32>
    %49 = arith.subf %13, %48 : vector<16x16xf32>
    %50 = arith.mulf %49, %49 : vector<16x16xf32>
    %cst_24 = arith.constant dense<0.000000e+00> : vector<16xf32>
    %51 = vector.multi_reduction <add>, %50, %cst_24 [1] : vector<16x16xf32> to vector<16xf32>
    %52 = vector.shape_cast %51 : vector<16xf32> to vector<16x1xf32>
    %53 = arith.addf %47, %52 : vector<16x1xf32>
    %cst_25 = arith.constant 1.562500e-02 : f32
    %54 = vector.broadcast %cst_25 : f32 to vector<16x1xf32>
    %55 = arith.mulf %54, %53 : vector<16x1xf32>
    %cst_26 = arith.constant 9.99999974E-6 : f32
    %56 = vector.broadcast %cst_26 : f32 to vector<16x1xf32>
    %57 = arith.addf %55, %56 : vector<16x1xf32>
    %58 = math.rsqrt %57 : vector<16x1xf32>
    %59 = vector.broadcast %28 : vector<16x1xf32> to vector<16x16xf32>
    %60 = arith.subf %4, %59 : vector<16x16xf32>
    %61 = vector.broadcast %58 : vector<16x1xf32> to vector<16x16xf32>
    %62 = arith.mulf %60, %61 : vector<16x16xf32>
    %cst_27 = arith.constant 2.000000e-01 : f32
    %63 = vector.broadcast %cst_27 : f32 to vector<16x16xf32>
    %64 = arith.mulf %63, %62 : vector<16x16xf32>
    %65 = arith.maximumf %62, %64 : vector<16x16xf32>
    %c0_28 = arith.constant 0 : index
    %c0_29 = arith.constant 0 : index
    %c0_30 = arith.constant 0 : index
    %c0_31 = arith.constant 0 : index
    %66 = vector.load %arg3[%c0_28, %c0_29, %c0_30, %c0_31] : memref<1x4x16x16xf32, #tpu.memory_space<vmem>>, vector<1x1x16x16xf32>
    %67 = vector.shape_cast %66 : vector<1x1x16x16xf32> to vector<16x16xf32>
    %68 = vector.shape_cast %65 : vector<16x16xf32> to vector<1x1x16x16xf32>
    tpu.vector_store %arg3[%c0_28, %c0_29, %c0_30, %c0_31], %68 {strides = array<i32>} : memref<1x4x16x16xf32, #tpu.memory_space<vmem>>, vector<1x1x16x16xf32>,
    %69 = vector.broadcast %28 : vector<16x1xf32> to vector<16x16xf32>
    %70 = arith.subf %7, %69 : vector<16x16xf32>
    %71 = vector.broadcast %58 : vector<16x1xf32> to vector<16x16xf32>
    %72 = arith.mulf %70, %71 : vector<16x16xf32>
    %cst_32 = arith.constant 2.000000e-01 : f32
    %73 = vector.broadcast %cst_32 : f32 to vector<16x16xf32>
    %74 = arith.mulf %73, %72 : vector<16x16xf32>
    %75 = arith.maximumf %72, %74 : vector<16x16xf32>
    %c0_33 = arith.constant 0 : index
    %c1_34 = arith.constant 1 : index
    %c0_35 = arith.constant 0 : index
    %c0_36 = arith.constant 0 : index
    %76 = vector.load %arg3[%c0_33, %c1_34, %c0_35, %c0_36] : memref<1x4x16x16xf32, #tpu.memory_space<vmem>>, vector<1x1x16x16xf32>
    %77 = vector.shape_cast %76 : vector<1x1x16x16xf32> to vector<16x16xf32>
    %78 = vector.shape_cast %75 : vector<16x16xf32> to vector<1x1x16x16xf32>
    tpu.vector_store %arg3[%c0_33, %c1_34, %c0_35, %c0_36], %78 {strides = array<i32>} : memref<1x4x16x16xf32, #tpu.memory_space<vmem>>, vector<1x1x16x16xf32>,
    %79 = vector.broadcast %28 : vector<16x1xf32> to vector<16x16xf32>
    %80 = arith.subf %10, %79 : vector<16x16xf32>
    %81 = vector.broadcast %58 : vector<16x1xf32> to vector<16x16xf32>
    %82 = arith.mulf %80, %81 : vector<16x16xf32>
    %cst_37 = arith.constant 2.000000e-01 : f32
    %83 = vector.broadcast %cst_37 : f32 to vector<16x16xf32>
    %84 = arith.mulf %83, %82 : vector<16x16xf32>
    %85 = arith.maximumf %82, %84 : vector<16x16xf32>
    %c0_38 = arith.constant 0 : index
    %c2_39 = arith.constant 2 : index
    %c0_40 = arith.constant 0 : index
    %c0_41 = arith.constant 0 : index
    %86 = vector.load %arg3[%c0_38, %c2_39, %c0_40, %c0_41] : memref<1x4x16x16xf32, #tpu.memory_space<vmem>>, vector<1x1x16x16xf32>
    %87 = vector.shape_cast %86 : vector<1x1x16x16xf32> to vector<16x16xf32>
    %88 = vector.shape_cast %85 : vector<16x16xf32> to vector<1x1x16x16xf32>
    tpu.vector_store %arg3[%c0_38, %c2_39, %c0_40, %c0_41], %88 {strides = array<i32>} : memref<1x4x16x16xf32, #tpu.memory_space<vmem>>, vector<1x1x16x16xf32>,
    %89 = vector.broadcast %28 : vector<16x1xf32> to vector<16x16xf32>
    %90 = arith.subf %13, %89 : vector<16x16xf32>
    %91 = vector.broadcast %58 : vector<16x1xf32> to vector<16x16xf32>
    %92 = arith.mulf %90, %91 : vector<16x16xf32>
    %cst_42 = arith.constant 2.000000e-01 : f32
    %93 = vector.broadcast %cst_42 : f32 to vector<16x16xf32>
    %94 = arith.mulf %93, %92 : vector<16x16xf32>
    %95 = arith.maximumf %92, %94 : vector<16x16xf32>
    %c0_43 = arith.constant 0 : index
    %c3_44 = arith.constant 3 : index
    %c0_45 = arith.constant 0 : index
    %c0_46 = arith.constant 0 : index
    %96 = vector.load %arg3[%c0_43, %c3_44, %c0_45, %c0_46] : memref<1x4x16x16xf32, #tpu.memory_space<vmem>>, vector<1x1x16x16xf32>
    %97 = vector.shape_cast %96 : vector<1x1x16x16xf32> to vector<16x16xf32>
    %98 = vector.shape_cast %95 : vector<16x16xf32> to vector<1x1x16x16xf32>
    tpu.vector_store %arg3[%c0_43, %c3_44, %c0_45, %c0_46], %98 {strides = array<i32>} : memref<1x4x16x16xf32, #tpu.memory_space<vmem>>, vector<1x1x16x16xf32>,
    return
  }
  func.func @transform_0(%arg0: i32) -> (i32, i32, i32) {
    %c0_i32 = arith.constant 0 : i32
    %c0_i32_0 = arith.constant 0 : i32
    %c0_i32_1 = arith.constant 0 : i32
    %c0_i32_2 = arith.constant 0 : i32
    return %c0_i32, %c0_i32_0, %c0_i32_1 : i32, i32, i32
  }
  func.func @transform_1(%arg0: i32) -> (i32, i32, i32) {
    %c0_i32 = arith.constant 0 : i32
    %c0_i32_0 = arith.constant 0 : i32
    %c0_i32_1 = arith.constant 0 : i32
    return %arg0, %c0_i32, %c0_i32_0 : i32, i32, i32
  }
  func.func @transform_2(%arg0: i32) -> (i32, i32, i32, i32) {
    %c0_i32 = arith.constant 0 : i32
    %c0_i32_0 = arith.constant 0 : i32
    %c0_i32_1 = arith.constant 0 : i32
    %c0_i32_2 = arith.constant 0 : i32
    return %arg0, %c0_i32, %c0_i32_0, %c0_i32_1 : i32, i32, i32, i32
  }
}

module attributes {stable_mosaic.version = 11 : i64} {
  func.func @_tconv_in_lrelu_kernel(%arg0: i32, %arg1: memref<4x8x16xbf16, #tpu.memory_space<vmem>>, %arg2: memref<1x16x64xbf16, #tpu.memory_space<vmem>>, %arg3: memref<1x4x8x64xf32, #tpu.memory_space<vmem>>) attributes {dimension_semantics = [#tpu.dimension_semantics<parallel>], iteration_bounds = array<i64: 2>, scalar_prefetch = 0 : i64, scratch_operands = 0 : i64, tpu.core_type = #tpu.core_type<tc>, window_params = [{pipeline_mode = #tpu.pipeline_mode<synchronous>, transform_indices = @transform_0, window_bounds = array<i64: 4, 8, 16>}, {transform_indices = @transform_1, window_bounds = array<i64: 1, 16, 64>}, {transform_indices = @transform_2, window_bounds = array<i64: 1, 4, 8, 64>}]} {
    %c0 = arith.constant 0 : index
    %c0_0 = arith.constant 0 : index
    %c0_1 = arith.constant 0 : index
    %0 = vector.load %arg2[%c0, %c0_0, %c0_1] : memref<1x16x64xbf16, #tpu.memory_space<vmem>>, vector<1x16x64xbf16>
    %1 = vector.shape_cast %0 : vector<1x16x64xbf16> to vector<16x64xbf16>
    %c0_2 = arith.constant 0 : index
    %c0_3 = arith.constant 0 : index
    %c0_4 = arith.constant 0 : index
    %2 = vector.load %arg1[%c0_2, %c0_3, %c0_4] : memref<4x8x16xbf16, #tpu.memory_space<vmem>>, vector<1x8x16xbf16>
    %3 = vector.shape_cast %2 : vector<1x8x16xbf16> to vector<8x16xbf16>
    %cst = arith.constant dense<0.000000e+00> : vector<8x64xf32>
    %4 = tpu.matmul %3, %1, %cst {dimension_numbers = #tpu.dot_dimension_numbers<[1], [0], [0], [1], [0, 0, 1, 1], [], []>} : vector<8x16xbf16>, vector<16x64xbf16>, vector<8x64xf32> -> vector<8x64xf32>
    %c1 = arith.constant 1 : index
    %c0_5 = arith.constant 0 : index
    %c0_6 = arith.constant 0 : index
    %5 = vector.load %arg1[%c1, %c0_5, %c0_6] : memref<4x8x16xbf16, #tpu.memory_space<vmem>>, vector<1x8x16xbf16>
    %6 = vector.shape_cast %5 : vector<1x8x16xbf16> to vector<8x16xbf16>
    %cst_7 = arith.constant dense<0.000000e+00> : vector<8x64xf32>
    %7 = tpu.matmul %6, %1, %cst_7 {dimension_numbers = #tpu.dot_dimension_numbers<[1], [0], [0], [1], [0, 0, 1, 1], [], []>} : vector<8x16xbf16>, vector<16x64xbf16>, vector<8x64xf32> -> vector<8x64xf32>
    %c2 = arith.constant 2 : index
    %c0_8 = arith.constant 0 : index
    %c0_9 = arith.constant 0 : index
    %8 = vector.load %arg1[%c2, %c0_8, %c0_9] : memref<4x8x16xbf16, #tpu.memory_space<vmem>>, vector<1x8x16xbf16>
    %9 = vector.shape_cast %8 : vector<1x8x16xbf16> to vector<8x16xbf16>
    %cst_10 = arith.constant dense<0.000000e+00> : vector<8x64xf32>
    %10 = tpu.matmul %9, %1, %cst_10 {dimension_numbers = #tpu.dot_dimension_numbers<[1], [0], [0], [1], [0, 0, 1, 1], [], []>} : vector<8x16xbf16>, vector<16x64xbf16>, vector<8x64xf32> -> vector<8x64xf32>
    %c3 = arith.constant 3 : index
    %c0_11 = arith.constant 0 : index
    %c0_12 = arith.constant 0 : index
    %11 = vector.load %arg1[%c3, %c0_11, %c0_12] : memref<4x8x16xbf16, #tpu.memory_space<vmem>>, vector<1x8x16xbf16>
    %12 = vector.shape_cast %11 : vector<1x8x16xbf16> to vector<8x16xbf16>
    %cst_13 = arith.constant dense<0.000000e+00> : vector<8x64xf32>
    %13 = tpu.matmul %12, %1, %cst_13 {dimension_numbers = #tpu.dot_dimension_numbers<[1], [0], [0], [1], [0, 0, 1, 1], [], []>} : vector<8x16xbf16>, vector<16x64xbf16>, vector<8x64xf32> -> vector<8x64xf32>
    %cst_14 = arith.constant dense<0.000000e+00> : vector<8xf32>
    %14 = vector.multi_reduction <add>, %4, %cst_14 [1] : vector<8x64xf32> to vector<8xf32>
    %15 = vector.shape_cast %14 : vector<8xf32> to vector<8x1xf32>
    %cst_15 = arith.constant 0.000000e+00 : f32
    %16 = vector.broadcast %cst_15 : f32 to vector<8x1xf32>
    %17 = arith.addf %16, %15 : vector<8x1xf32>
    %cst_16 = arith.constant dense<0.000000e+00> : vector<8xf32>
    %18 = vector.multi_reduction <add>, %7, %cst_16 [1] : vector<8x64xf32> to vector<8xf32>
    %19 = vector.shape_cast %18 : vector<8xf32> to vector<8x1xf32>
    %20 = arith.addf %17, %19 : vector<8x1xf32>
    %cst_17 = arith.constant dense<0.000000e+00> : vector<8xf32>
    %21 = vector.multi_reduction <add>, %10, %cst_17 [1] : vector<8x64xf32> to vector<8xf32>
    %22 = vector.shape_cast %21 : vector<8xf32> to vector<8x1xf32>
    %23 = arith.addf %20, %22 : vector<8x1xf32>
    %cst_18 = arith.constant dense<0.000000e+00> : vector<8xf32>
    %24 = vector.multi_reduction <add>, %13, %cst_18 [1] : vector<8x64xf32> to vector<8xf32>
    %25 = vector.shape_cast %24 : vector<8xf32> to vector<8x1xf32>
    %26 = arith.addf %23, %25 : vector<8x1xf32>
    %cst_19 = arith.constant 3.906250e-03 : f32
    %27 = vector.broadcast %cst_19 : f32 to vector<8x1xf32>
    %28 = arith.mulf %27, %26 : vector<8x1xf32>
    %29 = vector.broadcast %28 : vector<8x1xf32> to vector<8x64xf32>
    %30 = arith.subf %4, %29 : vector<8x64xf32>
    %31 = arith.mulf %30, %30 : vector<8x64xf32>
    %cst_20 = arith.constant dense<0.000000e+00> : vector<8xf32>
    %32 = vector.multi_reduction <add>, %31, %cst_20 [1] : vector<8x64xf32> to vector<8xf32>
    %33 = vector.shape_cast %32 : vector<8xf32> to vector<8x1xf32>
    %cst_21 = arith.constant 0.000000e+00 : f32
    %34 = vector.broadcast %cst_21 : f32 to vector<8x1xf32>
    %35 = arith.addf %34, %33 : vector<8x1xf32>
    %36 = vector.broadcast %28 : vector<8x1xf32> to vector<8x64xf32>
    %37 = arith.subf %7, %36 : vector<8x64xf32>
    %38 = arith.mulf %37, %37 : vector<8x64xf32>
    %cst_22 = arith.constant dense<0.000000e+00> : vector<8xf32>
    %39 = vector.multi_reduction <add>, %38, %cst_22 [1] : vector<8x64xf32> to vector<8xf32>
    %40 = vector.shape_cast %39 : vector<8xf32> to vector<8x1xf32>
    %41 = arith.addf %35, %40 : vector<8x1xf32>
    %42 = vector.broadcast %28 : vector<8x1xf32> to vector<8x64xf32>
    %43 = arith.subf %10, %42 : vector<8x64xf32>
    %44 = arith.mulf %43, %43 : vector<8x64xf32>
    %cst_23 = arith.constant dense<0.000000e+00> : vector<8xf32>
    %45 = vector.multi_reduction <add>, %44, %cst_23 [1] : vector<8x64xf32> to vector<8xf32>
    %46 = vector.shape_cast %45 : vector<8xf32> to vector<8x1xf32>
    %47 = arith.addf %41, %46 : vector<8x1xf32>
    %48 = vector.broadcast %28 : vector<8x1xf32> to vector<8x64xf32>
    %49 = arith.subf %13, %48 : vector<8x64xf32>
    %50 = arith.mulf %49, %49 : vector<8x64xf32>
    %cst_24 = arith.constant dense<0.000000e+00> : vector<8xf32>
    %51 = vector.multi_reduction <add>, %50, %cst_24 [1] : vector<8x64xf32> to vector<8xf32>
    %52 = vector.shape_cast %51 : vector<8xf32> to vector<8x1xf32>
    %53 = arith.addf %47, %52 : vector<8x1xf32>
    %cst_25 = arith.constant 3.906250e-03 : f32
    %54 = vector.broadcast %cst_25 : f32 to vector<8x1xf32>
    %55 = arith.mulf %54, %53 : vector<8x1xf32>
    %cst_26 = arith.constant 9.99999974E-6 : f32
    %56 = vector.broadcast %cst_26 : f32 to vector<8x1xf32>
    %57 = arith.addf %55, %56 : vector<8x1xf32>
    %58 = math.rsqrt %57 : vector<8x1xf32>
    %59 = vector.broadcast %28 : vector<8x1xf32> to vector<8x64xf32>
    %60 = arith.subf %4, %59 : vector<8x64xf32>
    %61 = vector.broadcast %58 : vector<8x1xf32> to vector<8x64xf32>
    %62 = arith.mulf %60, %61 : vector<8x64xf32>
    %cst_27 = arith.constant 2.000000e-01 : f32
    %63 = vector.broadcast %cst_27 : f32 to vector<8x64xf32>
    %64 = arith.mulf %63, %62 : vector<8x64xf32>
    %65 = arith.maximumf %62, %64 : vector<8x64xf32>
    %c0_28 = arith.constant 0 : index
    %c0_29 = arith.constant 0 : index
    %c0_30 = arith.constant 0 : index
    %c0_31 = arith.constant 0 : index
    %66 = vector.load %arg3[%c0_28, %c0_29, %c0_30, %c0_31] : memref<1x4x8x64xf32, #tpu.memory_space<vmem>>, vector<1x1x8x64xf32>
    %67 = vector.shape_cast %66 : vector<1x1x8x64xf32> to vector<8x64xf32>
    %68 = vector.shape_cast %65 : vector<8x64xf32> to vector<1x1x8x64xf32>
    tpu.vector_store %arg3[%c0_28, %c0_29, %c0_30, %c0_31], %68 {strides = array<i32>} : memref<1x4x8x64xf32, #tpu.memory_space<vmem>>, vector<1x1x8x64xf32>,
    %69 = vector.broadcast %28 : vector<8x1xf32> to vector<8x64xf32>
    %70 = arith.subf %7, %69 : vector<8x64xf32>
    %71 = vector.broadcast %58 : vector<8x1xf32> to vector<8x64xf32>
    %72 = arith.mulf %70, %71 : vector<8x64xf32>
    %cst_32 = arith.constant 2.000000e-01 : f32
    %73 = vector.broadcast %cst_32 : f32 to vector<8x64xf32>
    %74 = arith.mulf %73, %72 : vector<8x64xf32>
    %75 = arith.maximumf %72, %74 : vector<8x64xf32>
    %c0_33 = arith.constant 0 : index
    %c1_34 = arith.constant 1 : index
    %c0_35 = arith.constant 0 : index
    %c0_36 = arith.constant 0 : index
    %76 = vector.load %arg3[%c0_33, %c1_34, %c0_35, %c0_36] : memref<1x4x8x64xf32, #tpu.memory_space<vmem>>, vector<1x1x8x64xf32>
    %77 = vector.shape_cast %76 : vector<1x1x8x64xf32> to vector<8x64xf32>
    %78 = vector.shape_cast %75 : vector<8x64xf32> to vector<1x1x8x64xf32>
    tpu.vector_store %arg3[%c0_33, %c1_34, %c0_35, %c0_36], %78 {strides = array<i32>} : memref<1x4x8x64xf32, #tpu.memory_space<vmem>>, vector<1x1x8x64xf32>,
    %79 = vector.broadcast %28 : vector<8x1xf32> to vector<8x64xf32>
    %80 = arith.subf %10, %79 : vector<8x64xf32>
    %81 = vector.broadcast %58 : vector<8x1xf32> to vector<8x64xf32>
    %82 = arith.mulf %80, %81 : vector<8x64xf32>
    %cst_37 = arith.constant 2.000000e-01 : f32
    %83 = vector.broadcast %cst_37 : f32 to vector<8x64xf32>
    %84 = arith.mulf %83, %82 : vector<8x64xf32>
    %85 = arith.maximumf %82, %84 : vector<8x64xf32>
    %c0_38 = arith.constant 0 : index
    %c2_39 = arith.constant 2 : index
    %c0_40 = arith.constant 0 : index
    %c0_41 = arith.constant 0 : index
    %86 = vector.load %arg3[%c0_38, %c2_39, %c0_40, %c0_41] : memref<1x4x8x64xf32, #tpu.memory_space<vmem>>, vector<1x1x8x64xf32>
    %87 = vector.shape_cast %86 : vector<1x1x8x64xf32> to vector<8x64xf32>
    %88 = vector.shape_cast %85 : vector<8x64xf32> to vector<1x1x8x64xf32>
    tpu.vector_store %arg3[%c0_38, %c2_39, %c0_40, %c0_41], %88 {strides = array<i32>} : memref<1x4x8x64xf32, #tpu.memory_space<vmem>>, vector<1x1x8x64xf32>,
    %89 = vector.broadcast %28 : vector<8x1xf32> to vector<8x64xf32>
    %90 = arith.subf %13, %89 : vector<8x64xf32>
    %91 = vector.broadcast %58 : vector<8x1xf32> to vector<8x64xf32>
    %92 = arith.mulf %90, %91 : vector<8x64xf32>
    %cst_42 = arith.constant 2.000000e-01 : f32
    %93 = vector.broadcast %cst_42 : f32 to vector<8x64xf32>
    %94 = arith.mulf %93, %92 : vector<8x64xf32>
    %95 = arith.maximumf %92, %94 : vector<8x64xf32>
    %c0_43 = arith.constant 0 : index
    %c3_44 = arith.constant 3 : index
    %c0_45 = arith.constant 0 : index
    %c0_46 = arith.constant 0 : index
    %96 = vector.load %arg3[%c0_43, %c3_44, %c0_45, %c0_46] : memref<1x4x8x64xf32, #tpu.memory_space<vmem>>, vector<1x1x8x64xf32>
    %97 = vector.shape_cast %96 : vector<1x1x8x64xf32> to vector<8x64xf32>
    %98 = vector.shape_cast %95 : vector<8x64xf32> to vector<1x1x8x64xf32>
    tpu.vector_store %arg3[%c0_43, %c3_44, %c0_45, %c0_46], %98 {strides = array<i32>} : memref<1x4x8x64xf32, #tpu.memory_space<vmem>>, vector<1x1x8x64xf32>,
    return
  }
  func.func @transform_0(%arg0: i32) -> (i32, i32, i32) {
    %c0_i32 = arith.constant 0 : i32
    %c0_i32_0 = arith.constant 0 : i32
    %c0_i32_1 = arith.constant 0 : i32
    %c0_i32_2 = arith.constant 0 : i32
    return %c0_i32, %c0_i32_0, %c0_i32_1 : i32, i32, i32
  }
  func.func @transform_1(%arg0: i32) -> (i32, i32, i32) {
    %c0_i32 = arith.constant 0 : i32
    %c0_i32_0 = arith.constant 0 : i32
    %c0_i32_1 = arith.constant 0 : i32
    return %arg0, %c0_i32, %c0_i32_0 : i32, i32, i32
  }
  func.func @transform_2(%arg0: i32) -> (i32, i32, i32, i32) {
    %c0_i32 = arith.constant 0 : i32
    %c0_i32_0 = arith.constant 0 : i32
    %c0_i32_1 = arith.constant 0 : i32
    %c0_i32_2 = arith.constant 0 : i32
    return %arg0, %c0_i32, %c0_i32_0, %c0_i32_1 : i32, i32, i32, i32
  }
}

module attributes {stable_mosaic.version = 11 : i64} {
  func.func @_conv_in_lrelu_kernel(%arg0: i32, %arg1: memref<16x288xbf16, #tpu.memory_space<vmem>>, %arg2: memref<1x288x64xbf16, #tpu.memory_space<vmem>>, %arg3: memref<1x16x64xf32, #tpu.memory_space<vmem>>) attributes {dimension_semantics = [#tpu.dimension_semantics<parallel>], iteration_bounds = array<i64: 2>, scalar_prefetch = 0 : i64, scratch_operands = 0 : i64, tpu.core_type = #tpu.core_type<tc>, window_params = [{pipeline_mode = #tpu.pipeline_mode<synchronous>, transform_indices = @transform_0, window_bounds = array<i64: 16, 288>}, {transform_indices = @transform_1, window_bounds = array<i64: 1, 288, 64>}, {transform_indices = @transform_2, window_bounds = array<i64: 1, 16, 64>}]} {
    %c0 = arith.constant 0 : index
    %c0_0 = arith.constant 0 : index
    %0 = vector.load %arg1[%c0, %c0_0] : memref<16x288xbf16, #tpu.memory_space<vmem>>, vector<16x288xbf16>
    %c0_1 = arith.constant 0 : index
    %c0_2 = arith.constant 0 : index
    %c0_3 = arith.constant 0 : index
    %1 = vector.load %arg2[%c0_1, %c0_2, %c0_3] : memref<1x288x64xbf16, #tpu.memory_space<vmem>>, vector<1x288x64xbf16>
    %2 = vector.shape_cast %1 : vector<1x288x64xbf16> to vector<288x64xbf16>
    %cst = arith.constant dense<0.000000e+00> : vector<16x64xf32>
    %3 = tpu.matmul %0, %2, %cst {dimension_numbers = #tpu.dot_dimension_numbers<[1], [0], [0], [1], [0, 0, 1, 1], [], []>} : vector<16x288xbf16>, vector<288x64xbf16>, vector<16x64xf32> -> vector<16x64xf32>
    %cst_4 = arith.constant dense<0.000000e+00> : vector<16xf32>
    %4 = vector.multi_reduction <add>, %3, %cst_4 [1] : vector<16x64xf32> to vector<16xf32>
    %5 = vector.shape_cast %4 : vector<16xf32> to vector<16x1xf32>
    %cst_5 = arith.constant 1.562500e-02 : f32
    %6 = vector.broadcast %cst_5 : f32 to vector<16x1xf32>
    %7 = arith.mulf %5, %6 : vector<16x1xf32>
    %8 = vector.broadcast %7 : vector<16x1xf32> to vector<16x64xf32>
    %9 = arith.subf %3, %8 : vector<16x64xf32>
    %10 = arith.mulf %9, %9 : vector<16x64xf32>
    %cst_6 = arith.constant dense<0.000000e+00> : vector<16xf32>
    %11 = vector.multi_reduction <add>, %10, %cst_6 [1] : vector<16x64xf32> to vector<16xf32>
    %12 = vector.shape_cast %11 : vector<16xf32> to vector<16x1xf32>
    %cst_7 = arith.constant 1.562500e-02 : f32
    %13 = vector.broadcast %cst_7 : f32 to vector<16x1xf32>
    %14 = arith.mulf %12, %13 : vector<16x1xf32>
    %cst_8 = arith.constant 9.99999974E-6 : f32
    %15 = vector.broadcast %cst_8 : f32 to vector<16x1xf32>
    %16 = arith.addf %14, %15 : vector<16x1xf32>
    %17 = math.rsqrt %16 : vector<16x1xf32>
    %18 = vector.broadcast %17 : vector<16x1xf32> to vector<16x64xf32>
    %19 = arith.mulf %9, %18 : vector<16x64xf32>
    %cst_9 = arith.constant 2.000000e-01 : f32
    %20 = vector.broadcast %cst_9 : f32 to vector<16x64xf32>
    %21 = arith.mulf %20, %19 : vector<16x64xf32>
    %22 = arith.maximumf %19, %21 : vector<16x64xf32>
    %c0_10 = arith.constant 0 : index
    %c0_11 = arith.constant 0 : index
    %c0_12 = arith.constant 0 : index
    %23 = vector.load %arg3[%c0_10, %c0_11, %c0_12] : memref<1x16x64xf32, #tpu.memory_space<vmem>>, vector<1x16x64xf32>
    %24 = vector.shape_cast %23 : vector<1x16x64xf32> to vector<16x64xf32>
    %25 = vector.shape_cast %22 : vector<16x64xf32> to vector<1x16x64xf32>
    tpu.vector_store %arg3[%c0_10, %c0_11, %c0_12], %25 {strides = array<i32>} : memref<1x16x64xf32, #tpu.memory_space<vmem>>, vector<1x16x64xf32>,
    return
  }
  func.func @transform_0(%arg0: i32) -> (i32, i32) {
    %c0_i32 = arith.constant 0 : i32
    %c0_i32_0 = arith.constant 0 : i32
    %c0_i32_1 = arith.constant 0 : i32
    return %c0_i32, %c0_i32_0 : i32, i32
  }
  func.func @transform_1(%arg0: i32) -> (i32, i32, i32) {
    %c0_i32 = arith.constant 0 : i32
    %c0_i32_0 = arith.constant 0 : i32
    %c0_i32_1 = arith.constant 0 : i32
    return %arg0, %c0_i32, %c0_i32_0 : i32, i32, i32
  }
  func.func @transform_2(%arg0: i32) -> (i32, i32, i32) {
    %c0_i32 = arith.constant 0 : i32
    %c0_i32_0 = arith.constant 0 : i32
    %c0_i32_1 = arith.constant 0 : i32
    return %arg0, %c0_i32, %c0_i32_0 : i32, i32, i32
  }
}

module attributes {stable_mosaic.version = 11 : i64} {
  func.func @_conv_in_lrelu_kernel(%arg0: i32, %arg1: memref<8x144xbf16, #tpu.memory_space<vmem>>, %arg2: memref<1x144x256xbf16, #tpu.memory_space<vmem>>, %arg3: memref<1x8x256xf32, #tpu.memory_space<vmem>>) attributes {dimension_semantics = [#tpu.dimension_semantics<parallel>], iteration_bounds = array<i64: 2>, scalar_prefetch = 0 : i64, scratch_operands = 0 : i64, tpu.core_type = #tpu.core_type<tc>, window_params = [{pipeline_mode = #tpu.pipeline_mode<synchronous>, transform_indices = @transform_0, window_bounds = array<i64: 8, 144>}, {transform_indices = @transform_1, window_bounds = array<i64: 1, 144, 256>}, {transform_indices = @transform_2, window_bounds = array<i64: 1, 8, 256>}]} {
    %c0 = arith.constant 0 : index
    %c0_0 = arith.constant 0 : index
    %0 = vector.load %arg1[%c0, %c0_0] : memref<8x144xbf16, #tpu.memory_space<vmem>>, vector<8x144xbf16>
    %c0_1 = arith.constant 0 : index
    %c0_2 = arith.constant 0 : index
    %c0_3 = arith.constant 0 : index
    %1 = vector.load %arg2[%c0_1, %c0_2, %c0_3] : memref<1x144x256xbf16, #tpu.memory_space<vmem>>, vector<1x144x256xbf16>
    %2 = vector.shape_cast %1 : vector<1x144x256xbf16> to vector<144x256xbf16>
    %cst = arith.constant dense<0.000000e+00> : vector<8x256xf32>
    %3 = tpu.matmul %0, %2, %cst {dimension_numbers = #tpu.dot_dimension_numbers<[1], [0], [0], [1], [0, 0, 1, 1], [], []>} : vector<8x144xbf16>, vector<144x256xbf16>, vector<8x256xf32> -> vector<8x256xf32>
    %cst_4 = arith.constant dense<0.000000e+00> : vector<8xf32>
    %4 = vector.multi_reduction <add>, %3, %cst_4 [1] : vector<8x256xf32> to vector<8xf32>
    %5 = vector.shape_cast %4 : vector<8xf32> to vector<8x1xf32>
    %cst_5 = arith.constant 3.906250e-03 : f32
    %6 = vector.broadcast %cst_5 : f32 to vector<8x1xf32>
    %7 = arith.mulf %5, %6 : vector<8x1xf32>
    %8 = vector.broadcast %7 : vector<8x1xf32> to vector<8x256xf32>
    %9 = arith.subf %3, %8 : vector<8x256xf32>
    %10 = arith.mulf %9, %9 : vector<8x256xf32>
    %cst_6 = arith.constant dense<0.000000e+00> : vector<8xf32>
    %11 = vector.multi_reduction <add>, %10, %cst_6 [1] : vector<8x256xf32> to vector<8xf32>
    %12 = vector.shape_cast %11 : vector<8xf32> to vector<8x1xf32>
    %cst_7 = arith.constant 3.906250e-03 : f32
    %13 = vector.broadcast %cst_7 : f32 to vector<8x1xf32>
    %14 = arith.mulf %12, %13 : vector<8x1xf32>
    %cst_8 = arith.constant 9.99999974E-6 : f32
    %15 = vector.broadcast %cst_8 : f32 to vector<8x1xf32>
    %16 = arith.addf %14, %15 : vector<8x1xf32>
    %17 = math.rsqrt %16 : vector<8x1xf32>
    %18 = vector.broadcast %17 : vector<8x1xf32> to vector<8x256xf32>
    %19 = arith.mulf %9, %18 : vector<8x256xf32>
    %cst_9 = arith.constant 2.000000e-01 : f32
    %20 = vector.broadcast %cst_9 : f32 to vector<8x256xf32>
    %21 = arith.mulf %20, %19 : vector<8x256xf32>
    %22 = arith.maximumf %19, %21 : vector<8x256xf32>
    %c0_10 = arith.constant 0 : index
    %c0_11 = arith.constant 0 : index
    %c0_12 = arith.constant 0 : index
    %23 = vector.load %arg3[%c0_10, %c0_11, %c0_12] : memref<1x8x256xf32, #tpu.memory_space<vmem>>, vector<1x8x256xf32>
    %24 = vector.shape_cast %23 : vector<1x8x256xf32> to vector<8x256xf32>
    %25 = vector.shape_cast %22 : vector<8x256xf32> to vector<1x8x256xf32>
    tpu.vector_store %arg3[%c0_10, %c0_11, %c0_12], %25 {strides = array<i32>} : memref<1x8x256xf32, #tpu.memory_space<vmem>>, vector<1x8x256xf32>,
    return
  }
  func.func @transform_0(%arg0: i32) -> (i32, i32) {
    %c0_i32 = arith.constant 0 : i32
    %c0_i32_0 = arith.constant 0 : i32
    %c0_i32_1 = arith.constant 0 : i32
    return %c0_i32, %c0_i32_0 : i32, i32
  }
  func.func @transform_1(%arg0: i32) -> (i32, i32, i32) {
    %c0_i32 = arith.constant 0 : i32
    %c0_i32_0 = arith.constant 0 : i32
    %c0_i32_1 = arith.constant 0 : i32
    return %arg0, %c0_i32, %c0_i32_0 : i32, i32, i32
  }
  func.func @transform_2(%arg0: i32) -> (i32, i32, i32) {
    %c0_i32 = arith.constant 0 : i32
    %c0_i32_0 = arith.constant 0 : i32
    %c0_i32_1 = arith.constant 0 : i32
    return %arg0, %c0_i32, %c0_i32_0 : i32, i32, i32
  }
}

module attributes {stable_mosaic.version = 11 : i64} {
  func.func @_final_kernel(%arg0: i32, %arg1: memref<2x8xbf16, #tpu.memory_space<vmem>>, %arg2: memref<2x1xf32, #tpu.memory_space<vmem>>, %arg3: memref<1x8x256xbf16, #tpu.memory_space<vmem>>, %arg4: memref<1x2x256xf32, #tpu.memory_space<vmem>>, %arg5: memref<1x2x256xf32, #tpu.memory_space<vmem>>) attributes {dimension_semantics = [#tpu.dimension_semantics<parallel>], iteration_bounds = array<i64: 2>, scalar_prefetch = 0 : i64, scratch_operands = 0 : i64, tpu.core_type = #tpu.core_type<tc>, window_params = [{pipeline_mode = #tpu.pipeline_mode<synchronous>, transform_indices = @transform_0, window_bounds = array<i64: 2, 8>}, {pipeline_mode = #tpu.pipeline_mode<synchronous>, transform_indices = @transform_1, window_bounds = array<i64: 2, 1>}, {transform_indices = @transform_2, window_bounds = array<i64: 1, 8, 256>}, {transform_indices = @transform_3, window_bounds = array<i64: 1, 2, 256>}, {transform_indices = @transform_4, window_bounds = array<i64: 1, 2, 256>}]} {
    %c0 = arith.constant 0 : index
    %c0_0 = arith.constant 0 : index
    %0 = vector.load %arg1[%c0, %c0_0] : memref<2x8xbf16, #tpu.memory_space<vmem>>, vector<2x8xbf16>
    %c0_1 = arith.constant 0 : index
    %c0_2 = arith.constant 0 : index
    %c0_3 = arith.constant 0 : index
    %1 = vector.load %arg3[%c0_1, %c0_2, %c0_3] : memref<1x8x256xbf16, #tpu.memory_space<vmem>>, vector<1x8x256xbf16>
    %2 = vector.shape_cast %1 : vector<1x8x256xbf16> to vector<8x256xbf16>
    %cst = arith.constant dense<0.000000e+00> : vector<2x256xf32>
    %3 = tpu.matmul %0, %2, %cst {dimension_numbers = #tpu.dot_dimension_numbers<[1], [0], [0], [1], [0, 0, 1, 1], [], []>} : vector<2x8xbf16>, vector<8x256xbf16>, vector<2x256xf32> -> vector<2x256xf32>
    %c0_4 = arith.constant 0 : index
    %c0_5 = arith.constant 0 : index
    %4 = vector.load %arg2[%c0_4, %c0_5] : memref<2x1xf32, #tpu.memory_space<vmem>>, vector<2x1xf32>
    %5 = vector.broadcast %4 : vector<2x1xf32> to vector<2x256xf32>
    %6 = arith.addf %3, %5 : vector<2x256xf32>
    %c0_6 = arith.constant 0 : index
    %c0_7 = arith.constant 0 : index
    %c0_8 = arith.constant 0 : index
    %7 = vector.load %arg4[%c0_6, %c0_7, %c0_8] : memref<1x2x256xf32, #tpu.memory_space<vmem>>, vector<1x2x256xf32>
    %8 = vector.shape_cast %7 : vector<1x2x256xf32> to vector<2x256xf32>
    %9 = arith.addf %6, %8 : vector<2x256xf32>
    %c0_9 = arith.constant 0 : index
    %c0_10 = arith.constant 0 : index
    %c0_11 = arith.constant 0 : index
    %10 = vector.load %arg5[%c0_9, %c0_10, %c0_11] : memref<1x2x256xf32, #tpu.memory_space<vmem>>, vector<1x2x256xf32>
    %11 = vector.shape_cast %10 : vector<1x2x256xf32> to vector<2x256xf32>
    %12 = vector.shape_cast %9 : vector<2x256xf32> to vector<1x2x256xf32>
    tpu.vector_store %arg5[%c0_9, %c0_10, %c0_11], %12 {strides = array<i32>} : memref<1x2x256xf32, #tpu.memory_space<vmem>>, vector<1x2x256xf32>,
    return
  }
  func.func @transform_0(%arg0: i32) -> (i32, i32) {
    %c0_i32 = arith.constant 0 : i32
    %c0_i32_0 = arith.constant 0 : i32
    %c0_i32_1 = arith.constant 0 : i32
    return %c0_i32, %c0_i32_0 : i32, i32
  }
  func.func @transform_1(%arg0: i32) -> (i32, i32) {
    %c0_i32 = arith.constant 0 : i32
    %c0_i32_0 = arith.constant 0 : i32
    %c0_i32_1 = arith.constant 0 : i32
    return %c0_i32, %c0_i32_0 : i32, i32
  }
  func.func @transform_2(%arg0: i32) -> (i32, i32, i32) {
    %c0_i32 = arith.constant 0 : i32
    %c0_i32_0 = arith.constant 0 : i32
    %c0_i32_1 = arith.constant 0 : i32
    return %arg0, %c0_i32, %c0_i32_0 : i32, i32, i32
  }
  func.func @transform_3(%arg0: i32) -> (i32, i32, i32) {
    %c0_i32 = arith.constant 0 : i32
    %c0_i32_0 = arith.constant 0 : i32
    %c0_i32_1 = arith.constant 0 : i32
    return %arg0, %c0_i32, %c0_i32_0 : i32, i32, i32
  }
  func.func @transform_4(%arg0: i32) -> (i32, i32, i32) {
    %c0_i32 = arith.constant 0 : i32
    %c0_i32_0 = arith.constant 0 : i32
    %c0_i32_1 = arith.constant 0 : i32
    return %arg0, %c0_i32, %c0_i32_0 : i32, i32, i32
  }
}

</mosaic_0001>

<bundles_post_ra>
// kernel: _lambda_.15
= control target key start
LH: loop header
LB: loop body
LE: loop exit
PB: predicated region body
PF: predicated region fallthrough
CT: control target
= control target key end

     0   :  { %s351_s9 = smov 0   ;;  %s375_s0 = inlined_call_operand.vmem [shape: bf16[8,18], index: 0, kind: input, shape index: {}]   ;;  %s376_s1 = inlined_call_operand.vmem [shape: bf16[2,18,256], index: 1, kind: input, shape index: {}]   ;;  %s377_s2 = inlined_call_operand.vmem [shape: f32[2,8,256], index: 2, kind: output, shape index: {}]  }
   0x1 LB: > { %s293_s10 = sadd.s32 4294967295, %s333_s9   ;;  %p297_p0 = scmp.ge.s32.totalorder %s333_s9, 1  ;;  %s333_s9 = sphi %s351_s9, %s12_s9  }
   0x2   : > { %p112_p1 = scmp.lt.s32.totalorder %s333_s9, 3 }
   0x4   : > { %p113_p2 = pnand %p297_p0, %p112_p1 }
   0x5   : > { %p134_p3 = scmp.lt.s32.totalorder (!%p113_p2), %s293_s10, 1  ;;  %v335_v0 = vmov (!%p113_p2), 0   ;;  %vm168_vm0 = vcmask (!%p113_p2), 1040384   ;;  %v145_v7 = vld [vmem:[%s375_s0] sm:$0xf] (!%p113_p2)  ;;  %vm164_vm1 = vcmask (!%p113_p2), 146432  }
   0x6   : > { %116 = sbr.rel (%p113_p2) target bundleno = 555 (0x22b), region = 28  ;;  %207 = vmatprep.mubr.bf16.mxu0 (!%p113_p2), %v335_v0 }
   0xd   : > { %s379_s10 = smov (!%p134_p3, %s293_s10), 1 }
   0xe   : > { %s310_s11 = smul.u32 24, %s379_s10  ;;  %s309_s17 = sshll.u32 %s379_s10, 4 }
   0xf   : > { %s143_s20 = scalar_lea.vmem %s377_s2, %s309_s17 }
  0x10   : > { %s138_s14 = scalar_lea.vmem %s376_s1, %s310_s11 }
  0x11   : > { %v148_v1 = vld [vmem:[%s138_s14 + $0x10] sm:$0x11]  ;;  %v320_v2 = vld [vmem:[%s138_s14 + $0x4] ss:$8 sps:$4 sm:$0xff]   ;;  %v323_v4 = vld [vmem:[%s138_s14] ss:$8 sps:$4 sm:$0xff]  }
  0x12   : > { %v304_v3 = vcombine.high %v148_v1, %v148_v1  ;;  %v303_v5 = vcombine.low %v148_v1, %v148_v1  ;;  %175 = vmatprep.subr.bf16.mxu0 %v320_v2 }
  0x13   : > { %176 = vmatpush1.bf16.msra.mxu0 %v323_v4 }
  0x14   : > { %305 = vmatprep.subr.msk.bf16.mxu0 %vm168_vm0, %v304_v3  ;;  %v170_v6 = vsel %vm168_vm0, %v303_v5, 0 }
  0x17   : > { %178 = vmatpush1.bf16.msra.mxu0 %v170_v6 }
  0x1a   : > { %306 = vmatmul.mubr.msk.bf16.vlgmr.msra.gmra.mrb[0].mxu0 %vm164_vm1, %v145_v7 }
  0xed   : > { %v209_v8 = vpop.f32.mrb[0].mxu0 }
  0xee   : > { %v211_v9 = vpop.f32.mrb[1].mxu0 }
  0xef   : > { %v213_v10 = vpop.f32.mrb[2].mxu0  ;;  %v216_v11 = vadd.f32 %v211_v9, %v209_v8 }
  0xf0   : > { %v214_v12 = vpop.f32.mrb[3].mxu0 }
  0xf1   : > { %217 = vadd.xlane.f32.xlu0 %v216_v11 }
 0x17e   : > { %v218_v13 = vpop.xlane.xlu0 %217 }
 0x17f   : > { %v219_v14 = vmul.f32 0.00390625, %v218_v13 }
 0x181   : > { %v220_v15 = vsub.f32 %v209_v8, %v219_v14  ;;  %v221_v16 = vsub.f32 %v211_v9, %v219_v14 }
 0x183   : > { %v222_v17 = vmul.f32 %v220_v15, %v220_v15  ;;  %v223_v18 = vmul.f32 %v221_v16, %v221_v16 }
 0x185   : > { %v224_v19 = vadd.f32 %v223_v18, %v222_v17 }
 0x187   : > { %225 = vadd.xlane.f32.xlu0 %v224_v19 }
 0x214   : > { %v226_v20 = vpop.xlane.xlu0 %225 }
 0x215   : > { %v227_v21 = vmul.f32 0.00390625, %v226_v20 }
 0x217   : > { %v228_v22 = vadd.f32 1e-05, %v227_v21 }
 0x219   : > { %325 = vrsqrt.f32 %v228_v22 }
 0x223   : > { %v326_v23 = vpop.eup %325 }
 0x224   : > { %v230_v24 = vmul.f32 %v326_v23, %v220_v15  ;;  %v231_v25 = vmul.f32 %v326_v23, %v221_v16 }
 0x226   : > { %v232_v26 = vmul.f32 0.2, %v230_v24  ;;  %v233_v27 = vmul.f32 0.2, %v231_v25 }
 0x228   : > { %v234_v28 = vmax.f32 %v230_v24, %v232_v26  ;;  %v235_v29 = vmax.f32 %v231_v25, %v233_v27 }
 0x22a   : > { %236 = vst [vmem:[%s143_s20] sm:$0xff] %v234_v28  ;;  %237 = vst [vmem:[%s143_s20 + $0x8] sm:$0xff] %v235_v29 }
 0x22b PF: > { %s12_s9 = sadd.s32 1, %s333_s9  }
 0x22c   : > { %p9_p4 = scmp.ge.s32.totalorder %s12_s9, 4  }
 0x22e   :  { %11 = sbr.rel (!%p9_p4) target bundleno = 1 (0x1), region = 58 }

// kernel: _lambda_.17
= control target key start
LH: loop header
LB: loop body
LE: loop exit
PB: predicated region body
PF: predicated region fallthrough
CT: control target
= control target key end

     0   :  { %s413_s9 = smov 0   ;;  %s444_s0 = inlined_call_operand.vmem [shape: bf16[32,8], index: 0, kind: input, shape index: {}]   ;;  %s445_s1 = inlined_call_operand.vmem [shape: bf16[2,64,32], index: 1, kind: input, shape index: {}]   ;;  %s446_s2 = inlined_call_operand.vmem [shape: f32[2,64,8], index: 2, kind: output, shape index: {}]  }
   0x1 LB: > { %s331_s10 = sadd.s32 4294967295, %s396_s9   ;;  %p335_p0 = scmp.ge.s32.totalorder %s396_s9, 1  ;;  %s396_s9 = sphi %s413_s9, %s12_s9  }
   0x2   : > { %p112_p1 = scmp.lt.s32.totalorder %s396_s9, 3 }
   0x4   : > { %p113_p2 = pnand %p335_p0, %p112_p1 }
   0x5   : > { %v384_v0 = vld [vmem:[%s444_s0] sm:$0xff] (!%p113_p2)   ;;  %p134_p3 = scmp.lt.s32.totalorder (!%p113_p2), %s331_s10, 1  ;;  %v385_v1 = vld [vmem:[%s444_s0 + $0x8] sm:$0xff] (!%p113_p2)   ;;  %vm189_vm0 = vcmask (!%p113_p2), 261120   ;;  %vm267_vm1 = vcmask (!%p113_p2), 64512  }
   0x6   : > { %116 = sbr.rel (%p113_p2) target bundleno = 234 (0xea), region = 28  ;;  %360 = vmatprep.subr.bf16.mxu0 (!%p113_p2), %v384_v0  ;;  %372 = vmatprep.subr.bf16.mxu1 (!%p113_p2), %v384_v0 }
   0x7   : > { %361 = vmatpush3.bf16.msra.mxu0 (!%p113_p2), %v384_v0  ;;  %374 = vmatpush3.bf16.msra.mxu1 (!%p113_p2), %v384_v0 }
   0x8   : > { %362 = vmatprep.subr.bf16.mxu0 (!%p113_p2), %v385_v1  ;;  %373 = vmatprep.subr.bf16.mxu1 (!%p113_p2), %v385_v1 }
   0xb   : > { %363 = vmatpush3.bf16.msra.mxu0 (!%p113_p2), %v385_v1  ;;  %375 = vmatpush3.bf16.msra.mxu1 (!%p113_p2), %v385_v1 }
   0xd   : > { %s448_s10 = smov (!%p134_p3, %s331_s10), 1 }
   0xe   : > { %s352_s15 = sshll.u32 %s448_s10, 5  ;;  %s353_s19 = sshll.u32 %s448_s10, 6 }
   0xf   : > { %s138_s18 = scalar_lea.vmem %s445_s1, %s352_s15  ;;  %s143_s22 = scalar_lea.vmem %s446_s2, %s353_s19 }
  0x10   : > { %v386_v2 = vld [vmem:[%s138_s18] sm:$0xff]   ;;  %v387_v3 = vld [vmem:[%s138_s18 + $0x10] sm:$0xff]   ;;  %v388_v4 = vld [vmem:[%s138_s18 + $0x8] sm:$0xff]  }
  0x11   : > { %364 = vmatprep.mubr.msk.bf16.mxu0 %vm189_vm0, %v386_v2  ;;  %368 = vmatprep.mubr.msk.bf16.mxu1 %vm189_vm0, %v387_v3  ;;  %v389_v5 = vld [vmem:[%s138_s18 + $0x18] sm:$0xff]  }
  0x12   : > { %365 = vmatmul.mubr.msk.bf16.vlgmr.msra.gmra.mrb[0].mxu0 %vm189_vm0, %v388_v4  ;;  %369 = vmatmul.mubr.msk.bf16.vlgmr.msra.gmra.mrb[0].mxu1 %vm189_vm0, %v389_v5 }
  0xe5   : > { %v366_v6 = vpop.f32.mrb[0].mxu0  ;;  %v370_v7 = vpop.f32.mrb[0].mxu1 }
  0xe6   : > { %270 = vst.msk [vmem:[%s143_s22 + $0x10] sm:$0xff] %vm267_vm1, %v366_v6  ;;  %v236_v8 = vpop.f32.mrb[1].mxu0  ;;  %274 = vst.msk [vmem:[%s143_s22 + $0x30] sm:$0xff] %vm267_vm1, %v370_v7  ;;  %v252_v9 = vpop.f32.mrb[1].mxu1 }
  0xe7   : > { %268 = vst.msk [vmem:[%s143_s22] sm:$0xff] %vm267_vm1, %v236_v8  ;;  %v367_v10 = vpop.f32.mrb[2].mxu0  ;;  %272 = vst.msk [vmem:[%s143_s22 + $0x20] sm:$0xff] %vm267_vm1, %v252_v9  ;;  %v371_v11 = vpop.f32.mrb[2].mxu1 }
  0xe8   : > { %271 = vst.msk [vmem:[%s143_s22 + $0x18] sm:$0xff] %vm267_vm1, %v367_v10  ;;  %v239_v12 = vpop.f32.mrb[3].mxu0  ;;  %275 = vst.msk [vmem:[%s143_s22 + $0x38] sm:$0xff] %vm267_vm1, %v371_v11  ;;  %v255_v13 = vpop.f32.mrb[3].mxu1 }
  0xe9   : > { %269 = vst.msk [vmem:[%s143_s22 + $0x8] sm:$0xff] %vm267_vm1, %v239_v12  ;;  %273 = vst.msk [vmem:[%s143_s22 + $0x28] sm:$0xff] %vm267_vm1, %v255_v13 }
  0xea PF: > { %s12_s9 = sadd.s32 1, %s396_s9  }
  0xeb   : > { %p9_p4 = scmp.ge.s32.totalorder %s12_s9, 4  }
  0xed   :  { %11 = sbr.rel (!%p9_p4) target bundleno = 1 (0x1), region = 58 }

// kernel: _lambda_.16
= control target key start
LH: loop header
LB: loop body
LE: loop exit
PB: predicated region body
PF: predicated region fallthrough
CT: control target
= control target key end

     0   :  { %s402_s9 = smov 0   ;;  %s426_s0 = inlined_call_operand.vmem [shape: bf16[8,72], index: 0, kind: input, shape index: {}]   ;;  %s427_s1 = inlined_call_operand.vmem [shape: bf16[2,72,256], index: 1, kind: input, shape index: {}]   ;;  %s428_s2 = inlined_call_operand.vmem [shape: f32[2,8,256], index: 2, kind: output, shape index: {}]  }
   0x1 LB: > { %s329_s10 = sadd.s32 4294967295, %s384_s9   ;;  %p333_p0 = scmp.ge.s32.totalorder %s384_s9, 1  ;;  %s384_s9 = sphi %s402_s9, %s12_s9  }
   0x2   : > { %p112_p1 = scmp.lt.s32.totalorder %s384_s9, 3 }
   0x4   : > { %p113_p2 = pnand %p333_p0, %p112_p1 }
   0x5   : > { %p134_p3 = scmp.lt.s32.totalorder (!%p113_p2), %s329_s10, 1  ;;  %v386_v0 = vmov (!%p113_p2), 0   ;;  %vm204_vm0 = vcmask (!%p113_p2), 1043456   ;;  %v145_v13 = vld [vmem:[%s426_s0] sm:$0xf] (!%p113_p2)  ;;  %vm200_vm1 = vcmask (!%p113_p2), 588800  }
   0x6   : > { %116 = sbr.rel (%p113_p2) target bundleno = 567 (0x237), region = 28  ;;  %243 = vmatprep.mubr.bf16.mxu0 (!%p113_p2), %v386_v0 }
   0xd   : > { %s430_s10 = smov (!%p134_p3, %s329_s10), 1 }
   0xe   : > { %s352_s11 = smul.u32 72, %s430_s10  ;;  %s351_s17 = sshll.u32 %s430_s10, 4 }
   0xf   : > { %s143_s20 = scalar_lea.vmem %s428_s2, %s351_s17 }
  0x10   : > { %s138_s14 = scalar_lea.vmem %s427_s1, %s352_s11 }
  0x11   : > { %v362_v1 = vld [vmem:[%s138_s14 + $0x4] ss:$8 sps:$4 sm:$0xff]   ;;  %v364_v2 = vld [vmem:[%s138_s14] ss:$8 sps:$4 sm:$0xff]   ;;  %v365_v3 = vld [vmem:[%s138_s14 + $0x14] ss:$8 sps:$4 sm:$0xff]  }
  0x12   : > { %211 = vmatprep.subr.bf16.mxu0 %v362_v1  ;;  %v367_v4 = vld [vmem:[%s138_s14 + $0x10] ss:$8 sps:$4 sm:$0xff]   ;;  %v368_v5 = vld [vmem:[%s138_s14 + $0x24] ss:$8 sps:$4 sm:$0xff]   ;;  %v370_v6 = vld [vmem:[%s138_s14 + $0x20] ss:$8 sps:$4 sm:$0xff]  }
  0x13   : > { %212 = vmatpush1.bf16.msra.mxu0 %v364_v2  ;;  %v371_v7 = vld [vmem:[%s138_s14 + $0x34] ss:$8 sps:$4 sm:$0xff]   ;;  %v154_v8 = vld [vmem:[%s138_s14 + $0x40] sm:$0xff]  ;;  %v373_v9 = vld [vmem:[%s138_s14 + $0x30] ss:$8 sps:$4 sm:$0xff]  }
  0x14   : > { %213 = vmatprep.subr.bf16.mxu0 %v365_v3  ;;  %v346_v10 = vcombine.high %v154_v8, %v154_v8  ;;  %v345_v11 = vcombine.low %v154_v8, %v154_v8 }
  0x16   : > { %v206_v12 = vsel %vm204_vm0, %v345_v11, 0 }
  0x17   : > { %214 = vmatpush1.bf16.msra.mxu0 %v367_v4 }
  0x18   : > { %215 = vmatprep.subr.bf16.mxu0 %v368_v5 }
  0x1b   : > { %216 = vmatpush1.bf16.msra.mxu0 %v370_v6 }
  0x1c   : > { %217 = vmatprep.subr.bf16.mxu0 %v371_v7 }
  0x1f   : > { %218 = vmatpush1.bf16.msra.mxu0 %v373_v9 }
  0x20   : > { %347 = vmatprep.subr.msk.bf16.mxu0 %vm204_vm0, %v346_v10 }
  0x23   : > { %220 = vmatpush1.bf16.msra.mxu0 %v206_v12 }
  0x26   : > { %348 = vmatmul.mubr.msk.bf16.vlgmr.msra.gmra.mrb[0].mxu0 %vm200_vm1, %v145_v13 }
  0xf9   : > { %v245_v14 = vpop.f32.mrb[0].mxu0 }
  0xfa   : > { %v247_v15 = vpop.f32.mrb[1].mxu0 }
  0xfb   : > { %v249_v16 = vpop.f32.mrb[2].mxu0  ;;  %v252_v17 = vadd.f32 %v247_v15, %v245_v14 }
  0xfc   : > { %v250_v18 = vpop.f32.mrb[3].mxu0 }
  0xfd   : > { %253 = vadd.xlane.f32.xlu0 %v252_v17 }
 0x18a   : > { %v254_v19 = vpop.xlane.xlu0 %253 }
 0x18b   : > { %v255_v20 = vmul.f32 0.00390625, %v254_v19 }
 0x18d   : > { %v256_v21 = vsub.f32 %v245_v14, %v255_v20  ;;  %v257_v22 = vsub.f32 %v247_v15, %v255_v20 }
 0x18f   : > { %v258_v23 = vmul.f32 %v256_v21, %v256_v21  ;;  %v259_v24 = vmul.f32 %v257_v22, %v257_v22 }
 0x191   : > { %v260_v25 = vadd.f32 %v259_v24, %v258_v23 }
 0x193   : > { %261 = vadd.xlane.f32.xlu0 %v260_v25 }
 0x220   : > { %v262_v26 = vpop.xlane.xlu0 %261 }
 0x221   : > { %v263_v27 = vmul.f32 0.00390625, %v262_v26 }
 0x223   : > { %v264_v28 = vadd.f32 1e-05, %v263_v27 }
 0x225   : > { %376 = vrsqrt.f32 %v264_v28 }
 0x22f   : > { %v377_v29 = vpop.eup %376 }
 0x230   : > { %v266_v30 = vmul.f32 %v377_v29, %v256_v21  ;;  %v267_v31 = vmul.f32 %v377_v29, %v257_v22 }
 0x232   : > { %v268_v32 = vmul.f32 0.2, %v266_v30  ;;  %v269_v33 = vmul.f32 0.2, %v267_v31 }
 0x234   : > { %v270_v34 = vmax.f32 %v266_v30, %v268_v32  ;;  %v271_v35 = vmax.f32 %v267_v31, %v269_v33 }
 0x236   : > { %272 = vst [vmem:[%s143_s20] sm:$0xff] %v270_v34  ;;  %273 = vst [vmem:[%s143_s20 + $0x8] sm:$0xff] %v271_v35 }
 0x237 PF: > { %s12_s9 = sadd.s32 1, %s384_s9  }
 0x238   : > { %p9_p4 = scmp.ge.s32.totalorder %s12_s9, 4  }
 0x23a   :  { %11 = sbr.rel (!%p9_p4) target bundleno = 1 (0x1), region = 58 }

// kernel: _lambda_.18
= control target key start
LH: loop header
LB: loop body
LE: loop exit
PB: predicated region body
PF: predicated region fallthrough
CT: control target
= control target key end

     0   :  { %s409_s9 = smov 0   ;;  %s439_s0 = inlined_call_operand.vmem [shape: bf16[16,72], index: 0, kind: input, shape index: {}]   ;;  %s440_s1 = inlined_call_operand.vmem [shape: bf16[2,72,64], index: 1, kind: input, shape index: {}]   ;;  %s441_s2 = inlined_call_operand.vmem [shape: f32[2,16,64], index: 2, kind: output, shape index: {}]  }
   0x1 LB: > { %s325_s10 = sadd.s32 4294967295, %s390_s9   ;;  %p329_p0 = scmp.ge.s32.totalorder %s390_s9, 1  ;;  %s390_s9 = sphi %s409_s9, %s12_s9  }
   0x2   : > { %p112_p1 = scmp.lt.s32.totalorder %s390_s9, 3 }
   0x4   : > { %p113_p2 = pnand %p329_p0, %p112_p1 }
   0x5   : > { %p134_p3 = scmp.lt.s32.totalorder (!%p113_p2), %s325_s10, 1  ;;  %v392_v0 = vmov (!%p113_p2), 0.0   ;;  %vm393_vm0 = vmmov (!%p113_p2), 0   ;;  %vm192_vm1 = vcmask (!%p113_p2), 1043456   ;;  %v379_v7 = vld [vmem:[%s439_s0] sm:$0xff] (!%p113_p2)   ;;  %vm188_vm2 = vcmask (!%p113_p2), 588800  }
   0x6   : > { %116 = sbr.rel (%p113_p2) target bundleno = 567 (0x237), region = 28  ;;  %349 = vmatprep.subr.bf16.mxu0 (!%p113_p2), %v392_v0  ;;  %359 = vmatprep.mubr.msk.bf16.mxu0 (!%p113_p2), %vm393_vm0, %v392_v0  ;;  %vm237_vm3 = vcmask (!%p113_p2), 523264  }
   0xd   : > { %s443_s10 = smov (!%p134_p3, %s325_s10), 1 }
   0xe   : > { %s363_s11 = smul.u32 36, %s443_s10  ;;  %s342_s17 = sshll.u32 %s443_s10, 4 }
   0xf   : > { %s143_s20 = scalar_lea.vmem %s441_s2, %s342_s17 }
  0x10   : > { %s138_s14 = scalar_lea.vmem %s440_s1, %s363_s11 }
  0x11   : > { %v374_v1 = vld [vmem:[%s138_s14] sm:$0xff]   ;;  %v375_v2 = vld [vmem:[%s138_s14 + $0x8] sm:$0xff]   ;;  %v376_v3 = vld [vmem:[%s138_s14 + $0x10] sm:$0xff]  }
  0x12   : > { %350 = vmatpush3.bf16.msra.mxu0 %v374_v1  ;;  %v377_v4 = vld [vmem:[%s138_s14 + $0x18] sm:$0xff]   ;;  %v378_v5 = vld [vmem:[%s138_s14 + $0x20] ss:$0 sps:$4 sm:$0xff]  }
  0x13   : > { %351 = vmatprep.subr.bf16.mxu0 %v392_v0  ;;  %v194_v6 = vsel %vm192_vm1, %v378_v5, 0 }
  0x16   : > { %352 = vmatpush3.bf16.msra.mxu0 %v375_v2 }
  0x17   : > { %353 = vmatprep.subr.bf16.mxu0 %v392_v0 }
  0x1a   : > { %354 = vmatpush3.bf16.msra.mxu0 %v376_v3 }
  0x1b   : > { %355 = vmatprep.subr.bf16.mxu0 %v392_v0 }
  0x1e   : > { %356 = vmatpush3.bf16.msra.mxu0 %v377_v4 }
  0x1f   : > { %357 = vmatprep.subr.bf16.mxu0 %v392_v0 }
  0x22   : > { %358 = vmatpush3.bf16.msra.mxu0 %v194_v6 }
  0x25   : > { %360 = vmatmul.mubr.msk.bf16.vlgmr.msra.gmra.mrb[0].mxu0 %vm188_vm2, %v379_v7 }
  0xf8   : > { %v230_v8 = vpop.f32.mrb[0].mxu0 }
  0xf9   : > { %v361_v9 = vpop.f32.mrb[1].mxu0  ;;  %v238_v10 = vsel %vm237_vm3, %v230_v8, 0.0 }
  0xfa   : > { %239 = vadd.xlane.f32.xlu0 %v238_v10  ;;  %v233_v11 = vpop.f32.mrb[2].mxu0 }
  0xfb   : > { %v362_v12 = vpop.f32.mrb[3].mxu0  ;;  %v241_v13 = vsel %vm237_vm3, %v233_v11, 0.0 }
  0xfe   : > { %242 = vadd.xlane.f32.xlu0 %v241_v13 }
 0x187   : > { %v240_v14 = vpop.xlane.xlu0 %239 }
 0x188   : > { %v244_v15 = vmul.f32 0.015625, %v240_v14 }
 0x18a   : > { %v246_v16 = vsub.f32 %v230_v8, %v244_v15 }
 0x18b   : > { %v243_v17 = vpop.xlane.xlu0 %242 }
 0x18c   : > { %v245_v18 = vmul.f32 0.015625, %v243_v17  ;;  %v248_v19 = vmul.f32 %v246_v16, %v246_v16 }
 0x18e   : > { %v247_v20 = vsub.f32 %v233_v11, %v245_v18  ;;  %v250_v21 = vsel %vm237_vm3, %v248_v19, 0.0 }
 0x18f   : > { %251 = vadd.xlane.f32.xlu1 %v250_v21 }
 0x190   : > { %v249_v22 = vmul.f32 %v247_v20, %v247_v20 }
 0x192   : > { %v253_v23 = vsel %vm237_vm3, %v249_v22, 0.0 }
 0x193   : > { %254 = vadd.xlane.f32.xlu1 %v253_v23 }
 0x21c   : > { %v252_v24 = vpop.xlane.xlu1 %251 }
 0x21d   : > { %v256_v25 = vmul.f32 0.015625, %v252_v24 }
 0x21f   : > { %v258_v26 = vadd.f32 1e-05, %v256_v25 }
 0x220   : > { %v255_v27 = vpop.xlane.xlu1 %254 }
 0x221   : > { %380 = vrsqrt.f32 %v258_v26  ;;  %v257_v28 = vmul.f32 0.015625, %v255_v27 }
 0x223   : > { %v259_v29 = vadd.f32 1e-05, %v257_v28 }
 0x225   : > { %382 = vrsqrt.f32 %v259_v29 }
 0x22b   : > { %v381_v30 = vpop.eup %380 }
 0x22c   : > { %v262_v31 = vmul.f32 %v381_v30, %v246_v16 }
 0x22e   : > { %v264_v32 = vmul.f32 0.2, %v262_v31 }
 0x22f   : > { %v383_v33 = vpop.eup %382 }
 0x230   : > { %v266_v34 = vmax.f32 %v262_v31, %v264_v32  ;;  %v263_v35 = vmul.f32 %v383_v33, %v247_v20 }
 0x232   : > { %268 = vst.msk [vmem:[%s143_s20] sm:$0xff] %vm237_vm3, %v266_v34  ;;  %v265_v36 = vmul.f32 0.2, %v263_v35 }
 0x234   : > { %v267_v37 = vmax.f32 %v263_v35, %v265_v36 }
 0x236   : > { %269 = vst.msk [vmem:[%s143_s20 + $0x8] sm:$0xff] %vm237_vm3, %v267_v37 }
 0x237 PF: > { %s12_s9 = sadd.s32 1, %s390_s9  }
 0x238   : > { %p9_p4 = scmp.ge.s32.totalorder %s12_s9, 4  }
 0x23a   :  { %11 = sbr.rel (!%p9_p4) target bundleno = 1 (0x1), region = 58 }

// kernel: _lambda_.19
= control target key start
LH: loop header
LB: loop body
LE: loop exit
PB: predicated region body
PF: predicated region fallthrough
CT: control target
= control target key end

     0   :  { %s434_s9 = smov 0   ;;  %s467_s0 = inlined_call_operand.vmem [shape: bf16[16,144], index: 0, kind: input, shape index: {}]   ;;  %s468_s1 = inlined_call_operand.vmem [shape: bf16[2,144,64], index: 1, kind: input, shape index: {}]   ;;  %s469_s2 = inlined_call_operand.vmem [shape: f32[2,16,64], index: 2, kind: output, shape index: {}]  }
   0x1 LB: > { %s361_s10 = sadd.s32 4294967295, %s416_s9   ;;  %p365_p0 = scmp.ge.s32.totalorder %s416_s9, 1  ;;  %s416_s9 = sphi %s434_s9, %s12_s9  }
   0x2   : > { %p112_p1 = scmp.lt.s32.totalorder %s416_s9, 3 }
   0x4   : > { %p113_p2 = pnand %p365_p0, %p112_p1 }
   0x5   : > { %p134_p3 = scmp.lt.s32.totalorder (!%p113_p2), %s361_s10, 1  ;;  %v418_v0 = vmov (!%p113_p2), 0   ;;  %v405_v1 = vld [vmem:[%s467_s0 + $0x4] ss:$8 sps:$4 sm:$0xff] (!%p113_p2)   ;;  %vm228_vm0 = vcmask (!%p113_p2), 130048   ;;  %vm273_vm1 = vcmask (!%p113_p2), 523264  }
   0x6   : > { %116 = sbr.rel (%p113_p2) target bundleno = 583 (0x247), region = 28  ;;  %232 = vmatprep.subr.bf16.mxu0 (!%p113_p2), %v418_v0  ;;  %380 = vmatprep.mubr.msk.bf16.mxu0 (!%p113_p2), %vm228_vm0, %v405_v1  ;;  %v403_v11 = vld [vmem:[%s467_s0] ss:$8 sps:$4 sm:$0xff] (!%p113_p2)  }
   0xd   : > { %s471_s10 = smov (!%p134_p3, %s361_s10), 1 }
   0xe   : > { %s384_s13 = smul.u32 72, %s471_s10  ;;  %s383_s19 = sshll.u32 %s471_s10, 4 }
   0xf   : > { %s143_s22 = scalar_lea.vmem %s469_s2, %s383_s19 }
  0x10   : > { %s138_s16 = scalar_lea.vmem %s468_s1, %s384_s13 }
  0x11   : > { %v394_v2 = vld [vmem:[%s138_s16] sm:$0xff]   ;;  %v395_v3 = vld [vmem:[%s138_s16 + $0x8] sm:$0xff]   ;;  %v396_v4 = vld [vmem:[%s138_s16 + $0x10] sm:$0xff]  }
  0x12   : > { %233 = vmatpush1.bf16.msra.mxu0 %v394_v2  ;;  %v397_v5 = vld [vmem:[%s138_s16 + $0x18] sm:$0xff]   ;;  %v398_v6 = vld [vmem:[%s138_s16 + $0x20] sm:$0xff]   ;;  %v399_v7 = vld [vmem:[%s138_s16 + $0x28] sm:$0xff]  }
  0x13   : > { %234 = vmatprep.subr.bf16.mxu0 %v418_v0  ;;  %v400_v8 = vld [vmem:[%s138_s16 + $0x30] sm:$0xff]   ;;  %v401_v9 = vld [vmem:[%s138_s16 + $0x38] sm:$0xff]   ;;  %v402_v10 = vld [vmem:[%s138_s16 + $0x40] sm:$0xff]  }
  0x16   : > { %235 = vmatpush1.bf16.msra.mxu0 %v395_v3 }
  0x17   : > { %236 = vmatprep.subr.bf16.mxu0 %v418_v0 }
  0x1a   : > { %237 = vmatpush1.bf16.msra.mxu0 %v396_v4 }
  0x1b   : > { %238 = vmatprep.subr.bf16.mxu0 %v418_v0 }
  0x1e   : > { %239 = vmatpush1.bf16.msra.mxu0 %v397_v5 }
  0x1f   : > { %240 = vmatprep.subr.bf16.mxu0 %v418_v0 }
  0x22   : > { %241 = vmatpush1.bf16.msra.mxu0 %v398_v6 }
  0x23   : > { %242 = vmatprep.subr.bf16.mxu0 %v418_v0 }
  0x26   : > { %243 = vmatpush1.bf16.msra.mxu0 %v399_v7 }
  0x27   : > { %244 = vmatprep.subr.bf16.mxu0 %v418_v0 }
  0x2a   : > { %245 = vmatpush1.bf16.msra.mxu0 %v400_v8 }
  0x2b   : > { %246 = vmatprep.subr.bf16.mxu0 %v418_v0 }
  0x2e   : > { %247 = vmatpush1.bf16.msra.mxu0 %v401_v9 }
  0x2f   : > { %248 = vmatprep.subr.bf16.mxu0 %v418_v0 }
  0x32   : > { %249 = vmatpush1.bf16.msra.mxu0 %v402_v10 }
  0x35   : > { %265 = vmatmul.mubr.bf16.vlgmr.msra.gmra.mrb[0].mxu0 %v403_v11 }
 0x108   : > { %v266_v12 = vpop.f32.mrb[0].mxu0 }
 0x109   : > { %v268_v13 = vpop.f32.mrb[1].mxu0  ;;  %v274_v14 = vsel %vm273_vm1, %v266_v12, 0.0 }
 0x10a   : > { %275 = vadd.xlane.f32.xlu0 %v274_v14  ;;  %v269_v15 = vpop.f32.mrb[2].mxu0 }
 0x10b   : > { %v271_v16 = vpop.f32.mrb[3].mxu0  ;;  %v277_v17 = vsel %vm273_vm1, %v269_v15, 0.0 }
 0x10e   : > { %278 = vadd.xlane.f32.xlu0 %v277_v17 }
 0x197   : > { %v276_v18 = vpop.xlane.xlu0 %275 }
 0x198   : > { %v280_v19 = vmul.f32 0.015625, %v276_v18 }
 0x19a   : > { %v282_v20 = vsub.f32 %v266_v12, %v280_v19 }
 0x19b   : > { %v279_v21 = vpop.xlane.xlu0 %278 }
 0x19c   : > { %v281_v22 = vmul.f32 0.015625, %v279_v21  ;;  %v284_v23 = vmul.f32 %v282_v20, %v282_v20 }
 0x19e   : > { %v283_v24 = vsub.f32 %v269_v15, %v281_v22  ;;  %v286_v25 = vsel %vm273_vm1, %v284_v23, 0.0 }
 0x19f   : > { %287 = vadd.xlane.f32.xlu1 %v286_v25 }
 0x1a0   : > { %v285_v26 = vmul.f32 %v283_v24, %v283_v24 }
 0x1a2   : > { %v289_v27 = vsel %vm273_vm1, %v285_v26, 0.0 }
 0x1a3   : > { %290 = vadd.xlane.f32.xlu1 %v289_v27 }
 0x22c   : > { %v288_v28 = vpop.xlane.xlu1 %287 }
 0x22d   : > { %v292_v29 = vmul.f32 0.015625, %v288_v28 }
 0x22f   : > { %v294_v30 = vadd.f32 1e-05, %v292_v29 }
 0x230   : > { %v291_v31 = vpop.xlane.xlu1 %290 }
 0x231   : > { %406 = vrsqrt.f32 %v294_v30  ;;  %v293_v32 = vmul.f32 0.015625, %v291_v31 }
 0x233   : > { %v295_v33 = vadd.f32 1e-05, %v293_v32 }
 0x235   : > { %408 = vrsqrt.f32 %v295_v33 }
 0x23b   : > { %v407_v34 = vpop.eup %406 }
 0x23c   : > { %v298_v35 = vmul.f32 %v407_v34, %v282_v20 }
 0x23e   : > { %v300_v36 = vmul.f32 0.2, %v298_v35 }
 0x23f   : > { %v409_v37 = vpop.eup %408 }
 0x240   : > { %v302_v38 = vmax.f32 %v298_v35, %v300_v36  ;;  %v299_v39 = vmul.f32 %v409_v37, %v283_v24 }
 0x242   : > { %304 = vst.msk [vmem:[%s143_s22] sm:$0xff] %vm273_vm1, %v302_v38  ;;  %v301_v40 = vmul.f32 0.2, %v299_v39 }
 0x244   : > { %v303_v41 = vmax.f32 %v299_v39, %v301_v40 }
 0x246   : > { %305 = vst.msk [vmem:[%s143_s22 + $0x8] sm:$0xff] %vm273_vm1, %v303_v41 }
 0x247 PF: > { %s12_s9 = sadd.s32 1, %s416_s9  }
 0x248   : > { %p9_p4 = scmp.ge.s32.totalorder %s12_s9, 4  }
 0x24a   :  { %11 = sbr.rel (!%p9_p4) target bundleno = 1 (0x1), region = 58 }

// kernel: _lambda_.20
= control target key start
LH: loop header
LB: loop body
LE: loop exit
PB: predicated region body
PF: predicated region fallthrough
CT: control target
= control target key end

     0   :  { %s398_s9 = smov 0   ;;  %s426_s0 = inlined_call_operand.vmem [shape: bf16[16,4], index: 0, kind: input, shape index: {}]   ;;  %s427_s1 = inlined_call_operand.vmem [shape: bf16[2,64,16], index: 1, kind: input, shape index: {}]   ;;  %s428_s2 = inlined_call_operand.vmem [shape: f32[2,64,4], index: 2, kind: output, shape index: {}]  }
   0x1 LB: > { %s323_s10 = sadd.s32 4294967295, %s381_s9   ;;  %p327_p0 = scmp.ge.s32.totalorder %s381_s9, 1  ;;  %s381_s9 = sphi %s398_s9, %s12_s9  }
   0x2   : > { %p112_p1 = scmp.lt.s32.totalorder %s381_s9, 3 }
   0x4   : > { %p113_p2 = pnand %p327_p0, %p112_p1 }
   0x5   : > { %v370_v0 = vld [vmem:[%s426_s0] sm:$0xff] (!%p113_p2)   ;;  %p134_p3 = scmp.lt.s32.totalorder (!%p113_p2), %s323_s10, 1  ;;  %vm181_vm0 = vcmask (!%p113_p2), 130048   ;;  %vm259_vm1 = vcmask (!%p113_p2), 31744  }
   0x6   : > { %116 = sbr.rel (%p113_p2) target bundleno = 234 (0xea), region = 28  ;;  %350 = vmatprep.subr.bf16.mxu0 (!%p113_p2), %v370_v0  ;;  %360 = vmatprep.subr.bf16.mxu1 (!%p113_p2), %v370_v0 }
   0x7   : > { %351 = vmatpush3.bf16.msra.mxu0 (!%p113_p2), %v370_v0  ;;  %361 = vmatpush3.bf16.msra.mxu1 (!%p113_p2), %v370_v0 }
   0xd   : > { %s430_s10 = smov (!%p134_p3, %s323_s10), 1 }
   0xe   : > { %s343_s13 = sshll.u32 %s430_s10, 5  ;;  %s344_s17 = sshll.u32 %s430_s10, 6 }
   0xf   : > { %s138_s16 = scalar_lea.vmem %s427_s1, %s343_s13  ;;  %s143_s20 = scalar_lea.vmem %s428_s2, %s344_s17 }
  0x10   : > { %v371_v1 = vld [vmem:[%s138_s16] sm:$0xff]   ;;  %v372_v2 = vld [vmem:[%s138_s16 + $0x10] sm:$0xff]   ;;  %v373_v3 = vld [vmem:[%s138_s16 + $0x8] sm:$0xff]  }
  0x11   : > { %352 = vmatprep.mubr.msk.bf16.mxu0 %vm181_vm0, %v371_v1  ;;  %356 = vmatprep.mubr.msk.bf16.mxu1 %vm181_vm0, %v372_v2  ;;  %v374_v4 = vld [vmem:[%s138_s16 + $0x18] sm:$0xff]  }
  0x12   : > { %353 = vmatmul.mubr.msk.bf16.vlgmr.msra.gmra.mrb[0].mxu0 %vm181_vm0, %v373_v3  ;;  %357 = vmatmul.mubr.msk.bf16.vlgmr.msra.gmra.mrb[0].mxu1 %vm181_vm0, %v374_v4 }
  0xe5   : > { %v354_v5 = vpop.f32.mrb[0].mxu0  ;;  %v358_v6 = vpop.f32.mrb[0].mxu1 }
  0xe6   : > { %262 = vst.msk [vmem:[%s143_s20 + $0x10] sm:$0xff] %vm259_vm1, %v354_v5  ;;  %v228_v7 = vpop.f32.mrb[1].mxu0  ;;  %266 = vst.msk [vmem:[%s143_s20 + $0x30] sm:$0xff] %vm259_vm1, %v358_v6  ;;  %v244_v8 = vpop.f32.mrb[1].mxu1 }
  0xe7   : > { %260 = vst.msk [vmem:[%s143_s20] sm:$0xff] %vm259_vm1, %v228_v7  ;;  %v355_v9 = vpop.f32.mrb[2].mxu0  ;;  %264 = vst.msk [vmem:[%s143_s20 + $0x20] sm:$0xff] %vm259_vm1, %v244_v8  ;;  %v359_v10 = vpop.f32.mrb[2].mxu1 }
  0xe8   : > { %263 = vst.msk [vmem:[%s143_s20 + $0x18] sm:$0xff] %vm259_vm1, %v355_v9  ;;  %v231_v11 = vpop.f32.mrb[3].mxu0  ;;  %267 = vst.msk [vmem:[%s143_s20 + $0x38] sm:$0xff] %vm259_vm1, %v359_v10  ;;  %v247_v12 = vpop.f32.mrb[3].mxu1 }
  0xe9   : > { %261 = vst.msk [vmem:[%s143_s20 + $0x8] sm:$0xff] %vm259_vm1, %v231_v11  ;;  %265 = vst.msk [vmem:[%s143_s20 + $0x28] sm:$0xff] %vm259_vm1, %v247_v12 }
  0xea PF: > { %s12_s9 = sadd.s32 1, %s381_s9  }
  0xeb   : > { %p9_p4 = scmp.ge.s32.totalorder %s12_s9, 4  }
  0xed   :  { %11 = sbr.rel (!%p9_p4) target bundleno = 1 (0x1), region = 58 }

// kernel: _lambda_.21
= control target key start
LH: loop header
LB: loop body
LE: loop exit
PB: predicated region body
PF: predicated region fallthrough
CT: control target
= control target key end

     0   :  { %s515_s9 = smov 0   ;;  %s573_s0 = inlined_call_operand.vmem [shape: bf16[32,144], index: 0, kind: input, shape index: {}]   ;;  %s574_s1 = inlined_call_operand.vmem [shape: bf16[2,144,16], index: 1, kind: input, shape index: {}]   ;;  %s575_s2 = inlined_call_operand.vmem [shape: f32[2,32,16], index: 2, kind: output, shape index: {}]  }
   0x1 LB: > { %s414_s10 = sadd.s32 4294967295, %s497_s9   ;;  %p418_p0 = scmp.ge.s32.totalorder %s497_s9, 1  ;;  %s497_s9 = sphi %s515_s9, %s12_s9  }
   0x2   : > { %p112_p1 = scmp.lt.s32.totalorder %s497_s9, 3 }
   0x4   : > { %p113_p2 = pnand %p418_p0, %p112_p1 }
   0x5   : > { %p134_p3 = scmp.lt.s32.totalorder (!%p113_p2), %s414_s10, 1  ;;  %v499_v0 = vmov (!%p113_p2), 0   ;;  %v479_v1 = vld [vmem:[%s573_s0 + $0x4] ss:$8 sps:$4 sm:$0xff] (!%p113_p2)   ;;  %vm239_vm0 = vcmask (!%p113_p2), 130048  }
   0x6   : > { %116 = sbr.rel (%p113_p2) target bundleno = 587 (0x24b), region = 28  ;;  %246 = vmatprep.subr.bf16.mxu0 (!%p113_p2), %v499_v0  ;;  %440 = vmatprep.subr.bf16.mxu1 (!%p113_p2), %v499_v0  ;;  %v482_v2 = vld [vmem:[%s573_s0 + $0x14] ss:$8 sps:$4 sm:$0xff] (!%p113_p2)   ;;  %v477_v12 = vld [vmem:[%s573_s0] ss:$8 sps:$4 sm:$0xff] (!%p113_p2)  }
   0x7   : > { %435 = vmatprep.mubr.msk.bf16.mxu0 (!%p113_p2), %vm239_vm0, %v479_v1  ;;  %436 = vmatprep.mubr.msk.bf16.mxu1 (!%p113_p2), %vm239_vm0, %v482_v2  ;;  %v480_v13 = vld [vmem:[%s573_s0 + $0x10] ss:$8 sps:$4 sm:$0xff] (!%p113_p2)  }
   0xd   : > { %s577_s10 = smov (!%p134_p3, %s414_s10), 1 }
   0xe   : > { %s458_s15 = smul.u32 72, %s577_s10  ;;  %s439_s23 = sshll.u32 %s577_s10, 5 }
   0xf   : > { %s143_s26 = scalar_lea.vmem %s575_s2, %s439_s23 }
  0x10   : > { %s537_s18 = scalar_lea.vmem %s574_s1, %s458_s15 }
  0x11   : > { %v468_v3 = vld [vmem:[%s537_s18] sm:$0xff]   ;;  %v469_v4 = vld [vmem:[%s537_s18 + $0x8] sm:$0xff]   ;;  %v470_v5 = vld [vmem:[%s537_s18 + $0x10] sm:$0xff]  }
  0x12   : > { %247 = vmatpush1.bf16.msra.mxu0 %v468_v3  ;;  %449 = vmatpush1.bf16.msra.mxu1 %v468_v3  ;;  %v471_v6 = vld [vmem:[%s537_s18 + $0x18] sm:$0xff]   ;;  %v472_v7 = vld [vmem:[%s537_s18 + $0x20] sm:$0xff]   ;;  %v473_v8 = vld [vmem:[%s537_s18 + $0x28] sm:$0xff]  }
  0x13   : > { %248 = vmatprep.subr.bf16.mxu0 %v499_v0  ;;  %441 = vmatprep.subr.bf16.mxu1 %v499_v0  ;;  %v474_v9 = vld [vmem:[%s537_s18 + $0x30] sm:$0xff]   ;;  %v475_v10 = vld [vmem:[%s537_s18 + $0x38] sm:$0xff]   ;;  %v476_v11 = vld [vmem:[%s537_s18 + $0x40] sm:$0xff]  }
  0x16   : > { %249 = vmatpush1.bf16.msra.mxu0 %v469_v4  ;;  %450 = vmatpush1.bf16.msra.mxu1 %v469_v4 }
  0x17   : > { %250 = vmatprep.subr.bf16.mxu0 %v499_v0  ;;  %442 = vmatprep.subr.bf16.mxu1 %v499_v0 }
  0x1a   : > { %251 = vmatpush1.bf16.msra.mxu0 %v470_v5  ;;  %451 = vmatpush1.bf16.msra.mxu1 %v470_v5 }
  0x1b   : > { %252 = vmatprep.subr.bf16.mxu0 %v499_v0  ;;  %443 = vmatprep.subr.bf16.mxu1 %v499_v0 }
  0x1e   : > { %253 = vmatpush1.bf16.msra.mxu0 %v471_v6  ;;  %452 = vmatpush1.bf16.msra.mxu1 %v471_v6 }
  0x1f   : > { %254 = vmatprep.subr.bf16.mxu0 %v499_v0  ;;  %444 = vmatprep.subr.bf16.mxu1 %v499_v0 }
  0x22   : > { %255 = vmatpush1.bf16.msra.mxu0 %v472_v7  ;;  %453 = vmatpush1.bf16.msra.mxu1 %v472_v7 }
  0x23   : > { %256 = vmatprep.subr.bf16.mxu0 %v499_v0  ;;  %445 = vmatprep.subr.bf16.mxu1 %v499_v0 }
  0x26   : > { %257 = vmatpush1.bf16.msra.mxu0 %v473_v8  ;;  %454 = vmatpush1.bf16.msra.mxu1 %v473_v8 }
  0x27   : > { %258 = vmatprep.subr.bf16.mxu0 %v499_v0  ;;  %446 = vmatprep.subr.bf16.mxu1 %v499_v0 }
  0x2a   : > { %259 = vmatpush1.bf16.msra.mxu0 %v474_v9  ;;  %455 = vmatpush1.bf16.msra.mxu1 %v474_v9 }
  0x2b   : > { %260 = vmatprep.subr.bf16.mxu0 %v499_v0  ;;  %447 = vmatprep.subr.bf16.mxu1 %v499_v0 }
  0x2e   : > { %261 = vmatpush1.bf16.msra.mxu0 %v475_v10  ;;  %456 = vmatpush1.bf16.msra.mxu1 %v475_v10 }
  0x2f   : > { %262 = vmatprep.subr.bf16.mxu0 %v499_v0  ;;  %448 = vmatprep.subr.bf16.mxu1 %v499_v0 }
  0x32   : > { %263 = vmatpush1.bf16.msra.mxu0 %v476_v11  ;;  %457 = vmatpush1.bf16.msra.mxu1 %v476_v11 }
  0x35   : > { %279 = vmatmul.mubr.bf16.vlgmr.msra.gmra.mrb[0].mxu0 %v477_v12  ;;  %287 = vmatmul.mubr.bf16.vlgmr.msra.gmra.mrb[0].mxu1 %v480_v13 }
 0x108   : > { %v280_v14 = vpop.f32.mrb[0].mxu0  ;;  %v288_v15 = vpop.f32.mrb[0].mxu1 }
 0x109   : > { %v282_v16 = vpop.f32.mrb[1].mxu0  ;;  %v301_v17 = vsel %vm239_vm0, %v288_v15, 0.0  ;;  %v290_v18 = vpop.f32.mrb[1].mxu1  ;;  %v295_v19 = vsel %vm239_vm0, %v280_v14, 0.0 }
 0x10a   : > { %302 = vadd.xlane.f32.xlu1 %v301_v17  ;;  %296 = vadd.xlane.f32.xlu0 %v295_v19  ;;  %v283_v20 = vpop.f32.mrb[2].mxu0  ;;  %v291_v21 = vpop.f32.mrb[2].mxu1 }
 0x10b   : > { %v285_v22 = vpop.f32.mrb[3].mxu0  ;;  %v293_v23 = vpop.f32.mrb[3].mxu1  ;;  %v304_v24 = vsel %vm239_vm0, %v291_v21, 0.0  ;;  %v298_v25 = vsel %vm239_vm0, %v283_v20, 0.0 }
 0x10e   : > { %305 = vadd.xlane.f32.xlu1 %v304_v24  ;;  %299 = vadd.xlane.f32.xlu0 %v298_v25 }
 0x197   : > { %v303_v26 = vpop.xlane.xlu1 %302  ;;  %v297_v27 = vpop.xlane.xlu0 %296 }
 0x198   : > { %v309_v28 = vmul.f32 0.0625, %v303_v26  ;;  %v307_v29 = vmul.f32 0.0625, %v297_v27 }
 0x19a   : > { %v313_v30 = vsub.f32 %v288_v15, %v309_v28  ;;  %v311_v31 = vsub.f32 %v280_v14, %v307_v29 }
 0x19b   : > { %v306_v32 = vpop.xlane.xlu1 %305  ;;  %v300_v33 = vpop.xlane.xlu0 %299 }
 0x19c   : > { %v310_v34 = vmul.f32 0.0625, %v306_v32  ;;  %v308_v35 = vmul.f32 0.0625, %v300_v33  ;;  %v315_v36 = vmul.f32 %v311_v31, %v311_v31  ;;  %v317_v40 = vmul.f32 %v313_v30, %v313_v30 }
 0x19e   : > { %v314_v37 = vsub.f32 %v291_v21, %v310_v34  ;;  %v312_v38 = vsub.f32 %v283_v20, %v308_v35  ;;  %v319_v39 = vsel %vm239_vm0, %v315_v36, 0.0  ;;  %v325_v42 = vsel %vm239_vm0, %v317_v40, 0.0 }
 0x19f   : > { %320 = vadd.xlane.f32.xlu0 %v319_v39 }
 0x1a0   : > { %v316_v41 = vmul.f32 %v312_v38, %v312_v38  ;;  %v318_v44 = vmul.f32 %v314_v37, %v314_v37 }
 0x1a2   : > { %v322_v43 = vsel %vm239_vm0, %v316_v41, 0.0  ;;  %v328_v45 = vsel %vm239_vm0, %v318_v44, 0.0 }
 0x1a3   : > { %326 = vadd.xlane.f32.xlu0 %v325_v42  ;;  %323 = vadd.xlane.f32.xlu1 %v322_v43 }
 0x1a7   : > { %329 = vadd.xlane.f32.xlu1 %v328_v45 }
 0x22c   : > { %v321_v46 = vpop.xlane.xlu0 %320 }
 0x22d   : > { %v331_v47 = vmul.f32 0.0625, %v321_v46 }
 0x22f   : > { %v335_v48 = vadd.f32 1e-05, %v331_v47 }
 0x230   : > { %v324_v49 = vpop.xlane.xlu1 %323  ;;  %v327_v50 = vpop.xlane.xlu0 %326 }
 0x231   : > { %483 = vrsqrt.f32 %v335_v48  ;;  %v332_v51 = vmul.f32 0.0625, %v324_v49  ;;  %v333_v52 = vmul.f32 0.0625, %v327_v50 }
 0x233   : > { %v336_v53 = vadd.f32 1e-05, %v332_v51  ;;  %v337_v54 = vadd.f32 1e-05, %v333_v52 }
 0x234   : > { %v330_v55 = vpop.xlane.xlu1 %329 }
 0x235   : > { %485 = vrsqrt.f32 %v336_v53  ;;  %v334_v56 = vmul.f32 0.0625, %v330_v55 }
 0x236   : > { %487 = vrsqrt.f32 %v337_v54 }
 0x237   : > { %v338_v57 = vadd.f32 1e-05, %v334_v56 }
 0x239   : > { %489 = vrsqrt.f32 %v338_v57 }
 0x23b   : > { %v484_v58 = vpop.eup %483 }
 0x23c   : > { %v343_v59 = vmul.f32 %v484_v58, %v311_v31 }
 0x23e   : > { %v347_v60 = vmul.f32 0.2, %v343_v59 }
 0x23f   : > { %v486_v61 = vpop.eup %485 }
 0x240   : > { %v488_v62 = vpop.eup %487  ;;  %v351_v63 = vmax.f32 %v343_v59, %v347_v60  ;;  %v344_v0 = vmul.f32 %v486_v61, %v312_v38 }
 0x241   : > { %v345_v1 = vmul.f32 %v488_v62, %v313_v30 }
 0x242   : > { %355 = vst.msk [vmem:[%s143_s26] sm:$0xff] %vm239_vm0, %v351_v63  ;;  %v348_v2 = vmul.f32 0.2, %v344_v0 }
 0x243   : > { %v490_v3 = vpop.eup %489  ;;  %v349_v4 = vmul.f32 0.2, %v345_v1 }
 0x244   : > { %v352_v5 = vmax.f32 %v344_v0, %v348_v2  ;;  %v346_v6 = vmul.f32 %v490_v3, %v314_v37 }
 0x245   : > { %v353_v7 = vmax.f32 %v345_v1, %v349_v4 }
 0x246   : > { %356 = vst.msk [vmem:[%s143_s26 + $0x8] sm:$0xff] %vm239_vm0, %v352_v5  ;;  %v350_v8 = vmul.f32 0.2, %v346_v6 }
 0x247   : > { %357 = vst.msk [vmem:[%s143_s26 + $0x10] sm:$0xff] %vm239_vm0, %v353_v7 }
 0x248   : > { %v354_v9 = vmax.f32 %v346_v6, %v350_v8 }
 0x24a   : > { %358 = vst.msk [vmem:[%s143_s26 + $0x18] sm:$0xff] %vm239_vm0, %v354_v9 }
 0x24b PF: > { %s12_s9 = sadd.s32 1, %s497_s9  }
 0x24c   : > { %p9_p4 = scmp.ge.s32.totalorder %s12_s9, 4  }
 0x24e   :  { %11 = sbr.rel (!%p9_p4) target bundleno = 1 (0x1), region = 58 }

// kernel: _lambda_.22
= control target key start
LH: loop header
LB: loop body
LE: loop exit
PB: predicated region body
PF: predicated region fallthrough
CT: control target
= control target key end

     0   :  { %s695_s9 = smov 0   ;;  %s768_s0 = inlined_call_operand.vmem [shape: bf16[32,288], index: 0, kind: input, shape index: {}]   ;;  %s769_s1 = inlined_call_operand.vmem [shape: bf16[2,288,16], index: 1, kind: input, shape index: {}]   ;;  %s770_s2 = inlined_call_operand.vmem [shape: f32[2,32,16], index: 2, kind: output, shape index: {}]  }
   0x1 LB: > { %s552_s10 = sadd.s32 4294967295, %s678_s9   ;;  %p556_p0 = scmp.ge.s32.totalorder %s678_s9, 1  ;;  %s678_s9 = sphi %s695_s9, %s12_s9  }
   0x2   : > { %p112_p1 = scmp.lt.s32.totalorder %s678_s9, 3 }
   0x4   : > { %p113_p2 = pnand %p556_p0, %p112_p1 }
   0x5   : > { %p134_p3 = scmp.lt.s32.totalorder (!%p113_p2), %s552_s10, 1  ;;  %vm327_vm0 = vcmask (!%p113_p2), 261120   ;;  %v658_v0 = vld [vmem:[%s768_s0 + $0x4] ss:$12 sps:$4 sm:$0xff] (!%p113_p2)   ;;  %v659_v1 = vld [vmem:[%s768_s0 + $0x8] ss:$12 sps:$4 sm:$0xff] (!%p113_p2)  }
   0x6   : > { %116 = sbr.rel (%p113_p2) target bundleno = 593 (0x251), region = 28  ;;  %366 = vmatprep.mubr.bf16.mxu0 (!%p113_p2), %v658_v0  ;;  %625 = vmatprep.mubr.msk.bf16.mxu1 (!%p113_p2), %vm327_vm0, %v659_v1  ;;  %v660_v17 = vld [vmem:[%s768_s0 + $0x20] ss:$12 sps:$4 sm:$0xff] (!%p113_p2)   ;;  %v661_v22 = vld [vmem:[%s768_s0 + $0x1c] ss:$12 sps:$4 sm:$0xff] (!%p113_p2)   ;;  %vm432_vm1 = vcmask (!%p113_p2), 130048  }
   0x7   : > { %v656_v21 = vld [vmem:[%s768_s0] ss:$12 sps:$4 sm:$0xff] (!%p113_p2)   ;;  %v663_v23 = vld [vmem:[%s768_s0 + $0x18] ss:$12 sps:$4 sm:$0xff] (!%p113_p2)  }
   0xd   : > { %s772_s10 = smov (!%p134_p3, %s552_s10), 1 }
   0xe   : > { %s629_s15 = smul.u32 144, %s772_s10  ;;  %s588_s27 = sshll.u32 %s772_s10, 5 }
   0xf   : > { %s143_s30 = scalar_lea.vmem %s770_s2, %s588_s27 }
  0x10   : > { %s716_s18 = scalar_lea.vmem %s769_s1, %s629_s15 }
  0x11   : > { %v638_v2 = vld [vmem:[%s716_s18 + $0x40] sm:$0xff]   ;;  %v640_v4 = vld [vmem:[%s716_s18 + $0x48] sm:$0xff]   ;;  %v642_v6 = vld [vmem:[%s716_s18 + $0x50] sm:$0xff]  }
  0x12   : > { %v639_v3 = vld [vmem:[%s716_s18] sm:$0xff]   ;;  %589 = vmatprep.subr.bf16.mxu0 %v638_v2  ;;  %v641_v5 = vld [vmem:[%s716_s18 + $0x8] sm:$0xff]   ;;  %v643_v7 = vld [vmem:[%s716_s18 + $0x10] sm:$0xff]  }
  0x13   : > { %590 = vmatpush3.bf16.msra.mxu0 %v639_v3  ;;  %v644_v8 = vld [vmem:[%s716_s18 + $0x58] sm:$0xff]   ;;  %v646_v10 = vld [vmem:[%s716_s18 + $0x60] sm:$0xff]   ;;  %v648_v13 = vld [vmem:[%s716_s18 + $0x68] sm:$0xff]  }
  0x14   : > { %591 = vmatprep.subr.bf16.mxu0 %v640_v4  ;;  %v645_v9 = vld [vmem:[%s716_s18 + $0x18] sm:$0xff]   ;;  %v652_v11 = vld [vmem:[%s716_s18 + $0x80] sm:$0xff]   ;;  %v655_v14 = vld [vmem:[%s716_s18 + $0x88] sm:$0xff]  }
  0x15   : > { %v647_v12 = vld [vmem:[%s716_s18 + $0x20] sm:$0xff]   ;;  %621 = vmatprep.subr.bf16.mxu1 %v652_v11  ;;  %v649_v15 = vld [vmem:[%s716_s18 + $0x28] sm:$0xff]   ;;  %v650_v16 = vld [vmem:[%s716_s18 + $0x70] sm:$0xff]  }
  0x16   : > { %622 = vmatpush3.bf16.msra.mxu1 %v652_v11  ;;  %v651_v18 = vld [vmem:[%s716_s18 + $0x30] sm:$0xff]   ;;  %v653_v19 = vld [vmem:[%s716_s18 + $0x78] sm:$0xff]  }
  0x17   : > { %592 = vmatpush3.bf16.msra.mxu0 %v641_v5  ;;  %623 = vmatprep.subr.bf16.mxu1 %v655_v14  ;;  %v654_v20 = vld [vmem:[%s716_s18 + $0x38] sm:$0xff]  }
  0x18   : > { %593 = vmatprep.subr.bf16.mxu0 %v642_v6 }
  0x1a   : > { %624 = vmatpush3.bf16.msra.mxu1 %v655_v14 }
  0x1b   : > { %594 = vmatpush3.bf16.msra.mxu0 %v643_v7 }
  0x1c   : > { %595 = vmatprep.subr.bf16.mxu0 %v644_v8 }
  0x1d   : > { %626 = vmatmul.mubr.msk.bf16.vlgmr.msra.gmra.mrb[0].mxu1 %vm327_vm0, %v660_v17 }
  0x1f   : > { %596 = vmatpush3.bf16.msra.mxu0 %v645_v9 }
  0x20   : > { %597 = vmatprep.subr.bf16.mxu0 %v646_v10 }
  0x23   : > { %598 = vmatpush3.bf16.msra.mxu0 %v647_v12 }
  0x24   : > { %599 = vmatprep.subr.bf16.mxu0 %v648_v13 }
  0x27   : > { %600 = vmatpush3.bf16.msra.mxu0 %v649_v15 }
  0x28   : > { %601 = vmatprep.subr.bf16.mxu0 %v650_v16 }
  0x2b   : > { %602 = vmatpush3.bf16.msra.mxu0 %v651_v18 }
  0x2c   : > { %603 = vmatprep.subr.bf16.mxu0 %v653_v19 }
  0x2f   : > { %604 = vmatpush3.bf16.msra.mxu0 %v654_v20 }
  0x32   : > { %367 = vmatmul.mubr.bf16.vlgmr.msra.gmra.mrb[0].mxu0 %v656_v21 }
  0x33   : > { %374 = vmatprep.mubr.bf16.mxu0 %v661_v22 }
  0x3a   : > { %375 = vmatmul.mubr.bf16.gmra.mrb[4].mxu0 %v663_v23 }
  0xf0   : > { %v627_v24 = vpop.f32.mrb[0].mxu1 }
  0xf1   : > { %v417_v25 = vpop.f32.mrb[1].mxu1 }
  0xf2   : > { %v628_v26 = vpop.f32.mrb[2].mxu1 }
  0xf3   : > { %v420_v27 = vpop.f32.mrb[3].mxu1 }
 0x105   : > { %v605_v28 = vpop.f32.mrb[0].mxu0 }
 0x106   : > { %v606_v29 = vpop.f32.mrb[1].mxu0 }
 0x107   : > { %v607_v30 = vadd.f32 %v606_v29, %v605_v28  ;;  %v608_v31 = vpop.f32.mrb[2].mxu0 }
 0x108   : > { %v609_v32 = vpop.f32.mrb[3].mxu0 }
 0x109   : > { %v610_v33 = vadd.f32 %v609_v32, %v608_v31  ;;  %v418_v34 = vadd.f32 %v607_v30, %v417_v25 }
 0x10b   : > { %v421_v35 = vadd.f32 %v610_v33, %v420_v27  ;;  %v433_v36 = vsel %vm432_vm1, %v418_v34, 0.0 }
 0x10c   : > { %434 = vadd.xlane.f32.xlu0 %v433_v36 }
 0x10d   : > { %v611_v37 = vpop.f32.mrb[4].mxu0  ;;  %v436_v41 = vsel %vm432_vm1, %v421_v35, 0.0 }
 0x10e   : > { %v612_v38 = vpop.f32.mrb[5].mxu0 }
 0x10f   : > { %v613_v39 = vadd.f32 %v612_v38, %v611_v37  ;;  %v614_v40 = vpop.f32.mrb[6].mxu0 }
 0x110   : > { %v615_v42 = vpop.f32.mrb[7].mxu0  ;;  %437 = vadd.xlane.f32.xlu0 %v436_v41 }
 0x111   : > { %v616_v43 = vadd.f32 %v615_v42, %v614_v40  ;;  %v426_v44 = vadd.f32 %v627_v24, %v613_v39 }
 0x113   : > { %v439_v45 = vsel %vm432_vm1, %v426_v44, 0.0  ;;  %v429_v46 = vadd.f32 %v628_v26, %v616_v43 }
 0x114   : > { %440 = vadd.xlane.f32.xlu1 %v439_v45 }
 0x115   : > { %v442_v47 = vsel %vm432_vm1, %v429_v46, 0.0 }
 0x118   : > { %443 = vadd.xlane.f32.xlu1 %v442_v47 }
 0x199   : > { %v435_v48 = vpop.xlane.xlu0 %434 }
 0x19a   : > { %v445_v49 = vmul.f32 0.0625, %v435_v48 }
 0x19c   : > { %v449_v50 = vsub.f32 %v418_v34, %v445_v49 }
 0x19d   : > { %v438_v51 = vpop.xlane.xlu0 %437 }
 0x19e   : > { %v446_v52 = vmul.f32 0.0625, %v438_v51  ;;  %v453_v53 = vmul.f32 %v449_v50, %v449_v50 }
 0x1a0   : > { %v450_v54 = vsub.f32 %v421_v35, %v446_v52  ;;  %v457_v55 = vsel %vm432_vm1, %v453_v53, 0.0 }
 0x1a1   : > { %v441_v56 = vpop.xlane.xlu1 %440  ;;  %458 = vadd.xlane.f32.xlu0 %v457_v55 }
 0x1a2   : > { %v447_v57 = vmul.f32 0.0625, %v441_v56  ;;  %v454_v58 = vmul.f32 %v450_v54, %v450_v54 }
 0x1a4   : > { %v451_v59 = vsub.f32 %v426_v44, %v447_v57  ;;  %v460_v60 = vsel %vm432_vm1, %v454_v58, 0.0 }
 0x1a5   : > { %v444_v61 = vpop.xlane.xlu1 %443  ;;  %461 = vadd.xlane.f32.xlu1 %v460_v60 }
 0x1a6   : > { %v448_v62 = vmul.f32 0.0625, %v444_v61  ;;  %v455_v63 = vmul.f32 %v451_v59, %v451_v59 }
 0x1a8   : > { %v452_v0 = vsub.f32 %v429_v46, %v448_v62  ;;  %v463_v1 = vsel %vm432_vm1, %v455_v63, 0.0 }
 0x1a9   : > { %464 = vadd.xlane.f32.xlu0 %v463_v1 }
 0x1aa   : > { %v456_v2 = vmul.f32 %v452_v0, %v452_v0 }
 0x1ac   : > { %v466_v3 = vsel %vm432_vm1, %v456_v2, 0.0 }
 0x1ad   : > { %467 = vadd.xlane.f32.xlu1 %v466_v3 }
 0x22e   : > { %v459_v4 = vpop.xlane.xlu0 %458 }
 0x22f   : > { %v469_v5 = vmul.f32 0.0625, %v459_v4 }
 0x231   : > { %v473_v6 = vadd.f32 1e-05, %v469_v5 }
 0x232   : > { %v462_v7 = vpop.xlane.xlu1 %461 }
 0x233   : > { %664 = vrsqrt.f32 %v473_v6  ;;  %v470_v8 = vmul.f32 0.0625, %v462_v7 }
 0x235   : > { %v474_v9 = vadd.f32 1e-05, %v470_v8 }
 0x236   : > { %v465_v10 = vpop.xlane.xlu0 %464 }
 0x237   : > { %666 = vrsqrt.f32 %v474_v9  ;;  %v471_v11 = vmul.f32 0.0625, %v465_v10 }
 0x239   : > { %v475_v12 = vadd.f32 1e-05, %v471_v11 }
 0x23a   : > { %v468_v13 = vpop.xlane.xlu1 %467 }
 0x23b   : > { %668 = vrsqrt.f32 %v475_v12  ;;  %v472_v14 = vmul.f32 0.0625, %v468_v13 }
 0x23d   : > { %v665_v15 = vpop.eup %664  ;;  %v476_v16 = vadd.f32 1e-05, %v472_v14 }
 0x23e   : > { %v481_v17 = vmul.f32 %v665_v15, %v449_v50 }
 0x23f   : > { %670 = vrsqrt.f32 %v476_v16 }
 0x240   : > { %v485_v18 = vmul.f32 0.2, %v481_v17 }
 0x241   : > { %v667_v19 = vpop.eup %666 }
 0x242   : > { %v489_v20 = vmax.f32 %v481_v17, %v485_v18  ;;  %v482_v21 = vmul.f32 %v667_v19, %v450_v54 }
 0x244   : > { %493 = vst.msk [vmem:[%s143_s30] sm:$0xff] %vm432_vm1, %v489_v20  ;;  %v486_v22 = vmul.f32 0.2, %v482_v21 }
 0x245   : > { %v669_v23 = vpop.eup %668 }
 0x246   : > { %v490_v24 = vmax.f32 %v482_v21, %v486_v22  ;;  %v483_v25 = vmul.f32 %v669_v23, %v451_v59 }
 0x248   : > { %494 = vst.msk [vmem:[%s143_s30 + $0x8] sm:$0xff] %vm432_vm1, %v490_v24  ;;  %v487_v26 = vmul.f32 0.2, %v483_v25 }
 0x249   : > { %v671_v27 = vpop.eup %670 }
 0x24a   : > { %v491_v28 = vmax.f32 %v483_v25, %v487_v26  ;;  %v484_v29 = vmul.f32 %v671_v27, %v452_v0 }
 0x24c   : > { %495 = vst.msk [vmem:[%s143_s30 + $0x10] sm:$0xff] %vm432_vm1, %v491_v28  ;;  %v488_v30 = vmul.f32 0.2, %v484_v29 }
 0x24e   : > { %v492_v31 = vmax.f32 %v484_v29, %v488_v30 }
 0x250   : > { %496 = vst.msk [vmem:[%s143_s30 + $0x18] sm:$0xff] %vm432_vm1, %v492_v31 }
 0x251 PF: > { %s12_s9 = sadd.s32 1, %s678_s9  }
 0x252   : > { %p9_p4 = scmp.ge.s32.totalorder %s12_s9, 4  }
 0x254   :  { %11 = sbr.rel (!%p9_p4) target bundleno = 1 (0x1), region = 58 }

// kernel: _lambda_.23
= control target key start
LH: loop header
LB: loop body
LE: loop exit
PB: predicated region body
PF: predicated region fallthrough
CT: control target
= control target key end

     0   :  { %s672_s9 = smov 0   ;;  %s737_s0 = inlined_call_operand.vmem [shape: bf16[4,16,32], index: 0, kind: input, shape index: {}]   ;;  %s738_s1 = inlined_call_operand.vmem [shape: bf16[2,32,16], index: 1, kind: input, shape index: {}]   ;;  %s739_s2 = inlined_call_operand.vmem [shape: f32[2,4,16,16], index: 2, kind: output, shape index: {}]  }
   0x1 LB: > { %s548_s10 = sadd.s32 4294967295, %s653_s9   ;;  %p552_p0 = scmp.ge.s32.totalorder %s653_s9, 1  ;;  %s653_s9 = sphi %s672_s9, %s12_s9  }
   0x2   : > { %p112_p1 = scmp.lt.s32.totalorder %s653_s9, 3 }
   0x4   : > { %p113_p2 = pnand %p552_p0, %p112_p1 }
   0x5   : > { %p134_p3 = scmp.lt.s32.totalorder (!%p113_p2), %s548_s10, 1  ;;  %v655_v0 = vmov (!%p113_p2), 0.0   ;;  %vm656_vm0 = vmmov (!%p113_p2), 0   ;;  %v639_v3 = vld [vmem:[%s737_s0] sm:$0xff] (!%p113_p2)   ;;  %v640_v4 = vld [vmem:[%s737_s0 + $0x8] sm:$0xff] (!%p113_p2)   ;;  %vm168_vm1 = vcmask (!%p113_p2), 261120  }
   0x6   : > { %116 = sbr.rel (%p113_p2) target bundleno = 582 (0x246), region = 28  ;;  %595 = vmatprep.subr.bf16.mxu0 (!%p113_p2), %v655_v0  ;;  %603 = vmatprep.subr.bf16.mxu1 (!%p113_p2), %v655_v0  ;;  %v641_v5 = vld [vmem:[%s737_s0 + $0x10] sm:$0xff] (!%p113_p2)   ;;  %v642_v6 = vld [vmem:[%s737_s0 + $0x18] sm:$0xff] (!%p113_p2)   ;;  %vm369_vm2 = vcmask (!%p113_p2), 130048  }
   0x7   : > { %599 = vmatprep.mubr.msk.bf16.mxu0 (!%p113_p2), %vm656_vm0, %v655_v0  ;;  %607 = vmatprep.mubr.msk.bf16.mxu1 (!%p113_p2), %vm656_vm0, %v655_v0 }
   0xd   : > { %s741_s10 = smov (!%p134_p3, %s548_s10), 1 }
   0xe   : > { %s581_s11 = sshll.u32 %s741_s10, 4  ;;  %s582_s23 = sshll.u32 %s741_s10, 6 }
   0xf   : > { %s138_s14 = scalar_lea.vmem %s738_s1, %s581_s11  ;;  %s143_s26 = scalar_lea.vmem %s739_s2, %s582_s23 }
  0x10   : > { %v637_v1 = vld [vmem:[%s138_s14] sm:$0xff]   ;;  %v638_v2 = vld [vmem:[%s138_s14 + $0x8] sm:$0xff]  }
  0x11   : > { %596 = vmatpush3.bf16.msra.mxu0 %v637_v1  ;;  %604 = vmatpush3.bf16.msra.mxu1 %v637_v1 }
  0x12   : > { %597 = vmatprep.subr.bf16.mxu0 %v655_v0  ;;  %605 = vmatprep.subr.bf16.mxu1 %v655_v0 }
  0x15   : > { %598 = vmatpush3.bf16.msra.mxu0 %v638_v2  ;;  %606 = vmatpush3.bf16.msra.mxu1 %v638_v2 }
  0x16   : > { %611 = vmatprep.subr.bf16.mxu0 %v655_v0  ;;  %619 = vmatprep.subr.bf16.mxu1 %v655_v0 }
  0x18   : > { %600 = vmatmul.mubr.msk.bf16.vlgmr.msra.gmra.mrb[0].mxu0 %vm168_vm1, %v639_v3  ;;  %608 = vmatmul.mubr.msk.bf16.vlgmr.msra.gmra.mrb[0].mxu1 %vm168_vm1, %v640_v4 }
  0x19   : > { %612 = vmatpush3.bf16.msra.mxu0 %v637_v1  ;;  %620 = vmatpush3.bf16.msra.mxu1 %v637_v1 }
  0x1a   : > { %613 = vmatprep.subr.bf16.mxu0 %v655_v0  ;;  %621 = vmatprep.subr.bf16.mxu1 %v655_v0 }
  0x1b   : > { %615 = vmatprep.mubr.msk.bf16.mxu0 %vm656_vm0, %v655_v0  ;;  %623 = vmatprep.mubr.msk.bf16.mxu1 %vm656_vm0, %v655_v0 }
  0x1d   : > { %614 = vmatpush3.bf16.msra.mxu0 %v638_v2  ;;  %622 = vmatpush3.bf16.msra.mxu1 %v638_v2 }
  0x20   : > { %616 = vmatmul.mubr.msk.bf16.vlgmr.msra.gmra.mrb[4].mxu0 %vm168_vm1, %v641_v5  ;;  %624 = vmatmul.mubr.msk.bf16.vlgmr.msra.gmra.mrb[4].mxu1 %vm168_vm1, %v642_v6 }
  0xeb   : > { %v206_v7 = vpop.f32.mrb[0].mxu0  ;;  %v258_v8 = vpop.f32.mrb[0].mxu1 }
  0xec   : > { %v601_v9 = vpop.f32.mrb[1].mxu0  ;;  %v609_v10 = vpop.f32.mrb[1].mxu1  ;;  %v378_v11 = vsel %vm369_vm2, %v258_v8, 0.0  ;;  %v370_v12 = vsel %vm369_vm2, %v206_v7, 0.0 }
  0xed   : > { %379 = vadd.xlane.f32.xlu1 %v378_v11  ;;  %v261_v13 = vpop.f32.mrb[2].mxu1  ;;  %371 = vadd.xlane.f32.xlu0 %v370_v12  ;;  %v209_v14 = vpop.f32.mrb[2].mxu0 }
  0xee   : > { %v602_v15 = vpop.f32.mrb[3].mxu0  ;;  %v610_v16 = vpop.f32.mrb[3].mxu1  ;;  %v381_v17 = vsel %vm369_vm2, %v261_v13, 0.0  ;;  %v373_v18 = vsel %vm369_vm2, %v209_v14, 0.0 }
  0xf1   : > { %382 = vadd.xlane.f32.xlu1 %v381_v17  ;;  %374 = vadd.xlane.f32.xlu0 %v373_v18 }
  0xf3   : > { %v310_v19 = vpop.f32.mrb[4].mxu0  ;;  %v362_v20 = vpop.f32.mrb[4].mxu1 }
  0xf4   : > { %v617_v21 = vpop.f32.mrb[5].mxu0  ;;  %v386_v22 = vsel %vm369_vm2, %v310_v19, 0.0  ;;  %v625_v23 = vpop.f32.mrb[5].mxu1  ;;  %v394_v29 = vsel %vm369_vm2, %v362_v20, 0.0 }
  0xf5   : > { %387 = vadd.xlane.f32.xlu0 %v386_v22  ;;  %v313_v24 = vpop.f32.mrb[6].mxu0  ;;  %v365_v25 = vpop.f32.mrb[6].mxu1 }
  0xf6   : > { %v618_v26 = vpop.f32.mrb[7].mxu0  ;;  %v389_v27 = vsel %vm369_vm2, %v313_v24, 0.0  ;;  %v626_v28 = vpop.f32.mrb[7].mxu1  ;;  %v397_v30 = vsel %vm369_vm2, %v365_v25, 0.0 }
  0xf7   : > { %390 = vadd.xlane.f32.xlu1 %v389_v27 }
  0xf9   : > { %395 = vadd.xlane.f32.xlu0 %v394_v29 }
  0xfb   : > { %398 = vadd.xlane.f32.xlu1 %v397_v30 }
 0x17a   : > { %v380_v31 = vpop.xlane.xlu1 %379  ;;  %v372_v32 = vpop.xlane.xlu0 %371 }
 0x17b   : > { %v384_v36 = vadd.f32 %v380_v31, %v372_v32 }
 0x17e   : > { %v375_v33 = vpop.xlane.xlu0 %374  ;;  %v383_v34 = vpop.xlane.xlu1 %382 }
 0x17f   : > { %v385_v38 = vadd.f32 %v383_v34, %v375_v33 }
 0x182   : > { %v388_v35 = vpop.xlane.xlu0 %387 }
 0x183   : > { %v392_v39 = vadd.f32 %v388_v35, %v384_v36 }
 0x184   : > { %v391_v37 = vpop.xlane.xlu1 %390 }
 0x185   : > { %v393_v41 = vadd.f32 %v391_v37, %v385_v38 }
 0x186   : > { %v396_v40 = vpop.xlane.xlu0 %395 }
 0x187   : > { %v400_v42 = vadd.f32 %v396_v40, %v392_v39 }
 0x188   : > { %v399_v43 = vpop.xlane.xlu1 %398 }
 0x189   : > { %v402_v44 = vmul.f32 0.015625, %v400_v42  ;;  %v401_v45 = vadd.f32 %v399_v43, %v393_v41 }
 0x18b   : > { %v403_v46 = vmul.f32 0.015625, %v401_v45  ;;  %v404_v47 = vsub.f32 %v206_v7, %v402_v44  ;;  %v416_v48 = vsub.f32 %v258_v8, %v402_v44  ;;  %v428_v55 = vsub.f32 %v310_v19, %v402_v44 }
 0x18c   : > { %v440_v61 = vsub.f32 %v362_v20, %v402_v44 }
 0x18d   : > { %v406_v49 = vmul.f32 %v404_v47, %v404_v47  ;;  %v405_v50 = vsub.f32 %v209_v14, %v403_v46  ;;  %v417_v51 = vsub.f32 %v261_v13, %v403_v46  ;;  %v418_v54 = vmul.f32 %v416_v48, %v416_v48 }
 0x18e   : > { %v429_v58 = vsub.f32 %v313_v24, %v403_v46  ;;  %v430_v60 = vmul.f32 %v428_v55, %v428_v55  ;;  %v441_v0 = vsub.f32 %v365_v25, %v403_v46  ;;  %v442_v2 = vmul.f32 %v440_v61, %v440_v61 }
 0x18f   : > { %v408_v52 = vsel %vm369_vm2, %v406_v49, 0.0  ;;  %v407_v53 = vmul.f32 %v405_v50, %v405_v50  ;;  %v419_v57 = vmul.f32 %v417_v51, %v417_v51  ;;  %v420_v59 = vsel %vm369_vm2, %v418_v54, 0.0 }
 0x190   : > { %409 = vadd.xlane.f32.xlu0 %v408_v52  ;;  %v431_v63 = vmul.f32 %v429_v58, %v429_v58  ;;  %v432_v1 = vsel %vm369_vm2, %v430_v60, 0.0  ;;  %v443_v4 = vmul.f32 %v441_v0, %v441_v0  ;;  %v444_v5 = vsel %vm369_vm2, %v442_v2, 0.0 }
 0x191   : > { %v411_v56 = vsel %vm369_vm2, %v407_v53, 0.0  ;;  %v423_v62 = vsel %vm369_vm2, %v419_v57, 0.0 }
 0x192   : > { %412 = vadd.xlane.f32.xlu1 %v411_v56  ;;  %v435_v3 = vsel %vm369_vm2, %v431_v63, 0.0  ;;  %v447_v6 = vsel %vm369_vm2, %v443_v4, 0.0 }
 0x194   : > { %421 = vadd.xlane.f32.xlu0 %v420_v59 }
 0x196   : > { %424 = vadd.xlane.f32.xlu1 %v423_v62 }
 0x198   : > { %433 = vadd.xlane.f32.xlu0 %v432_v1 }
 0x19a   : > { %436 = vadd.xlane.f32.xlu1 %v435_v3 }
 0x19c   : > { %445 = vadd.xlane.f32.xlu0 %v444_v5 }
 0x19e   : > { %448 = vadd.xlane.f32.xlu1 %v447_v6 }
 0x21d   : > { %v410_v7 = vpop.xlane.xlu0 %409 }
 0x21f   : > { %v413_v8 = vpop.xlane.xlu1 %412 }
 0x221   : > { %v422_v9 = vpop.xlane.xlu0 %421 }
 0x222   : > { %v426_v12 = vadd.f32 %v422_v9, %v410_v7 }
 0x223   : > { %v425_v10 = vpop.xlane.xlu1 %424 }
 0x224   : > { %v427_v14 = vadd.f32 %v425_v10, %v413_v8 }
 0x225   : > { %v434_v11 = vpop.xlane.xlu0 %433 }
 0x226   : > { %v438_v15 = vadd.f32 %v434_v11, %v426_v12 }
 0x227   : > { %v437_v13 = vpop.xlane.xlu1 %436 }
 0x228   : > { %v439_v17 = vadd.f32 %v437_v13, %v427_v14 }
 0x229   : > { %v446_v16 = vpop.xlane.xlu0 %445 }
 0x22a   : > { %v450_v18 = vadd.f32 %v446_v16, %v438_v15 }
 0x22b   : > { %v449_v19 = vpop.xlane.xlu1 %448 }
 0x22c   : > { %v452_v20 = vmul.f32 0.015625, %v450_v18  ;;  %v451_v21 = vadd.f32 %v449_v19, %v439_v17 }
 0x22e   : > { %v454_v22 = vadd.f32 1e-05, %v452_v20  ;;  %v453_v23 = vmul.f32 0.015625, %v451_v21 }
 0x230   : > { %643 = vrsqrt.f32 %v454_v22  ;;  %v455_v24 = vadd.f32 1e-05, %v453_v23 }
 0x232   : > { %645 = vrsqrt.f32 %v455_v24 }
 0x23a   : > { %v644_v25 = vpop.eup %643 }
 0x23b   : > { %v458_v26 = vmul.f32 %v644_v25, %v404_v47  ;;  %v466_v27 = vmul.f32 %v644_v25, %v416_v48  ;;  %v475_v28 = vmul.f32 %v644_v25, %v428_v55  ;;  %v484_v29 = vmul.f32 %v644_v25, %v440_v61 }
 0x23c   : > { %v646_v30 = vpop.eup %645 }
 0x23d   : > { %v460_v31 = vmul.f32 0.2, %v458_v26  ;;  %v468_v32 = vmul.f32 0.2, %v466_v27  ;;  %v477_v33 = vmul.f32 0.2, %v475_v28  ;;  %v459_v34 = vmul.f32 %v646_v30, %v405_v50 }
 0x23e   : > { %v486_v35 = vmul.f32 0.2, %v484_v29  ;;  %v467_v36 = vmul.f32 %v646_v30, %v417_v51  ;;  %v476_v37 = vmul.f32 %v646_v30, %v429_v58  ;;  %v485_v38 = vmul.f32 %v646_v30, %v441_v0 }
 0x23f   : > { %v462_v39 = vmax.f32 %v458_v26, %v460_v31  ;;  %v470_v40 = vmax.f32 %v466_v27, %v468_v32  ;;  %v479_v41 = vmax.f32 %v475_v28, %v477_v33  ;;  %v461_v42 = vmul.f32 0.2, %v459_v34 }
 0x240   : > { %v488_v43 = vmax.f32 %v484_v29, %v486_v35  ;;  %v469_v44 = vmul.f32 0.2, %v467_v36  ;;  %v478_v45 = vmul.f32 0.2, %v476_v37  ;;  %v487_v46 = vmul.f32 0.2, %v485_v38 }
 0x241   : > { %464 = vst.msk [vmem:[%s143_s26] sm:$0xff] %vm369_vm2, %v462_v39  ;;  %573 = vst.msk [vmem:[%s143_s26 + $0x10] sm:$0xff] %vm369_vm2, %v470_v40  ;;  %v463_v47 = vmax.f32 %v459_v34, %v461_v42 }
 0x242   : > { %575 = vst.msk [vmem:[%s143_s26 + $0x20] sm:$0xff] %vm369_vm2, %v479_v41  ;;  %577 = vst.msk [vmem:[%s143_s26 + $0x30] sm:$0xff] %vm369_vm2, %v488_v43  ;;  %v471_v48 = vmax.f32 %v467_v36, %v469_v44  ;;  %v480_v49 = vmax.f32 %v476_v37, %v478_v45  ;;  %v489_v50 = vmax.f32 %v485_v38, %v487_v46 }
 0x243   : > { %465 = vst.msk [vmem:[%s143_s26 + $0x8] sm:$0xff] %vm369_vm2, %v463_v47 }
 0x244   : > { %574 = vst.msk [vmem:[%s143_s26 + $0x18] sm:$0xff] %vm369_vm2, %v471_v48  ;;  %576 = vst.msk [vmem:[%s143_s26 + $0x28] sm:$0xff] %vm369_vm2, %v480_v49 }
 0x245   : > { %578 = vst.msk [vmem:[%s143_s26 + $0x38] sm:$0xff] %vm369_vm2, %v489_v50 }
 0x246 PF: > { %s12_s9 = sadd.s32 1, %s653_s9  }
 0x247   : > { %p9_p4 = scmp.ge.s32.totalorder %s12_s9, 4  }
 0x249   :  { %11 = sbr.rel (!%p9_p4) target bundleno = 1 (0x1), region = 64 }

// kernel: _lambda_.26
= control target key start
LH: loop header
LB: loop body
LE: loop exit
PB: predicated region body
PF: predicated region fallthrough
CT: control target
= control target key end

     0   :  { %s546_s9 = smov 0   ;;  %s595_s0 = inlined_call_operand.vmem [shape: bf16[4,8,16], index: 0, kind: input, shape index: {}]   ;;  %s596_s1 = inlined_call_operand.vmem [shape: bf16[2,16,64], index: 1, kind: input, shape index: {}]   ;;  %s597_s2 = inlined_call_operand.vmem [shape: f32[2,4,8,64], index: 2, kind: output, shape index: {}]  }
   0x1 LB: > { %s452_s10 = sadd.s32 4294967295, %s527_s9   ;;  %p456_p0 = scmp.ge.s32.totalorder %s527_s9, 1  ;;  %s527_s9 = sphi %s546_s9, %s12_s9  }
   0x2   : > { %p112_p1 = scmp.lt.s32.totalorder %s527_s9, 3 }
   0x4   : > { %p113_p2 = pnand %p456_p0, %p112_p1 }
   0x5   : > { %p134_p3 = scmp.lt.s32.totalorder (!%p113_p2), %s452_s10, 1  ;;  %v529_v0 = vmov (!%p113_p2), 0.0   ;;  %vm530_vm0 = vmmov (!%p113_p2), 0   ;;  %v147_v2 = vld [vmem:[%s595_s0] sm:$0xf] (!%p113_p2)  ;;  %vm154_vm1 = vcmask (!%p113_p2), 130048  }
   0x6   : > { %116 = sbr.rel (%p113_p2) target bundleno = 569 (0x239), region = 28  ;;  %484 = vmatprep.subr.bf16.mxu0 (!%p113_p2), %v529_v0  ;;  %490 = vmatprep.subr.bf16.mxu1 (!%p113_p2), %v529_v0  ;;  %v463_v3 = vld [vmem:[%s595_s0 + $0x4] sm:$0xf] (!%p113_p2)  ;;  %v465_v4 = vld [vmem:[%s595_s0 + $0x8] sm:$0xf] (!%p113_p2)  ;;  %vm333_vm2 = vcmask (!%p113_p2), 523264  }
   0x7   : > { %486 = vmatprep.mubr.msk.bf16.mxu0 (!%p113_p2), %vm530_vm0, %v529_v0  ;;  %492 = vmatprep.mubr.msk.bf16.mxu1 (!%p113_p2), %vm530_vm0, %v529_v0  ;;  %v467_v5 = vld [vmem:[%s595_s0 + $0xc] sm:$0xf] (!%p113_p2) }
   0xd   : > { %s599_s10 = smov (!%p134_p3, %s452_s10), 1 }
   0xe   : > { %s474_s11 = sshll.u32 %s599_s10, 3  ;;  %s475_s23 = sshll.u32 %s599_s10, 5 }
   0xf   : > { %s138_s14 = scalar_lea.vmem %s596_s1, %s474_s11  ;;  %s143_s26 = scalar_lea.vmem %s597_s2, %s475_s23 }
  0x10   : > { %v518_v1 = vld [vmem:[%s138_s14] sm:$0xff]  }
  0x11   : > { %485 = vmatpush3.bf16.msra.mxu0 %v518_v1  ;;  %491 = vmatpush3.bf16.msra.mxu1 %v518_v1 }
  0x12   : > { %496 = vmatprep.subr.bf16.mxu0 %v529_v0  ;;  %502 = vmatprep.subr.bf16.mxu1 %v529_v0 }
  0x14   : > { %487 = vmatmul.mubr.msk.bf16.vlgmr.msra.gmra.mrb[0].mxu0 %vm154_vm1, %v147_v2  ;;  %493 = vmatmul.mubr.msk.bf16.vlgmr.msra.gmra.mrb[0].mxu1 %vm154_vm1, %v463_v3 }
  0x15   : > { %497 = vmatpush3.bf16.msra.mxu0 %v518_v1  ;;  %503 = vmatpush3.bf16.msra.mxu1 %v518_v1 }
  0x16   : > { %498 = vmatprep.mubr.msk.bf16.mxu0 %vm530_vm0, %v529_v0  ;;  %504 = vmatprep.mubr.msk.bf16.mxu1 %vm530_vm0, %v529_v0 }
  0x1c   : > { %499 = vmatmul.mubr.msk.bf16.vlgmr.msra.gmra.mrb[4].mxu0 %vm154_vm1, %v465_v4  ;;  %505 = vmatmul.mubr.msk.bf16.vlgmr.msra.gmra.mrb[4].mxu1 %vm154_vm1, %v467_v5 }
  0xe7   : > { %v192_v6 = vpop.f32.mrb[0].mxu0  ;;  %v237_v7 = vpop.f32.mrb[0].mxu1 }
  0xe8   : > { %v488_v8 = vpop.f32.mrb[1].mxu0  ;;  %v334_v9 = vsel %vm333_vm2, %v192_v6, 0.0  ;;  %v494_v10 = vpop.f32.mrb[1].mxu1  ;;  %v338_v15 = vsel %vm333_vm2, %v237_v7, 0.0 }
  0xe9   : > { %335 = vadd.xlane.f32.xlu0 %v334_v9  ;;  %v195_v11 = vpop.f32.mrb[2].mxu0  ;;  %v240_v12 = vpop.f32.mrb[2].mxu1 }
  0xea   : > { %v489_v13 = vpop.f32.mrb[3].mxu0  ;;  %v495_v14 = vpop.f32.mrb[3].mxu1 }
  0xed   : > { %339 = vadd.xlane.f32.xlu0 %v338_v15 }
  0xef   : > { %v282_v16 = vpop.f32.mrb[4].mxu0  ;;  %v327_v17 = vpop.f32.mrb[4].mxu1 }
  0xf0   : > { %v500_v18 = vpop.f32.mrb[5].mxu0  ;;  %v342_v19 = vsel %vm333_vm2, %v282_v16, 0.0  ;;  %v506_v20 = vpop.f32.mrb[5].mxu1  ;;  %v346_v25 = vsel %vm333_vm2, %v327_v17, 0.0 }
  0xf1   : > { %343 = vadd.xlane.f32.xlu1 %v342_v19  ;;  %v285_v21 = vpop.f32.mrb[6].mxu0  ;;  %v330_v22 = vpop.f32.mrb[6].mxu1 }
  0xf2   : > { %v501_v23 = vpop.f32.mrb[7].mxu0  ;;  %v507_v24 = vpop.f32.mrb[7].mxu1 }
  0xf5   : > { %347 = vadd.xlane.f32.xlu1 %v346_v25 }
 0x176   : > { %v336_v26 = vpop.xlane.xlu0 %335 }
 0x17a   : > { %v340_v27 = vpop.xlane.xlu0 %339 }
 0x17b   : > { %v341_v29 = vadd.f32 %v340_v27, %v336_v26 }
 0x17e   : > { %v344_v28 = vpop.xlane.xlu1 %343 }
 0x17f   : > { %v345_v30 = vadd.f32 %v344_v28, %v341_v29 }
 0x182   : > { %v348_v31 = vpop.xlane.xlu1 %347 }
 0x183   : > { %v349_v32 = vadd.f32 %v348_v31, %v345_v30 }
 0x185   : > { %v350_v33 = vmul.f32 0.00390625, %v349_v32 }
 0x187   : > { %v357_v34 = vsub.f32 %v237_v7, %v350_v33  ;;  %v351_v35 = vsub.f32 %v192_v6, %v350_v33  ;;  %v369_v36 = vsub.f32 %v327_v17, %v350_v33  ;;  %v363_v37 = vsub.f32 %v282_v16, %v350_v33 }
 0x189   : > { %v358_v38 = vmul.f32 %v357_v34, %v357_v34  ;;  %v352_v39 = vmul.f32 %v351_v35, %v351_v35  ;;  %v370_v42 = vmul.f32 %v369_v36, %v369_v36  ;;  %v364_v43 = vmul.f32 %v363_v37, %v363_v37 }
 0x18b   : > { %v359_v40 = vsel %vm333_vm2, %v358_v38, 0.0  ;;  %v353_v41 = vsel %vm333_vm2, %v352_v39, 0.0  ;;  %v371_v44 = vsel %vm333_vm2, %v370_v42, 0.0  ;;  %v365_v45 = vsel %vm333_vm2, %v364_v43, 0.0 }
 0x18c   : > { %360 = vadd.xlane.f32.xlu1 %v359_v40  ;;  %354 = vadd.xlane.f32.xlu0 %v353_v41 }
 0x190   : > { %372 = vadd.xlane.f32.xlu1 %v371_v44  ;;  %366 = vadd.xlane.f32.xlu0 %v365_v45 }
 0x219   : > { %v361_v46 = vpop.xlane.xlu1 %360  ;;  %v355_v47 = vpop.xlane.xlu0 %354 }
 0x21a   : > { %v362_v48 = vadd.f32 %v361_v46, %v355_v47 }
 0x21d   : > { %v367_v49 = vpop.xlane.xlu0 %366  ;;  %v373_v51 = vpop.xlane.xlu1 %372 }
 0x21e   : > { %v368_v50 = vadd.f32 %v367_v49, %v362_v48 }
 0x220   : > { %v374_v52 = vadd.f32 %v373_v51, %v368_v50 }
 0x222   : > { %v375_v53 = vmul.f32 0.00390625, %v374_v52 }
 0x224   : > { %v376_v54 = vadd.f32 1e-05, %v375_v53 }
 0x226   : > { %519 = vrsqrt.f32 %v376_v54 }
 0x230   : > { %v520_v55 = vpop.eup %519 }
 0x231   : > { %v378_v56 = vmul.f32 %v520_v55, %v351_v35  ;;  %v382_v57 = vmul.f32 %v520_v55, %v357_v34  ;;  %v387_v58 = vmul.f32 %v520_v55, %v363_v37  ;;  %v392_v59 = vmul.f32 %v520_v55, %v369_v36 }
 0x233   : > { %v379_v60 = vmul.f32 0.2, %v378_v56  ;;  %v383_v61 = vmul.f32 0.2, %v382_v57  ;;  %v388_v62 = vmul.f32 0.2, %v387_v58 }
 0x234   : > { %v393_v63 = vmul.f32 0.2, %v392_v59 }
 0x235   : > { %v380_v0 = vmax.f32 %v378_v56, %v379_v60  ;;  %v384_v1 = vmax.f32 %v382_v57, %v383_v61  ;;  %v389_v2 = vmax.f32 %v387_v58, %v388_v62 }
 0x236   : > { %v394_v3 = vmax.f32 %v392_v59, %v393_v63 }
 0x237   : > { %381 = vst.msk [vmem:[%s143_s26] sm:$0xff] %vm333_vm2, %v380_v0  ;;  %469 = vst.msk [vmem:[%s143_s26 + $0x8] sm:$0xff] %vm333_vm2, %v384_v1 }
 0x238   : > { %470 = vst.msk [vmem:[%s143_s26 + $0x10] sm:$0xff] %vm333_vm2, %v389_v2  ;;  %471 = vst.msk [vmem:[%s143_s26 + $0x18] sm:$0xff] %vm333_vm2, %v394_v3 }
 0x239 PF: > { %s12_s9 = sadd.s32 1, %s527_s9  }
 0x23a   : > { %p9_p4 = scmp.ge.s32.totalorder %s12_s9, 4  }
 0x23c   :  { %11 = sbr.rel (!%p9_p4) target bundleno = 1 (0x1), region = 64 }

// kernel: _lambda_.24
= control target key start
LH: loop header
LB: loop body
LE: loop exit
PB: predicated region body
PF: predicated region fallthrough
CT: control target
= control target key end

     0   :  { %s610_s9 = smov 0   ;;  %s666_s0 = inlined_call_operand.vmem [shape: bf16[16,288], index: 0, kind: input, shape index: {}]   ;;  %s667_s1 = inlined_call_operand.vmem [shape: bf16[2,288,64], index: 1, kind: input, shape index: {}]   ;;  %s668_s2 = inlined_call_operand.vmem [shape: f32[2,16,64], index: 2, kind: output, shape index: {}]  }
   0x1 LB: > { %s482_s10 = sadd.s32 4294967295, %s591_s9   ;;  %p486_p0 = scmp.ge.s32.totalorder %s591_s9, 1  ;;  %s591_s9 = sphi %s610_s9, %s12_s9  }
   0x2   : > { %p112_p1 = scmp.lt.s32.totalorder %s591_s9, 3 }
   0x4   : > { %p113_p2 = pnand %p486_p0, %p112_p1 }
   0x5   : > { %p134_p3 = scmp.lt.s32.totalorder (!%p113_p2), %s482_s10, 1  ;;  %v593_v0 = vmov (!%p113_p2), 0.0   ;;  %v579_v1 = vld [vmem:[%s666_s0 + $0x4] ss:$12 sps:$4 sm:$0xff] (!%p113_p2)   ;;  %vm594_vm0 = vmmov (!%p113_p2), 0   ;;  %vm308_vm1 = vcmask (!%p113_p2), 261120  }
   0x6   : > { %116 = sbr.rel (%p113_p2) target bundleno = 585 (0x249), region = 28  ;;  %540 = vmatprep.subr.bf16.mxu1 (!%p113_p2), %v593_v0  ;;  %544 = vmatprep.mubr.msk.bf16.mxu1 (!%p113_p2), %vm594_vm0, %v593_v0  ;;  %v580_v16 = vld [vmem:[%s666_s0 + $0x8] ss:$12 sps:$4 sm:$0xff] (!%p113_p2)   ;;  %v577_v21 = vld [vmem:[%s666_s0] ss:$12 sps:$4 sm:$0xff] (!%p113_p2)   ;;  %vm394_vm2 = vcmask (!%p113_p2), 523264  }
   0x7   : > { %344 = vmatprep.mubr.bf16.mxu0 (!%p113_p2), %v579_v1 }
   0xd   : > { %s670_s10 = smov (!%p134_p3, %s482_s10), 1 }
   0xe   : > { %s548_s13 = smul.u32 144, %s670_s10  ;;  %s514_s21 = sshll.u32 %s670_s10, 4 }
   0xf   : > { %s143_s24 = scalar_lea.vmem %s668_s2, %s514_s21 }
  0x10   : > { %s627_s16 = scalar_lea.vmem %s667_s1, %s548_s13 }
  0x11   : > { %v559_v2 = vld [vmem:[%s627_s16 + $0x40] sm:$0xff]   ;;  %v561_v4 = vld [vmem:[%s627_s16 + $0x48] sm:$0xff]   ;;  %v563_v6 = vld [vmem:[%s627_s16 + $0x50] sm:$0xff]  }
  0x12   : > { %v560_v3 = vld [vmem:[%s627_s16] sm:$0xff]   ;;  %515 = vmatprep.subr.bf16.mxu0 %v559_v2  ;;  %v562_v5 = vld [vmem:[%s627_s16 + $0x8] sm:$0xff]   ;;  %v564_v7 = vld [vmem:[%s627_s16 + $0x10] sm:$0xff]  }
  0x13   : > { %516 = vmatpush3.bf16.msra.mxu0 %v560_v3  ;;  %v565_v8 = vld [vmem:[%s627_s16 + $0x58] sm:$0xff]   ;;  %v567_v10 = vld [vmem:[%s627_s16 + $0x60] sm:$0xff]   ;;  %v569_v13 = vld [vmem:[%s627_s16 + $0x68] sm:$0xff]  }
  0x14   : > { %517 = vmatprep.subr.bf16.mxu0 %v561_v4  ;;  %v566_v9 = vld [vmem:[%s627_s16 + $0x18] sm:$0xff]   ;;  %v573_v11 = vld [vmem:[%s627_s16 + $0x80] sm:$0xff]   ;;  %v576_v14 = vld [vmem:[%s627_s16 + $0x88] sm:$0xff]  }
  0x15   : > { %v568_v12 = vld [vmem:[%s627_s16 + $0x20] sm:$0xff]   ;;  %541 = vmatpush3.bf16.msra.mxu1 %v573_v11  ;;  %v570_v15 = vld [vmem:[%s627_s16 + $0x28] sm:$0xff]   ;;  %v571_v17 = vld [vmem:[%s627_s16 + $0x70] sm:$0xff]  }
  0x16   : > { %542 = vmatprep.subr.bf16.mxu1 %v593_v0  ;;  %v572_v18 = vld [vmem:[%s627_s16 + $0x30] sm:$0xff]   ;;  %v574_v19 = vld [vmem:[%s627_s16 + $0x78] sm:$0xff]  }
  0x17   : > { %518 = vmatpush3.bf16.msra.mxu0 %v562_v5  ;;  %v575_v20 = vld [vmem:[%s627_s16 + $0x38] sm:$0xff]  }
  0x18   : > { %519 = vmatprep.subr.bf16.mxu0 %v563_v6 }
  0x19   : > { %543 = vmatpush3.bf16.msra.mxu1 %v576_v14 }
  0x1b   : > { %520 = vmatpush3.bf16.msra.mxu0 %v564_v7 }
  0x1c   : > { %521 = vmatprep.subr.bf16.mxu0 %v565_v8  ;;  %545 = vmatmul.mubr.msk.bf16.vlgmr.msra.gmra.mrb[0].mxu1 %vm308_vm1, %v580_v16 }
  0x1f   : > { %522 = vmatpush3.bf16.msra.mxu0 %v566_v9 }
  0x20   : > { %523 = vmatprep.subr.bf16.mxu0 %v567_v10 }
  0x23   : > { %524 = vmatpush3.bf16.msra.mxu0 %v568_v12 }
  0x24   : > { %525 = vmatprep.subr.bf16.mxu0 %v569_v13 }
  0x27   : > { %526 = vmatpush3.bf16.msra.mxu0 %v570_v15 }
  0x28   : > { %527 = vmatprep.subr.bf16.mxu0 %v571_v17 }
  0x2b   : > { %528 = vmatpush3.bf16.msra.mxu0 %v572_v18 }
  0x2c   : > { %529 = vmatprep.subr.bf16.mxu0 %v574_v19 }
  0x2f   : > { %530 = vmatpush3.bf16.msra.mxu0 %v575_v20 }
  0x32   : > { %345 = vmatmul.mubr.bf16.vlgmr.msra.gmra.mrb[0].mxu0 %v577_v21 }
  0xef   : > { %v387_v22 = vpop.f32.mrb[0].mxu1 }
  0xf0   : > { %v546_v23 = vpop.f32.mrb[1].mxu1 }
  0xf1   : > { %v390_v24 = vpop.f32.mrb[2].mxu1 }
  0xf2   : > { %v547_v25 = vpop.f32.mrb[3].mxu1 }
 0x105   : > { %v531_v26 = vpop.f32.mrb[0].mxu0 }
 0x106   : > { %v532_v27 = vpop.f32.mrb[1].mxu0 }
 0x107   : > { %v533_v28 = vadd.f32 %v532_v27, %v531_v26  ;;  %v534_v29 = vpop.f32.mrb[2].mxu0 }
 0x108   : > { %v535_v30 = vpop.f32.mrb[3].mxu0 }
 0x109   : > { %v536_v31 = vadd.f32 %v535_v30, %v534_v29  ;;  %v388_v32 = vadd.f32 %v533_v28, %v387_v22 }
 0x10b   : > { %v395_v33 = vsel %vm394_vm2, %v388_v32, 0.0  ;;  %v391_v34 = vadd.f32 %v536_v31, %v390_v24 }
 0x10c   : > { %396 = vadd.xlane.f32.xlu0 %v395_v33 }
 0x10d   : > { %v398_v35 = vsel %vm394_vm2, %v391_v34, 0.0 }
 0x110   : > { %399 = vadd.xlane.f32.xlu0 %v398_v35 }
 0x199   : > { %v397_v36 = vpop.xlane.xlu0 %396 }
 0x19a   : > { %v401_v37 = vmul.f32 0.015625, %v397_v36 }
 0x19c   : > { %v403_v38 = vsub.f32 %v388_v32, %v401_v37 }
 0x19d   : > { %v400_v39 = vpop.xlane.xlu0 %399 }
 0x19e   : > { %v402_v40 = vmul.f32 0.015625, %v400_v39  ;;  %v405_v41 = vmul.f32 %v403_v38, %v403_v38 }
 0x1a0   : > { %v404_v42 = vsub.f32 %v391_v34, %v402_v40  ;;  %v407_v43 = vsel %vm394_vm2, %v405_v41, 0.0 }
 0x1a1   : > { %408 = vadd.xlane.f32.xlu1 %v407_v43 }
 0x1a2   : > { %v406_v44 = vmul.f32 %v404_v42, %v404_v42 }
 0x1a4   : > { %v410_v45 = vsel %vm394_vm2, %v406_v44, 0.0 }
 0x1a5   : > { %411 = vadd.xlane.f32.xlu1 %v410_v45 }
 0x22e   : > { %v409_v46 = vpop.xlane.xlu1 %408 }
 0x22f   : > { %v413_v47 = vmul.f32 0.015625, %v409_v46 }
 0x231   : > { %v415_v48 = vadd.f32 1e-05, %v413_v47 }
 0x232   : > { %v412_v49 = vpop.xlane.xlu1 %411 }
 0x233   : > { %581 = vrsqrt.f32 %v415_v48  ;;  %v414_v50 = vmul.f32 0.015625, %v412_v49 }
 0x235   : > { %v416_v51 = vadd.f32 1e-05, %v414_v50 }
 0x237   : > { %583 = vrsqrt.f32 %v416_v51 }
 0x23d   : > { %v582_v52 = vpop.eup %581 }
 0x23e   : > { %v419_v53 = vmul.f32 %v582_v52, %v403_v38 }
 0x240   : > { %v421_v54 = vmul.f32 0.2, %v419_v53 }
 0x241   : > { %v584_v55 = vpop.eup %583 }
 0x242   : > { %v423_v56 = vmax.f32 %v419_v53, %v421_v54  ;;  %v420_v57 = vmul.f32 %v584_v55, %v404_v42 }
 0x244   : > { %425 = vst.msk [vmem:[%s143_s24] sm:$0xff] %vm394_vm2, %v423_v56  ;;  %v422_v58 = vmul.f32 0.2, %v420_v57 }
 0x246   : > { %v424_v59 = vmax.f32 %v420_v57, %v422_v58 }
 0x248   : > { %426 = vst.msk [vmem:[%s143_s24 + $0x8] sm:$0xff] %vm394_vm2, %v424_v59 }
 0x249 PF: > { %s12_s9 = sadd.s32 1, %s591_s9  }
 0x24a   : > { %p9_p4 = scmp.ge.s32.totalorder %s12_s9, 4  }
 0x24c   :  { %11 = sbr.rel (!%p9_p4) target bundleno = 1 (0x1), region = 58 }

// kernel: _lambda_.29
= control target key start
LH: loop header
LB: loop body
LE: loop exit
PB: predicated region body
PF: predicated region fallthrough
CT: control target
= control target key end

     0   :  { %s445_s15 = smov 0   ;;  %s471_s0 = inlined_call_operand.vmem [shape: bf16[2,8], index: 0, kind: input, shape index: {}]   ;;  %s472_s1 = inlined_call_operand.vmem [shape: f32[2,1], index: 1, kind: input, shape index: {}]   ;;  %s473_s2 = inlined_call_operand.vmem [shape: bf16[2,8,256], index: 2, kind: input, shape index: {}]   ;;  %s474_s3 = inlined_call_operand.vmem [shape: f32[2,2,256], index: 3, kind: input, shape index: {}]   ;;  %s475_s4 = inlined_call_operand.vmem [shape: f32[2,2,256], index: 4, kind: output, shape index: {}]  }
   0x1 LB: > { %s377_s16 = sadd.s32 4294967295, %s417_s15   ;;  %p381_p0 = scmp.ge.s32.totalorder %s417_s15, 1  ;;  %s417_s15 = sphi %s445_s15, %s14_s15  }
   0x2   : > { %p172_p1 = scmp.lt.s32.totalorder %s417_s15, 3 }
   0x4   : > { %p173_p2 = pnand %p381_p0, %p172_p1 }
   0x5   : > { %p203_p3 = scmp.lt.s32.totalorder (!%p173_p2), %s377_s16, 1  ;;  %v419_v0 = vmov (!%p173_p2), 0   ;;  %v221_v1 = vld [vmem:[%s472_s1] sm:$0x3] (!%p173_p2)  ;;  %vm236_vm0 = vcmask (!%p173_p2), 1043456   ;;  %vm232_vm1 = vcmask (!%p173_p2), 64512  }
   0x6   : > { %176 = sbr.rel (%p173_p2) target bundleno = 243 (0xf3), region = 36  ;;  %275 = vmatprep.mubr.bf16.mxu0 (!%p173_p2), %v419_v0  ;;  %408 = vset.pattern.permute.xlu0 (!%p173_p2), %v419_v0  ;;  %v219_v6 = vld [vmem:[%s471_s0] sm:$0x1] (!%p173_p2) }
   0x7   : > { %224 = vperm.xlu0 (!%p173_p2), %408, %v221_v1  }
   0xd   : > { %s477_s16 = smov (!%p203_p3, %s377_s16), 1 }
   0xe   : > { %s396_s19 = sshll.u32 %s477_s16, 3  ;;  %s397_s25 = sshll.u32 %s477_s16, 2 }
   0xf   : > { %s207_s22 = scalar_lea.vmem %s473_s2, %s396_s19  ;;  %s212_s28 = scalar_lea.vmem %s474_s3, %s397_s25 }
  0x10   : > { %v220_v2 = vld [vmem:[%s207_s22] sm:$0xff]  ;;  %s217_s5 = scalar_lea.vmem %s475_s4, %s397_s25 }
  0x11   : > { %v389_v3 = vcombine.high %v220_v2, %v220_v2  ;;  %v388_v4 = vcombine.low %v220_v2, %v220_v2  ;;  %v392_v7 = vld.sshfl [vmem:[%s212_s28] sm:$0x33 pattern:$0x76325410] }
  0x12   : > { %v293_v10 = vcombine.high %v392_v7, %v392_v7 }
  0x13   : > { %390 = vmatprep.subr.msk.bf16.mxu0 %vm236_vm0, %v389_v3  ;;  %v238_v5 = vsel %vm236_vm0, %v388_v4, 0 }
  0x14   : > { %244 = vmatpush1.bf16.msra.mxu0 %v238_v5 }
  0x17   : > { %391 = vmatmul.mubr.msk.bf16.vlgmr.msra.gmra.mrb[0].mxu0 %vm232_vm1, %v219_v6 }
  0x86   : > { %v225_v8 = vpop.permute.xlu0 %224 }
  0xea   : > { %v277_v9 = vpop.f32.mrb[0].mxu0 }
  0xeb   : > { %v278_v11 = vadd.f32 %v277_v9, %v225_v8  ;;  %v279_v12 = vpop.f32.mrb[1].mxu0 }
  0xec   : > { %v280_v13 = vadd.f32 %v279_v12, %v225_v8  ;;  %v281_v14 = vpop.f32.mrb[2].mxu0 }
  0xed   : > { %v296_v15 = vadd.f32 %v392_v7, %v278_v11  ;;  %v282_v16 = vpop.f32.mrb[3].mxu0 }
  0xee   : > { %v297_v17 = vadd.f32 %v293_v10, %v280_v13 }
  0xf0   : > { %v300_v18 = vcombine.low %v296_v15, %v297_v17 }
  0xf2   : > { %393 = vst.sshfl [vmem:[%s217_s5] sm:$0x33 pattern:$0x76325410] %v300_v18 }
  0xf3 PF: > { %s14_s15 = sadd.s32 1, %s417_s15  }
  0xf4   : > { %p11_p4 = scmp.ge.s32.totalorder %s14_s15, 4  }
  0xf6   :  { %13 = sbr.rel (!%p11_p4) target bundleno = 1 (0x1), region = 69 }

// kernel: _lambda_.27
= control target key start
LH: loop header
LB: loop body
LE: loop exit
PB: predicated region body
PF: predicated region fallthrough
CT: control target
= control target key end

     0   :  { %s477_s9 = smov 0   ;;  %s521_s0 = inlined_call_operand.vmem [shape: bf16[8,144], index: 0, kind: input, shape index: {}]   ;;  %s522_s1 = inlined_call_operand.vmem [shape: bf16[2,144,256], index: 1, kind: input, shape index: {}]   ;;  %s523_s2 = inlined_call_operand.vmem [shape: f32[2,8,256], index: 2, kind: output, shape index: {}]  }
   0x1 LB: > { %s382_s10 = sadd.s32 4294967295, %s460_s9   ;;  %p386_p0 = scmp.ge.s32.totalorder %s460_s9, 1  ;;  %s460_s9 = sphi %s477_s9, %s12_s9  }
   0x2   : > { %p112_p1 = scmp.lt.s32.totalorder %s460_s9, 3 }
   0x4   : > { %p113_p2 = pnand %p386_p0, %p112_p1 }
   0x5   : > { %p134_p3 = scmp.lt.s32.totalorder (!%p113_p2), %s382_s10, 1  ;;  %v145_v0 = vld [vmem:[%s521_s0] sm:$0xff] (!%p113_p2)  ;;  %vm260_vm0 = vcmask (!%p113_p2), 130048  }
   0x6   : > { %116 = sbr.rel (%p113_p2) target bundleno = 583 (0x247), region = 28  ;;  %v391_v1 = vcombine.high (!%p113_p2), %v145_v0, %v145_v0  ;;  %v390_v20 = vcombine.low (!%p113_p2), %v145_v0, %v145_v0 }
   0x8   : > { %410 = vmatprep.mubr.msk.bf16.mxu0 (!%p113_p2), %vm260_vm0, %v391_v1 }
   0xd   : > { %s525_s10 = smov (!%p134_p3, %s382_s10), 1 }
   0xe   : > { %s414_s13 = smul.u32 144, %s525_s10  ;;  %s413_s17 = sshll.u32 %s525_s10, 4 }
   0xf   : > { %s143_s20 = scalar_lea.vmem %s523_s2, %s413_s17 }
  0x10   : > { %s494_s16 = scalar_lea.vmem %s522_s1, %s414_s13 }
  0x11   : > { %v423_v2 = vld [vmem:[%s494_s16 + $0x4] ss:$8 sps:$4 sm:$0xff]   ;;  %v425_v3 = vld [vmem:[%s494_s16] ss:$8 sps:$4 sm:$0xff]   ;;  %v426_v4 = vld [vmem:[%s494_s16 + $0x14] ss:$8 sps:$4 sm:$0xff]  }
  0x12   : > { %264 = vmatprep.subr.bf16.mxu0 %v423_v2  ;;  %v428_v5 = vld [vmem:[%s494_s16 + $0x10] ss:$8 sps:$4 sm:$0xff]   ;;  %v429_v6 = vld [vmem:[%s494_s16 + $0x24] ss:$8 sps:$4 sm:$0xff]   ;;  %v431_v7 = vld [vmem:[%s494_s16 + $0x20] ss:$8 sps:$4 sm:$0xff]  }
  0x13   : > { %265 = vmatpush1.bf16.msra.mxu0 %v425_v3  ;;  %v432_v8 = vld [vmem:[%s494_s16 + $0x34] ss:$8 sps:$4 sm:$0xff]   ;;  %v434_v9 = vld [vmem:[%s494_s16 + $0x30] ss:$8 sps:$4 sm:$0xff]   ;;  %v435_v10 = vld [vmem:[%s494_s16 + $0x44] ss:$8 sps:$4 sm:$0xff]  }
  0x14   : > { %266 = vmatprep.subr.bf16.mxu0 %v426_v4  ;;  %v437_v11 = vld [vmem:[%s494_s16 + $0x40] ss:$8 sps:$4 sm:$0xff]   ;;  %v438_v12 = vld [vmem:[%s494_s16 + $0x54] ss:$8 sps:$4 sm:$0xff]   ;;  %v440_v13 = vld [vmem:[%s494_s16 + $0x50] ss:$8 sps:$4 sm:$0xff]  }
  0x15   : > { %v441_v14 = vld [vmem:[%s494_s16 + $0x64] ss:$8 sps:$4 sm:$0xff]   ;;  %v443_v15 = vld [vmem:[%s494_s16 + $0x60] ss:$8 sps:$4 sm:$0xff]   ;;  %v444_v16 = vld [vmem:[%s494_s16 + $0x74] ss:$8 sps:$4 sm:$0xff]  }
  0x16   : > { %v446_v17 = vld [vmem:[%s494_s16 + $0x70] ss:$8 sps:$4 sm:$0xff]   ;;  %v447_v18 = vld [vmem:[%s494_s16 + $0x84] ss:$8 sps:$4 sm:$0xff]   ;;  %v449_v19 = vld [vmem:[%s494_s16 + $0x80] ss:$8 sps:$4 sm:$0xff]  }
  0x17   : > { %267 = vmatpush1.bf16.msra.mxu0 %v428_v5 }
  0x18   : > { %268 = vmatprep.subr.bf16.mxu0 %v429_v6 }
  0x1b   : > { %269 = vmatpush1.bf16.msra.mxu0 %v431_v7 }
  0x1c   : > { %270 = vmatprep.subr.bf16.mxu0 %v432_v8 }
  0x1f   : > { %271 = vmatpush1.bf16.msra.mxu0 %v434_v9 }
  0x20   : > { %272 = vmatprep.subr.bf16.mxu0 %v435_v10 }
  0x23   : > { %273 = vmatpush1.bf16.msra.mxu0 %v437_v11 }
  0x24   : > { %274 = vmatprep.subr.bf16.mxu0 %v438_v12 }
  0x27   : > { %275 = vmatpush1.bf16.msra.mxu0 %v440_v13 }
  0x28   : > { %276 = vmatprep.subr.bf16.mxu0 %v441_v14 }
  0x2b   : > { %277 = vmatpush1.bf16.msra.mxu0 %v443_v15 }
  0x2c   : > { %278 = vmatprep.subr.bf16.mxu0 %v444_v16 }
  0x2f   : > { %279 = vmatpush1.bf16.msra.mxu0 %v446_v17 }
  0x30   : > { %280 = vmatprep.subr.bf16.mxu0 %v447_v18 }
  0x33   : > { %281 = vmatpush1.bf16.msra.mxu0 %v449_v19 }
  0x36   : > { %297 = vmatmul.mubr.bf16.vlgmr.msra.gmra.mrb[0].mxu0 %v390_v20 }
 0x109   : > { %v298_v21 = vpop.f32.mrb[0].mxu0 }
 0x10a   : > { %v300_v22 = vpop.f32.mrb[1].mxu0 }
 0x10b   : > { %v302_v23 = vpop.f32.mrb[2].mxu0  ;;  %v305_v24 = vadd.f32 %v300_v22, %v298_v21 }
 0x10c   : > { %v303_v25 = vpop.f32.mrb[3].mxu0 }
 0x10d   : > { %306 = vadd.xlane.f32.xlu0 %v305_v24 }
 0x19a   : > { %v307_v26 = vpop.xlane.xlu0 %306 }
 0x19b   : > { %v308_v27 = vmul.f32 0.00390625, %v307_v26 }
 0x19d   : > { %v309_v28 = vsub.f32 %v298_v21, %v308_v27  ;;  %v310_v29 = vsub.f32 %v300_v22, %v308_v27 }
 0x19f   : > { %v311_v30 = vmul.f32 %v309_v28, %v309_v28  ;;  %v312_v31 = vmul.f32 %v310_v29, %v310_v29 }
 0x1a1   : > { %v313_v32 = vadd.f32 %v312_v31, %v311_v30 }
 0x1a3   : > { %314 = vadd.xlane.f32.xlu0 %v313_v32 }
 0x230   : > { %v315_v33 = vpop.xlane.xlu0 %314 }
 0x231   : > { %v316_v34 = vmul.f32 0.00390625, %v315_v33 }
 0x233   : > { %v317_v35 = vadd.f32 1e-05, %v316_v34 }
 0x235   : > { %452 = vrsqrt.f32 %v317_v35 }
 0x23f   : > { %v453_v36 = vpop.eup %452 }
 0x240   : > { %v319_v37 = vmul.f32 %v453_v36, %v309_v28  ;;  %v320_v38 = vmul.f32 %v453_v36, %v310_v29 }
 0x242   : > { %v321_v39 = vmul.f32 0.2, %v319_v37  ;;  %v322_v40 = vmul.f32 0.2, %v320_v38 }
 0x244   : > { %v323_v41 = vmax.f32 %v319_v37, %v321_v39  ;;  %v324_v42 = vmax.f32 %v320_v38, %v322_v40 }
 0x246   : > { %325 = vst [vmem:[%s143_s20] sm:$0xff] %v323_v41  ;;  %326 = vst [vmem:[%s143_s20 + $0x8] sm:$0xff] %v324_v42 }
 0x247 PF: > { %s12_s9 = sadd.s32 1, %s460_s9  }
 0x248   : > { %p9_p4 = scmp.ge.s32.totalorder %s12_s9, 4  }
 0x24a   :  { %11 = sbr.rel (!%p9_p4) target bundleno = 1 (0x1), region = 58 }

</bundles_post_ra>
